<compile_context>
chip_gen: v7x
topology: tpu7x:2x2x1
jax: 0.10.0
libtpu: 0.0.40
codegen_flags: <defaults>
</compile_context>

<pallas_src>
import functools

import jax
import jax.numpy as jnp
from jax.experimental import pallas as pl
from jax.experimental.pallas import tpu as pltpu


def _round_up(x, m):
    return (x + m - 1) // m * m


# ----------------------------------------------------------------------------
# Fused forward kernel.
# Inputs (all VMEM, full-array blocks):
#   p1   : (M1, K1p)  bf16  conv1 patch matrix, rows ordered (ph, pw, h2, w2, b)
#   w1   : (K1p, C1)  bf16  conv1 weight (K ordered (c_in, kh, kw))
#   w2   : (16*C1, C2) bf16 conv2 weight, rows ordered (kh, kw, c_in)
#   w3   : (9*C2, C3)  bf16 conv3 weight, rows ordered (kh, kw, c_in)
#   wf1  : (P3*C3, F1) bf16 fc1 weight, rows ordered (oh3, ow3, c)
#   wf2  : (F1, NA)    bf16 fc2 weight, output lane-padded to NA (mult of 128)
#   b*   : (1, N) f32 biases
# Output:
#   o    : (B, NA) f32
# Scratch: bf16 activations y1 (conv1 out), y2 (conv2 out), y3 (conv3 out).
# ----------------------------------------------------------------------------
def _dqn_fused_kernel(
    p1_ref, w1_ref, b1_ref, w2_ref, b2_ref, w3_ref, b3_ref,
    wf1_ref, fb1_ref, wf2_ref, fb2_ref,
    o_ref,
    y1_ref, y2_ref, y3_ref,
    *, B, H2, W2, OH2, OW2, OH3, OW3, C1, C2, C3, KS2, KS3, F1):
    f32 = jnp.float32
    bf16 = jnp.bfloat16

    # ---- conv1: one GEMM over the pre-phased patch matrix -------------------
    y1 = jnp.dot(p1_ref[...], w1_ref[...], preferred_element_type=f32)
    y1_ref[...] = jnp.maximum(y1 + b1_ref[...], 0.0).astype(bf16)
    # y1_ref row (ph, pw, h2, w2, b) <-> conv1 output position (2*h2+ph, 2*w2+pw)

    # ---- conv2 (KS2 x KS2, stride 2): per-output-row tap-sum of small GEMMs --
    for oh in range(OH2):
        acc = jnp.zeros((OW2 * B, C2), f32)
        for ki in range(KS2):
            for kj in range(KS2):
                ph, a = ki % 2, ki // 2
                pw, c = kj % 2, kj // 2
                start = (((ph * 2 + pw) * H2 + (oh + a)) * W2 + c) * B
                blk = y1_ref[start:start + OW2 * B, :]          # (OW2*B, C1)
                t = ki * KS2 + kj
                acc = acc + jnp.dot(blk, w2_ref[t * C1:(t + 1) * C1, :],
                                    preferred_element_type=f32)
        y2_ref[oh * OW2 * B:(oh + 1) * OW2 * B, :] = (
            jnp.maximum(acc + b2_ref[...], 0.0).astype(bf16))
    # y2_ref rows ordered (oh2, ow2, b)

    # ---- conv3 (KS3 x KS3, stride 1) ----------------------------------------
    for oh in range(OH3):
        acc = jnp.zeros((OW3 * B, C3), f32)
        for ki in range(KS3):
            for kj in range(KS3):
                start = ((oh + ki) * OW2 + kj) * B
                blk = y2_ref[start:start + OW3 * B, :]          # (OW3*B, C2)
                t = ki * KS3 + kj
                acc = acc + jnp.dot(blk, w3_ref[t * C2:(t + 1) * C2, :],
                                    preferred_element_type=f32)
        y3_ref[oh * OW3 * B:(oh + 1) * OW3 * B, :] = (
            jnp.maximum(acc + b3_ref[...], 0.0).astype(bf16))
    # y3_ref rows ordered (oh3, ow3, b)

    # ---- fc1: sum over conv3 spatial positions -------------------------------
    accf = jnp.zeros((B, F1), f32)
    for p in range(OH3 * OW3):
        accf = accf + jnp.dot(y3_ref[p * B:(p + 1) * B, :],
                              wf1_ref[p * C3:(p + 1) * C3, :],
                              preferred_element_type=f32)
    h1 = jnp.maximum(accf + fb1_ref[...], 0.0)

    # ---- fc2 (lane-dense, padded to a multiple of 128 lanes) -----------------
    o_ref[...] = (jnp.dot(h1.astype(bf16), wf2_ref[...],
                          preferred_element_type=f32)
                  + fb2_ref[...]).astype(o_ref.dtype)


# ----------------------------------------------------------------------------
# Wrapper: conv1 im2col (phase-ordered rows), weight layout prep, pallas_call.
# ----------------------------------------------------------------------------
@jax.jit
def dqn_forward(params, state):
    x = state.astype(jnp.float32)
    B, C, H, W = x.shape
    n_actions = params["fw2"].shape[0]

    # Geometry (matches the PyTorch module).
    KS1, S1, C1 = 8, 4, 32
    KS2, S2, C2 = 4, 2, 64
    KS3, S3, C3 = 3, 1, 64
    F1 = 512
    OH1, OW1 = (H - KS1) // S1 + 1, (W - KS1) // S1 + 1
    OH2, OW2 = (OH1 - KS2) // S2 + 1, (OW1 - KS2) // S2 + 1
    OH3, OW3 = (OH2 - KS3) // S3 + 1, (OW2 - KS3) // S3 + 1
    H2, W2 = _round_up(OH1, 2) // 2, _round_up(OW1, 2) // 2   # phased halves

    # conv1 im2col (K ordered (c_in, kh, kw)) + stride-2 phase row ordering.
    K1 = C * KS1 * KS1
    cols = []
    for i in range(KS1):
        for j in range(KS1):
            cols.append(x[:, :, i:i + S1 * OH1:S1, j:j + S1 * OW1:S1])
    p = jnp.stack(cols, axis=2)                                  # (B, C, KS1*KS1, OH1, OW1)
    p = p.reshape(B, K1, OH1, OW1).transpose(0, 2, 3, 1)         # (B, OH1, OW1, K1)
    p = jnp.pad(p, ((0, 0), (0, 2 * H2 - OH1), (0, 2 * W2 - OW1), (0, 0)))
    p = p.reshape(B, H2, 2, W2, 2, K1).transpose(2, 4, 1, 3, 0, 5)  # (ph, pw, h2, w2, B, K1)
    K1p = _round_up(K1, 128)
    M1 = 4 * H2 * W2 * B                                         # multiple of 8
    p1 = jnp.pad(p.reshape(M1, K1), ((0, 0), (0, K1p - K1))).astype(jnp.bfloat16)

    # Weights / biases reshaped to the kernel's layouts (tiny, per-call XLA).
    w1m = jnp.pad(params["w1"].reshape(C1, K1).T,
                  ((0, K1p - K1), (0, 0))).astype(jnp.bfloat16)
    b1 = params["b1"].reshape(1, C1).astype(jnp.float32)
    w2m = params["w2"].transpose(2, 3, 1, 0).reshape(KS2 * KS2 * C1, C2).astype(jnp.bfloat16)
    b2 = params["b2"].reshape(1, C2).astype(jnp.float32)
    w3m = params["w3"].transpose(2, 3, 1, 0).reshape(KS3 * KS3 * C2, C3).astype(jnp.bfloat16)
    b3 = params["b3"].reshape(1, C3).astype(jnp.float32)
    # fc1: PyTorch columns are NCHW-flattened (c, oh3, ow3); kernel wants rows (oh3, ow3, c).
    wf1r = (params["fw1"].reshape(F1, C3, OH3, OW3)
            .transpose(2, 3, 1, 0).reshape(OH3 * OW3 * C3, F1).astype(jnp.bfloat16))
    fb1 = params["fb1"].reshape(1, F1).astype(jnp.float32)
    NA = _round_up(n_actions, 128)
    wf2p = jnp.pad(params["fw2"].T, ((0, 0), (0, NA - n_actions))).astype(jnp.bfloat16)
    fb2p = jnp.pad(params["fb2"], (0, NA - n_actions)).reshape(1, NA).astype(jnp.float32)

    kernel = functools.partial(
        _dqn_fused_kernel, B=B, H2=H2, W2=W2, OH2=OH2, OW2=OW2, OH3=OH3, OW3=OW3,
        C1=C1, C2=C2, C3=C3, KS2=KS2, KS3=KS3, F1=F1)

    inputs = (p1, w1m, b1, w2m, b2, w3m, b3, wf1r, fb1, wf2p, fb2p)
    in_specs = [pl.BlockSpec(a.shape, lambda: (0, 0)) for a in inputs]

    out = pl.pallas_call(
        kernel,
        out_shape=jax.ShapeDtypeStruct((B, NA), jnp.float32),
        in_specs=in_specs,
        out_specs=pl.BlockSpec((B, NA), lambda: (0, 0)),
        scratch_shapes=[
            pltpu.VMEM((M1, C1), jnp.bfloat16),                  # conv1 activations
            pltpu.VMEM((OH2 * OW2 * B, C2), jnp.bfloat16),       # conv2 activations
            pltpu.VMEM((OH3 * OW3 * B, C3), jnp.bfloat16),       # conv3 activations
        ],
        compiler_params=pltpu.CompilerParams(vmem_limit_bytes=32 << 20),
    )(*inputs)
    return out[:, :n_actions]


# ----------------------------------------------------------------------------
# Parameter construction (deterministic, PyTorch-default-style uniform init)
# ----------------------------------------------------------------------------
def _uniform(key, shape, fan_in):
    bound = 1.0 / jnp.sqrt(jnp.float32(fan_in))
    return jax.random.uniform(key, shape, jnp.float32, -bound, bound)


def init_params(key, input_dims, n_actions):
    c_in, H, W = input_dims
    ks = jax.random.split(key, 10)
    params = {}
    params["w1"] = _uniform(ks[0], (32, c_in, 8, 8), c_in * 8 * 8)
    params["b1"] = _uniform(ks[1], (32,), c_in * 8 * 8)
    params["w2"] = _uniform(ks[2], (64, 32, 4, 4), 32 * 4 * 4)
    params["b2"] = _uniform(ks[3], (64,), 32 * 4 * 4)
    params["w3"] = _uniform(ks[4], (64, 64, 3, 3), 64 * 3 * 3)
    params["b3"] = _uniform(ks[5], (64,), 64 * 3 * 3)
    h1 = (H - 8) // 4 + 1
    w1 = (W - 8) // 4 + 1
    h2 = (h1 - 4) // 2 + 1
    w2 = (w1 - 4) // 2 + 1
    h3, w3 = h2 - 2, w2 - 2
    fc_in = 64 * h3 * w3
    params["fw1"] = _uniform(ks[6], (512, fc_in), fc_in)
    params["fb1"] = _uniform(ks[7], (512,), fc_in)
    params["fw2"] = _uniform(ks[8], (n_actions, 512), 512)
    params["fb2"] = _uniform(ks[9], (n_actions,), 512)
    return params


# Pure-JAX reference with the same bf16-input / f32-accumulate precision.
def dqn_forward_ref(params, state):
    dn = ("NCHW", "OIHW", "NCHW")
    bf16 = jnp.bfloat16

    def conv(x, w, b, s):
        y = jax.lax.conv_general_dilated(
            x.astype(bf16), w.astype(bf16), (s, s), "VALID",
            dimension_numbers=dn, preferred_element_type=jnp.float32)
        return jax.nn.relu(y + b[None, :, None, None])

    x = conv(state, params["w1"], params["b1"], 4)
    x = conv(x, params["w2"], params["b2"], 2)
    x = conv(x, params["w3"], params["b3"], 1)
    x = x.reshape(x.shape[0], -1)
    x = jnp.dot(x.astype(bf16), params["fw1"].T.astype(bf16),
                preferred_element_type=jnp.float32) + params["fb1"]
    x = jax.nn.relu(x)
    return jnp.dot(x.astype(bf16), params["fw2"].T.astype(bf16),
                   preferred_element_type=jnp.float32) + params["fb2"]


if __name__ == "__main__":
    # Small shapes consistent with the module: batch=2, input_dims=(4, 48, 48),
    # n_actions=6.  Conv chain: 48 -> 11 -> 4 -> 2, so fc_input_dims = 64*2*2 = 256.
    key = jax.random.PRNGKey(0)
    k_param, k_state = jax.random.split(key)

    input_dims = (4, 48, 48)
    n_actions = 6
    batch = 2

    params = init_params(k_param, input_dims, n_actions)
    state = jax.random.normal(k_state, (batch,) + input_dims, dtype=jnp.float32)

    actions = dqn_forward(params, state)
    jax.block_until_ready(actions)

    ref = dqn_forward_ref(params, state)
    assert actions.shape == (batch, n_actions)
    max_diff = jnp.max(jnp.abs(actions - ref))
    assert jnp.allclose(actions, ref, atol=1e-2, rtol=1e-2), (
        f"mismatch vs JAX reference, max abs diff = {max_diff}")

    print("KERNEL_OK")
</pallas_src>

<mosaic_0001>
module attributes {stable_mosaic.version = 11 : i64} {
  func.func @_dqn_fused_kernel(%arg0: memref<288x256xbf16, #tpu.memory_space<vmem>>, %arg1: memref<256x32xbf16, #tpu.memory_space<vmem>>, %arg2: memref<1x32xf32, #tpu.memory_space<vmem>>, %arg3: memref<512x64xbf16, #tpu.memory_space<vmem>>, %arg4: memref<1x64xf32, #tpu.memory_space<vmem>>, %arg5: memref<576x64xbf16, #tpu.memory_space<vmem>>, %arg6: memref<1x64xf32, #tpu.memory_space<vmem>>, %arg7: memref<256x512xbf16, #tpu.memory_space<vmem>>, %arg8: memref<1x512xf32, #tpu.memory_space<vmem>>, %arg9: memref<512x128xbf16, #tpu.memory_space<vmem>>, %arg10: memref<1x128xf32, #tpu.memory_space<vmem>>, %arg11: memref<2x128xf32, #tpu.memory_space<vmem>>, %arg12: memref<288x32xbf16, #tpu.memory_space<vmem>>, %arg13: memref<32x64xbf16, #tpu.memory_space<vmem>>, %arg14: memref<8x64xbf16, #tpu.memory_space<vmem>>) attributes {dimension_semantics = [], scalar_prefetch = 0 : i64, scratch_operands = 3 : i64, tpu.core_type = #tpu.core_type<tc>} {
    %c0 = arith.constant 0 : index
    %c0_0 = arith.constant 0 : index
    %0 = vector.load %arg0[%c0, %c0_0] : memref<288x256xbf16, #tpu.memory_space<vmem>>, vector<288x256xbf16>
    %c0_1 = arith.constant 0 : index
    %c0_2 = arith.constant 0 : index
    %1 = vector.load %arg1[%c0_1, %c0_2] : memref<256x32xbf16, #tpu.memory_space<vmem>>, vector<256x32xbf16>
    %cst = arith.constant dense<0.000000e+00> : vector<288x32xf32>
    %2 = tpu.matmul %0, %1, %cst {dimension_numbers = #tpu.dot_dimension_numbers<[1], [0], [0], [1], [0, 0, 1, 1], [], []>} : vector<288x256xbf16>, vector<256x32xbf16>, vector<288x32xf32> -> vector<288x32xf32>
    %c0_3 = arith.constant 0 : index
    %c0_4 = arith.constant 0 : index
    %3 = vector.load %arg2[%c0_3, %c0_4] : memref<1x32xf32, #tpu.memory_space<vmem>>, vector<1x32xf32>
    %4 = vector.broadcast %3 : vector<1x32xf32> to vector<288x32xf32>
    %5 = arith.addf %2, %4 : vector<288x32xf32>
    %cst_5 = arith.constant 0.000000e+00 : f32
    %6 = vector.broadcast %cst_5 : f32 to vector<288x32xf32>
    %7 = arith.maximumf %5, %6 : vector<288x32xf32>
    %8 = arith.truncf %7 : vector<288x32xf32> to vector<288x32xbf16>
    %c0_6 = arith.constant 0 : index
    %c0_7 = arith.constant 0 : index
    %9 = vector.load %arg12[%c0_6, %c0_7] : memref<288x32xbf16, #tpu.memory_space<vmem>>, vector<288x32xbf16>
    tpu.vector_store %arg12[%c0_6, %c0_7], %8 {strides = array<i32>} : memref<288x32xbf16, #tpu.memory_space<vmem>>, vector<288x32xbf16>,
    %cst_8 = arith.constant 0.000000e+00 : f32
    %10 = vector.broadcast %cst_8 : f32 to vector<8x64xf32>
    %c0_9 = arith.constant 0 : index
    %c0_10 = arith.constant 0 : index
    %11 = vector.load %arg12[%c0_9, %c0_10] : memref<288x32xbf16, #tpu.memory_space<vmem>>, vector<8x32xbf16>
    %c0_11 = arith.constant 0 : index
    %c0_12 = arith.constant 0 : index
    %12 = vector.load %arg3[%c0_11, %c0_12] : memref<512x64xbf16, #tpu.memory_space<vmem>>, vector<32x64xbf16>
    %cst_13 = arith.constant dense<0.000000e+00> : vector<8x64xf32>
    %13 = tpu.matmul %11, %12, %cst_13 {dimension_numbers = #tpu.dot_dimension_numbers<[1], [0], [0], [1], [0, 0, 1, 1], [], []>} : vector<8x32xbf16>, vector<32x64xbf16>, vector<8x64xf32> -> vector<8x64xf32>
    %14 = arith.addf %10, %13 : vector<8x64xf32>
    %c72 = arith.constant 72 : index
    %c0_14 = arith.constant 0 : index
    %15 = vector.load %arg12[%c72, %c0_14] : memref<288x32xbf16, #tpu.memory_space<vmem>>, vector<8x32xbf16>
    %c32 = arith.constant 32 : index
    %c0_15 = arith.constant 0 : index
    %16 = vector.load %arg3[%c32, %c0_15] : memref<512x64xbf16, #tpu.memory_space<vmem>>, vector<32x64xbf16>
    %cst_16 = arith.constant dense<0.000000e+00> : vector<8x64xf32>
    %17 = tpu.matmul %15, %16, %cst_16 {dimension_numbers = #tpu.dot_dimension_numbers<[1], [0], [0], [1], [0, 0, 1, 1], [], []>} : vector<8x32xbf16>, vector<32x64xbf16>, vector<8x64xf32> -> vector<8x64xf32>
    %18 = arith.addf %14, %17 : vector<8x64xf32>
    %c2 = arith.constant 2 : index
    %c0_17 = arith.constant 0 : index
    %19 = vector.load %arg12[%c2, %c0_17] : memref<288x32xbf16, #tpu.memory_space<vmem>>, vector<8x32xbf16>
    %c64 = arith.constant 64 : index
    %c0_18 = arith.constant 0 : index
    %20 = vector.load %arg3[%c64, %c0_18] : memref<512x64xbf16, #tpu.memory_space<vmem>>, vector<32x64xbf16>
    %cst_19 = arith.constant dense<0.000000e+00> : vector<8x64xf32>
    %21 = tpu.matmul %19, %20, %cst_19 {dimension_numbers = #tpu.dot_dimension_numbers<[1], [0], [0], [1], [0, 0, 1, 1], [], []>} : vector<8x32xbf16>, vector<32x64xbf16>, vector<8x64xf32> -> vector<8x64xf32>
    %22 = arith.addf %18, %21 : vector<8x64xf32>
    %c74 = arith.constant 74 : index
    %c0_20 = arith.constant 0 : index
    %23 = vector.load %arg12[%c74, %c0_20] : memref<288x32xbf16, #tpu.memory_space<vmem>>, vector<8x32xbf16>
    %c96 = arith.constant 96 : index
    %c0_21 = arith.constant 0 : index
    %24 = vector.load %arg3[%c96, %c0_21] : memref<512x64xbf16, #tpu.memory_space<vmem>>, vector<32x64xbf16>
    %cst_22 = arith.constant dense<0.000000e+00> : vector<8x64xf32>
    %25 = tpu.matmul %23, %24, %cst_22 {dimension_numbers = #tpu.dot_dimension_numbers<[1], [0], [0], [1], [0, 0, 1, 1], [], []>} : vector<8x32xbf16>, vector<32x64xbf16>, vector<8x64xf32> -> vector<8x64xf32>
    %26 = arith.addf %22, %25 : vector<8x64xf32>
    %c144 = arith.constant 144 : index
    %c0_23 = arith.constant 0 : index
    %27 = vector.load %arg12[%c144, %c0_23] : memref<288x32xbf16, #tpu.memory_space<vmem>>, vector<8x32xbf16>
    %c128 = arith.constant 128 : index
    %c0_24 = arith.constant 0 : index
    %28 = vector.load %arg3[%c128, %c0_24] : memref<512x64xbf16, #tpu.memory_space<vmem>>, vector<32x64xbf16>
    %cst_25 = arith.constant dense<0.000000e+00> : vector<8x64xf32>
    %29 = tpu.matmul %27, %28, %cst_25 {dimension_numbers = #tpu.dot_dimension_numbers<[1], [0], [0], [1], [0, 0, 1, 1], [], []>} : vector<8x32xbf16>, vector<32x64xbf16>, vector<8x64xf32> -> vector<8x64xf32>
    %30 = arith.addf %26, %29 : vector<8x64xf32>
    %c216 = arith.constant 216 : index
    %c0_26 = arith.constant 0 : index
    %31 = vector.load %arg12[%c216, %c0_26] : memref<288x32xbf16, #tpu.memory_space<vmem>>, vector<8x32xbf16>
    %c160 = arith.constant 160 : index
    %c0_27 = arith.constant 0 : index
    %32 = vector.load %arg3[%c160, %c0_27] : memref<512x64xbf16, #tpu.memory_space<vmem>>, vector<32x64xbf16>
    %cst_28 = arith.constant dense<0.000000e+00> : vector<8x64xf32>
    %33 = tpu.matmul %31, %32, %cst_28 {dimension_numbers = #tpu.dot_dimension_numbers<[1], [0], [0], [1], [0, 0, 1, 1], [], []>} : vector<8x32xbf16>, vector<32x64xbf16>, vector<8x64xf32> -> vector<8x64xf32>
    %34 = arith.addf %30, %33 : vector<8x64xf32>
    %c146 = arith.constant 146 : index
    %c0_29 = arith.constant 0 : index
    %35 = vector.load %arg12[%c146, %c0_29] : memref<288x32xbf16, #tpu.memory_space<vmem>>, vector<8x32xbf16>
    %c192 = arith.constant 192 : index
    %c0_30 = arith.constant 0 : index
    %36 = vector.load %arg3[%c192, %c0_30] : memref<512x64xbf16, #tpu.memory_space<vmem>>, vector<32x64xbf16>
    %cst_31 = arith.constant dense<0.000000e+00> : vector<8x64xf32>
    %37 = tpu.matmul %35, %36, %cst_31 {dimension_numbers = #tpu.dot_dimension_numbers<[1], [0], [0], [1], [0, 0, 1, 1], [], []>} : vector<8x32xbf16>, vector<32x64xbf16>, vector<8x64xf32> -> vector<8x64xf32>
    %38 = arith.addf %34, %37 : vector<8x64xf32>
    %c218 = arith.constant 218 : index
    %c0_32 = arith.constant 0 : index
    %39 = vector.load %arg12[%c218, %c0_32] : memref<288x32xbf16, #tpu.memory_space<vmem>>, vector<8x32xbf16>
    %c224 = arith.constant 224 : index
    %c0_33 = arith.constant 0 : index
    %40 = vector.load %arg3[%c224, %c0_33] : memref<512x64xbf16, #tpu.memory_space<vmem>>, vector<32x64xbf16>
    %cst_34 = arith.constant dense<0.000000e+00> : vector<8x64xf32>
    %41 = tpu.matmul %39, %40, %cst_34 {dimension_numbers = #tpu.dot_dimension_numbers<[1], [0], [0], [1], [0, 0, 1, 1], [], []>} : vector<8x32xbf16>, vector<32x64xbf16>, vector<8x64xf32> -> vector<8x64xf32>
    %42 = arith.addf %38, %41 : vector<8x64xf32>
    %c12 = arith.constant 12 : index
    %c0_35 = arith.constant 0 : index
    %43 = vector.load %arg12[%c12, %c0_35] : memref<288x32xbf16, #tpu.memory_space<vmem>>, vector<8x32xbf16>
    %c256 = arith.constant 256 : index
    %c0_36 = arith.constant 0 : index
    %44 = vector.load %arg3[%c256, %c0_36] : memref<512x64xbf16, #tpu.memory_space<vmem>>, vector<32x64xbf16>
    %cst_37 = arith.constant dense<0.000000e+00> : vector<8x64xf32>
    %45 = tpu.matmul %43, %44, %cst_37 {dimension_numbers = #tpu.dot_dimension_numbers<[1], [0], [0], [1], [0, 0, 1, 1], [], []>} : vector<8x32xbf16>, vector<32x64xbf16>, vector<8x64xf32> -> vector<8x64xf32>
    %46 = arith.addf %42, %45 : vector<8x64xf32>
    %c84 = arith.constant 84 : index
    %c0_38 = arith.constant 0 : index
    %47 = vector.load %arg12[%c84, %c0_38] : memref<288x32xbf16, #tpu.memory_space<vmem>>, vector<8x32xbf16>
    %c288 = arith.constant 288 : index
    %c0_39 = arith.constant 0 : index
    %48 = vector.load %arg3[%c288, %c0_39] : memref<512x64xbf16, #tpu.memory_space<vmem>>, vector<32x64xbf16>
    %cst_40 = arith.constant dense<0.000000e+00> : vector<8x64xf32>
    %49 = tpu.matmul %47, %48, %cst_40 {dimension_numbers = #tpu.dot_dimension_numbers<[1], [0], [0], [1], [0, 0, 1, 1], [], []>} : vector<8x32xbf16>, vector<32x64xbf16>, vector<8x64xf32> -> vector<8x64xf32>
    %50 = arith.addf %46, %49 : vector<8x64xf32>
    %c14 = arith.constant 14 : index
    %c0_41 = arith.constant 0 : index
    %51 = vector.load %arg12[%c14, %c0_41] : memref<288x32xbf16, #tpu.memory_space<vmem>>, vector<8x32xbf16>
    %c320 = arith.constant 320 : index
    %c0_42 = arith.constant 0 : index
    %52 = vector.load %arg3[%c320, %c0_42] : memref<512x64xbf16, #tpu.memory_space<vmem>>, vector<32x64xbf16>
    %cst_43 = arith.constant dense<0.000000e+00> : vector<8x64xf32>
    %53 = tpu.matmul %51, %52, %cst_43 {dimension_numbers = #tpu.dot_dimension_numbers<[1], [0], [0], [1], [0, 0, 1, 1], [], []>} : vector<8x32xbf16>, vector<32x64xbf16>, vector<8x64xf32> -> vector<8x64xf32>
    %54 = arith.addf %50, %53 : vector<8x64xf32>
    %c86 = arith.constant 86 : index
    %c0_44 = arith.constant 0 : index
    %55 = vector.load %arg12[%c86, %c0_44] : memref<288x32xbf16, #tpu.memory_space<vmem>>, vector<8x32xbf16>
    %c352 = arith.constant 352 : index
    %c0_45 = arith.constant 0 : index
    %56 = vector.load %arg3[%c352, %c0_45] : memref<512x64xbf16, #tpu.memory_space<vmem>>, vector<32x64xbf16>
    %cst_46 = arith.constant dense<0.000000e+00> : vector<8x64xf32>
    %57 = tpu.matmul %55, %56, %cst_46 {dimension_numbers = #tpu.dot_dimension_numbers<[1], [0], [0], [1], [0, 0, 1, 1], [], []>} : vector<8x32xbf16>, vector<32x64xbf16>, vector<8x64xf32> -> vector<8x64xf32>
    %58 = arith.addf %54, %57 : vector<8x64xf32>
    %c156 = arith.constant 156 : index
    %c0_47 = arith.constant 0 : index
    %59 = vector.load %arg12[%c156, %c0_47] : memref<288x32xbf16, #tpu.memory_space<vmem>>, vector<8x32xbf16>
    %c384 = arith.constant 384 : index
    %c0_48 = arith.constant 0 : index
    %60 = vector.load %arg3[%c384, %c0_48] : memref<512x64xbf16, #tpu.memory_space<vmem>>, vector<32x64xbf16>
    %cst_49 = arith.constant dense<0.000000e+00> : vector<8x64xf32>
    %61 = tpu.matmul %59, %60, %cst_49 {dimension_numbers = #tpu.dot_dimension_numbers<[1], [0], [0], [1], [0, 0, 1, 1], [], []>} : vector<8x32xbf16>, vector<32x64xbf16>, vector<8x64xf32> -> vector<8x64xf32>
    %62 = arith.addf %58, %61 : vector<8x64xf32>
    %c228 = arith.constant 228 : index
    %c0_50 = arith.constant 0 : index
    %63 = vector.load %arg12[%c228, %c0_50] : memref<288x32xbf16, #tpu.memory_space<vmem>>, vector<8x32xbf16>
    %c416 = arith.constant 416 : index
    %c0_51 = arith.constant 0 : index
    %64 = vector.load %arg3[%c416, %c0_51] : memref<512x64xbf16, #tpu.memory_space<vmem>>, vector<32x64xbf16>
    %cst_52 = arith.constant dense<0.000000e+00> : vector<8x64xf32>
    %65 = tpu.matmul %63, %64, %cst_52 {dimension_numbers = #tpu.dot_dimension_numbers<[1], [0], [0], [1], [0, 0, 1, 1], [], []>} : vector<8x32xbf16>, vector<32x64xbf16>, vector<8x64xf32> -> vector<8x64xf32>
    %66 = arith.addf %62, %65 : vector<8x64xf32>
    %c158 = arith.constant 158 : index
    %c0_53 = arith.constant 0 : index
    %67 = vector.load %arg12[%c158, %c0_53] : memref<288x32xbf16, #tpu.memory_space<vmem>>, vector<8x32xbf16>
    %c448 = arith.constant 448 : index
    %c0_54 = arith.constant 0 : index
    %68 = vector.load %arg3[%c448, %c0_54] : memref<512x64xbf16, #tpu.memory_space<vmem>>, vector<32x64xbf16>
    %cst_55 = arith.constant dense<0.000000e+00> : vector<8x64xf32>
    %69 = tpu.matmul %67, %68, %cst_55 {dimension_numbers = #tpu.dot_dimension_numbers<[1], [0], [0], [1], [0, 0, 1, 1], [], []>} : vector<8x32xbf16>, vector<32x64xbf16>, vector<8x64xf32> -> vector<8x64xf32>
    %70 = arith.addf %66, %69 : vector<8x64xf32>
    %c230 = arith.constant 230 : index
    %c0_56 = arith.constant 0 : index
    %71 = vector.load %arg12[%c230, %c0_56] : memref<288x32xbf16, #tpu.memory_space<vmem>>, vector<8x32xbf16>
    %c480 = arith.constant 480 : index
    %c0_57 = arith.constant 0 : index
    %72 = vector.load %arg3[%c480, %c0_57] : memref<512x64xbf16, #tpu.memory_space<vmem>>, vector<32x64xbf16>
    %cst_58 = arith.constant dense<0.000000e+00> : vector<8x64xf32>
    %73 = tpu.matmul %71, %72, %cst_58 {dimension_numbers = #tpu.dot_dimension_numbers<[1], [0], [0], [1], [0, 0, 1, 1], [], []>} : vector<8x32xbf16>, vector<32x64xbf16>, vector<8x64xf32> -> vector<8x64xf32>
    %74 = arith.addf %70, %73 : vector<8x64xf32>
    %c0_59 = arith.constant 0 : index
    %c0_60 = arith.constant 0 : index
    %75 = vector.load %arg4[%c0_59, %c0_60] : memref<1x64xf32, #tpu.memory_space<vmem>>, vector<1x64xf32>
    %76 = vector.broadcast %75 : vector<1x64xf32> to vector<8x64xf32>
    %77 = arith.addf %74, %76 : vector<8x64xf32>
    %cst_61 = arith.constant 0.000000e+00 : f32
    %78 = vector.broadcast %cst_61 : f32 to vector<8x64xf32>
    %79 = arith.maximumf %77, %78 : vector<8x64xf32>
    %80 = arith.truncf %79 : vector<8x64xf32> to vector<8x64xbf16>
    %c0_62 = arith.constant 0 : index
    %c0_63 = arith.constant 0 : index
    %81 = vector.load %arg13[%c0_62, %c0_63] : memref<32x64xbf16, #tpu.memory_space<vmem>>, vector<8x64xbf16>
    tpu.vector_store %arg13[%c0_62, %c0_63], %80 {strides = array<i32>} : memref<32x64xbf16, #tpu.memory_space<vmem>>, vector<8x64xbf16>,
    %cst_64 = arith.constant 0.000000e+00 : f32
    %82 = vector.broadcast %cst_64 : f32 to vector<8x64xf32>
    %c12_65 = arith.constant 12 : index
    %c0_66 = arith.constant 0 : index
    %83 = vector.load %arg12[%c12_65, %c0_66] : memref<288x32xbf16, #tpu.memory_space<vmem>>, vector<8x32xbf16>
    %c0_67 = arith.constant 0 : index
    %c0_68 = arith.constant 0 : index
    %84 = vector.load %arg3[%c0_67, %c0_68] : memref<512x64xbf16, #tpu.memory_space<vmem>>, vector<32x64xbf16>
    %cst_69 = arith.constant dense<0.000000e+00> : vector<8x64xf32>
    %85 = tpu.matmul %83, %84, %cst_69 {dimension_numbers = #tpu.dot_dimension_numbers<[1], [0], [0], [1], [0, 0, 1, 1], [], []>} : vector<8x32xbf16>, vector<32x64xbf16>, vector<8x64xf32> -> vector<8x64xf32>
    %86 = arith.addf %82, %85 : vector<8x64xf32>
    %c84_70 = arith.constant 84 : index
    %c0_71 = arith.constant 0 : index
    %87 = vector.load %arg12[%c84_70, %c0_71] : memref<288x32xbf16, #tpu.memory_space<vmem>>, vector<8x32xbf16>
    %c32_72 = arith.constant 32 : index
    %c0_73 = arith.constant 0 : index
    %88 = vector.load %arg3[%c32_72, %c0_73] : memref<512x64xbf16, #tpu.memory_space<vmem>>, vector<32x64xbf16>
    %cst_74 = arith.constant dense<0.000000e+00> : vector<8x64xf32>
    %89 = tpu.matmul %87, %88, %cst_74 {dimension_numbers = #tpu.dot_dimension_numbers<[1], [0], [0], [1], [0, 0, 1, 1], [], []>} : vector<8x32xbf16>, vector<32x64xbf16>, vector<8x64xf32> -> vector<8x64xf32>
    %90 = arith.addf %86, %89 : vector<8x64xf32>
    %c14_75 = arith.constant 14 : index
    %c0_76 = arith.constant 0 : index
    %91 = vector.load %arg12[%c14_75, %c0_76] : memref<288x32xbf16, #tpu.memory_space<vmem>>, vector<8x32xbf16>
    %c64_77 = arith.constant 64 : index
    %c0_78 = arith.constant 0 : index
    %92 = vector.load %arg3[%c64_77, %c0_78] : memref<512x64xbf16, #tpu.memory_space<vmem>>, vector<32x64xbf16>
    %cst_79 = arith.constant dense<0.000000e+00> : vector<8x64xf32>
    %93 = tpu.matmul %91, %92, %cst_79 {dimension_numbers = #tpu.dot_dimension_numbers<[1], [0], [0], [1], [0, 0, 1, 1], [], []>} : vector<8x32xbf16>, vector<32x64xbf16>, vector<8x64xf32> -> vector<8x64xf32>
    %94 = arith.addf %90, %93 : vector<8x64xf32>
    %c86_80 = arith.constant 86 : index
    %c0_81 = arith.constant 0 : index
    %95 = vector.load %arg12[%c86_80, %c0_81] : memref<288x32xbf16, #tpu.memory_space<vmem>>, vector<8x32xbf16>
    %c96_82 = arith.constant 96 : index
    %c0_83 = arith.constant 0 : index
    %96 = vector.load %arg3[%c96_82, %c0_83] : memref<512x64xbf16, #tpu.memory_space<vmem>>, vector<32x64xbf16>
    %cst_84 = arith.constant dense<0.000000e+00> : vector<8x64xf32>
    %97 = tpu.matmul %95, %96, %cst_84 {dimension_numbers = #tpu.dot_dimension_numbers<[1], [0], [0], [1], [0, 0, 1, 1], [], []>} : vector<8x32xbf16>, vector<32x64xbf16>, vector<8x64xf32> -> vector<8x64xf32>
    %98 = arith.addf %94, %97 : vector<8x64xf32>
    %c156_85 = arith.constant 156 : index
    %c0_86 = arith.constant 0 : index
    %99 = vector.load %arg12[%c156_85, %c0_86] : memref<288x32xbf16, #tpu.memory_space<vmem>>, vector<8x32xbf16>
    %c128_87 = arith.constant 128 : index
    %c0_88 = arith.constant 0 : index
    %100 = vector.load %arg3[%c128_87, %c0_88] : memref<512x64xbf16, #tpu.memory_space<vmem>>, vector<32x64xbf16>
    %cst_89 = arith.constant dense<0.000000e+00> : vector<8x64xf32>
    %101 = tpu.matmul %99, %100, %cst_89 {dimension_numbers = #tpu.dot_dimension_numbers<[1], [0], [0], [1], [0, 0, 1, 1], [], []>} : vector<8x32xbf16>, vector<32x64xbf16>, vector<8x64xf32> -> vector<8x64xf32>
    %102 = arith.addf %98, %101 : vector<8x64xf32>
    %c228_90 = arith.constant 228 : index
    %c0_91 = arith.constant 0 : index
    %103 = vector.load %arg12[%c228_90, %c0_91] : memref<288x32xbf16, #tpu.memory_space<vmem>>, vector<8x32xbf16>
    %c160_92 = arith.constant 160 : index
    %c0_93 = arith.constant 0 : index
    %104 = vector.load %arg3[%c160_92, %c0_93] : memref<512x64xbf16, #tpu.memory_space<vmem>>, vector<32x64xbf16>
    %cst_94 = arith.constant dense<0.000000e+00> : vector<8x64xf32>
    %105 = tpu.matmul %103, %104, %cst_94 {dimension_numbers = #tpu.dot_dimension_numbers<[1], [0], [0], [1], [0, 0, 1, 1], [], []>} : vector<8x32xbf16>, vector<32x64xbf16>, vector<8x64xf32> -> vector<8x64xf32>
    %106 = arith.addf %102, %105 : vector<8x64xf32>
    %c158_95 = arith.constant 158 : index
    %c0_96 = arith.constant 0 : index
    %107 = vector.load %arg12[%c158_95, %c0_96] : memref<288x32xbf16, #tpu.memory_space<vmem>>, vector<8x32xbf16>
    %c192_97 = arith.constant 192 : index
    %c0_98 = arith.constant 0 : index
    %108 = vector.load %arg3[%c192_97, %c0_98] : memref<512x64xbf16, #tpu.memory_space<vmem>>, vector<32x64xbf16>
    %cst_99 = arith.constant dense<0.000000e+00> : vector<8x64xf32>
    %109 = tpu.matmul %107, %108, %cst_99 {dimension_numbers = #tpu.dot_dimension_numbers<[1], [0], [0], [1], [0, 0, 1, 1], [], []>} : vector<8x32xbf16>, vector<32x64xbf16>, vector<8x64xf32> -> vector<8x64xf32>
    %110 = arith.addf %106, %109 : vector<8x64xf32>
    %c230_100 = arith.constant 230 : index
    %c0_101 = arith.constant 0 : index
    %111 = vector.load %arg12[%c230_100, %c0_101] : memref<288x32xbf16, #tpu.memory_space<vmem>>, vector<8x32xbf16>
    %c224_102 = arith.constant 224 : index
    %c0_103 = arith.constant 0 : index
    %112 = vector.load %arg3[%c224_102, %c0_103] : memref<512x64xbf16, #tpu.memory_space<vmem>>, vector<32x64xbf16>
    %cst_104 = arith.constant dense<0.000000e+00> : vector<8x64xf32>
    %113 = tpu.matmul %111, %112, %cst_104 {dimension_numbers = #tpu.dot_dimension_numbers<[1], [0], [0], [1], [0, 0, 1, 1], [], []>} : vector<8x32xbf16>, vector<32x64xbf16>, vector<8x64xf32> -> vector<8x64xf32>
    %114 = arith.addf %110, %113 : vector<8x64xf32>
    %c24 = arith.constant 24 : index
    %c0_105 = arith.constant 0 : index
    %115 = vector.load %arg12[%c24, %c0_105] : memref<288x32xbf16, #tpu.memory_space<vmem>>, vector<8x32xbf16>
    %c256_106 = arith.constant 256 : index
    %c0_107 = arith.constant 0 : index
    %116 = vector.load %arg3[%c256_106, %c0_107] : memref<512x64xbf16, #tpu.memory_space<vmem>>, vector<32x64xbf16>
    %cst_108 = arith.constant dense<0.000000e+00> : vector<8x64xf32>
    %117 = tpu.matmul %115, %116, %cst_108 {dimension_numbers = #tpu.dot_dimension_numbers<[1], [0], [0], [1], [0, 0, 1, 1], [], []>} : vector<8x32xbf16>, vector<32x64xbf16>, vector<8x64xf32> -> vector<8x64xf32>
    %118 = arith.addf %114, %117 : vector<8x64xf32>
    %c96_109 = arith.constant 96 : index
    %c0_110 = arith.constant 0 : index
    %119 = vector.load %arg12[%c96_109, %c0_110] : memref<288x32xbf16, #tpu.memory_space<vmem>>, vector<8x32xbf16>
    %c288_111 = arith.constant 288 : index
    %c0_112 = arith.constant 0 : index
    %120 = vector.load %arg3[%c288_111, %c0_112] : memref<512x64xbf16, #tpu.memory_space<vmem>>, vector<32x64xbf16>
    %cst_113 = arith.constant dense<0.000000e+00> : vector<8x64xf32>
    %121 = tpu.matmul %119, %120, %cst_113 {dimension_numbers = #tpu.dot_dimension_numbers<[1], [0], [0], [1], [0, 0, 1, 1], [], []>} : vector<8x32xbf16>, vector<32x64xbf16>, vector<8x64xf32> -> vector<8x64xf32>
    %122 = arith.addf %118, %121 : vector<8x64xf32>
    %c26 = arith.constant 26 : index
    %c0_114 = arith.constant 0 : index
    %123 = vector.load %arg12[%c26, %c0_114] : memref<288x32xbf16, #tpu.memory_space<vmem>>, vector<8x32xbf16>
    %c320_115 = arith.constant 320 : index
    %c0_116 = arith.constant 0 : index
    %124 = vector.load %arg3[%c320_115, %c0_116] : memref<512x64xbf16, #tpu.memory_space<vmem>>, vector<32x64xbf16>
    %cst_117 = arith.constant dense<0.000000e+00> : vector<8x64xf32>
    %125 = tpu.matmul %123, %124, %cst_117 {dimension_numbers = #tpu.dot_dimension_numbers<[1], [0], [0], [1], [0, 0, 1, 1], [], []>} : vector<8x32xbf16>, vector<32x64xbf16>, vector<8x64xf32> -> vector<8x64xf32>
    %126 = arith.addf %122, %125 : vector<8x64xf32>
    %c98 = arith.constant 98 : index
    %c0_118 = arith.constant 0 : index
    %127 = vector.load %arg12[%c98, %c0_118] : memref<288x32xbf16, #tpu.memory_space<vmem>>, vector<8x32xbf16>
    %c352_119 = arith.constant 352 : index
    %c0_120 = arith.constant 0 : index
    %128 = vector.load %arg3[%c352_119, %c0_120] : memref<512x64xbf16, #tpu.memory_space<vmem>>, vector<32x64xbf16>
    %cst_121 = arith.constant dense<0.000000e+00> : vector<8x64xf32>
    %129 = tpu.matmul %127, %128, %cst_121 {dimension_numbers = #tpu.dot_dimension_numbers<[1], [0], [0], [1], [0, 0, 1, 1], [], []>} : vector<8x32xbf16>, vector<32x64xbf16>, vector<8x64xf32> -> vector<8x64xf32>
    %130 = arith.addf %126, %129 : vector<8x64xf32>
    %c168 = arith.constant 168 : index
    %c0_122 = arith.constant 0 : index
    %131 = vector.load %arg12[%c168, %c0_122] : memref<288x32xbf16, #tpu.memory_space<vmem>>, vector<8x32xbf16>
    %c384_123 = arith.constant 384 : index
    %c0_124 = arith.constant 0 : index
    %132 = vector.load %arg3[%c384_123, %c0_124] : memref<512x64xbf16, #tpu.memory_space<vmem>>, vector<32x64xbf16>
    %cst_125 = arith.constant dense<0.000000e+00> : vector<8x64xf32>
    %133 = tpu.matmul %131, %132, %cst_125 {dimension_numbers = #tpu.dot_dimension_numbers<[1], [0], [0], [1], [0, 0, 1, 1], [], []>} : vector<8x32xbf16>, vector<32x64xbf16>, vector<8x64xf32> -> vector<8x64xf32>
    %134 = arith.addf %130, %133 : vector<8x64xf32>
    %c240 = arith.constant 240 : index
    %c0_126 = arith.constant 0 : index
    %135 = vector.load %arg12[%c240, %c0_126] : memref<288x32xbf16, #tpu.memory_space<vmem>>, vector<8x32xbf16>
    %c416_127 = arith.constant 416 : index
    %c0_128 = arith.constant 0 : index
    %136 = vector.load %arg3[%c416_127, %c0_128] : memref<512x64xbf16, #tpu.memory_space<vmem>>, vector<32x64xbf16>
    %cst_129 = arith.constant dense<0.000000e+00> : vector<8x64xf32>
    %137 = tpu.matmul %135, %136, %cst_129 {dimension_numbers = #tpu.dot_dimension_numbers<[1], [0], [0], [1], [0, 0, 1, 1], [], []>} : vector<8x32xbf16>, vector<32x64xbf16>, vector<8x64xf32> -> vector<8x64xf32>
    %138 = arith.addf %134, %137 : vector<8x64xf32>
    %c170 = arith.constant 170 : index
    %c0_130 = arith.constant 0 : index
    %139 = vector.load %arg12[%c170, %c0_130] : memref<288x32xbf16, #tpu.memory_space<vmem>>, vector<8x32xbf16>
    %c448_131 = arith.constant 448 : index
    %c0_132 = arith.constant 0 : index
    %140 = vector.load %arg3[%c448_131, %c0_132] : memref<512x64xbf16, #tpu.memory_space<vmem>>, vector<32x64xbf16>
    %cst_133 = arith.constant dense<0.000000e+00> : vector<8x64xf32>
    %141 = tpu.matmul %139, %140, %cst_133 {dimension_numbers = #tpu.dot_dimension_numbers<[1], [0], [0], [1], [0, 0, 1, 1], [], []>} : vector<8x32xbf16>, vector<32x64xbf16>, vector<8x64xf32> -> vector<8x64xf32>
    %142 = arith.addf %138, %141 : vector<8x64xf32>
    %c242 = arith.constant 242 : index
    %c0_134 = arith.constant 0 : index
    %143 = vector.load %arg12[%c242, %c0_134] : memref<288x32xbf16, #tpu.memory_space<vmem>>, vector<8x32xbf16>
    %c480_135 = arith.constant 480 : index
    %c0_136 = arith.constant 0 : index
    %144 = vector.load %arg3[%c480_135, %c0_136] : memref<512x64xbf16, #tpu.memory_space<vmem>>, vector<32x64xbf16>
    %cst_137 = arith.constant dense<0.000000e+00> : vector<8x64xf32>
    %145 = tpu.matmul %143, %144, %cst_137 {dimension_numbers = #tpu.dot_dimension_numbers<[1], [0], [0], [1], [0, 0, 1, 1], [], []>} : vector<8x32xbf16>, vector<32x64xbf16>, vector<8x64xf32> -> vector<8x64xf32>
    %146 = arith.addf %142, %145 : vector<8x64xf32>
    %c0_138 = arith.constant 0 : index
    %c0_139 = arith.constant 0 : index
    %147 = vector.load %arg4[%c0_138, %c0_139] : memref<1x64xf32, #tpu.memory_space<vmem>>, vector<1x64xf32>
    %148 = vector.broadcast %147 : vector<1x64xf32> to vector<8x64xf32>
    %149 = arith.addf %146, %148 : vector<8x64xf32>
    %cst_140 = arith.constant 0.000000e+00 : f32
    %150 = vector.broadcast %cst_140 : f32 to vector<8x64xf32>
    %151 = arith.maximumf %149, %150 : vector<8x64xf32>
    %152 = arith.truncf %151 : vector<8x64xf32> to vector<8x64xbf16>
    %c8 = arith.constant 8 : index
    %c0_141 = arith.constant 0 : index
    %153 = vector.load %arg13[%c8, %c0_141] : memref<32x64xbf16, #tpu.memory_space<vmem>>, vector<8x64xbf16>
    tpu.vector_store %arg13[%c8, %c0_141], %152 {strides = array<i32>} : memref<32x64xbf16, #tpu.memory_space<vmem>>, vector<8x64xbf16>,
    %cst_142 = arith.constant 0.000000e+00 : f32
    %154 = vector.broadcast %cst_142 : f32 to vector<8x64xf32>
    %c24_143 = arith.constant 24 : index
    %c0_144 = arith.constant 0 : index
    %155 = vector.load %arg12[%c24_143, %c0_144] : memref<288x32xbf16, #tpu.memory_space<vmem>>, vector<8x32xbf16>
    %c0_145 = arith.constant 0 : index
    %c0_146 = arith.constant 0 : index
    %156 = vector.load %arg3[%c0_145, %c0_146] : memref<512x64xbf16, #tpu.memory_space<vmem>>, vector<32x64xbf16>
    %cst_147 = arith.constant dense<0.000000e+00> : vector<8x64xf32>
    %157 = tpu.matmul %155, %156, %cst_147 {dimension_numbers = #tpu.dot_dimension_numbers<[1], [0], [0], [1], [0, 0, 1, 1], [], []>} : vector<8x32xbf16>, vector<32x64xbf16>, vector<8x64xf32> -> vector<8x64xf32>
    %158 = arith.addf %154, %157 : vector<8x64xf32>
    %c96_148 = arith.constant 96 : index
    %c0_149 = arith.constant 0 : index
    %159 = vector.load %arg12[%c96_148, %c0_149] : memref<288x32xbf16, #tpu.memory_space<vmem>>, vector<8x32xbf16>
    %c32_150 = arith.constant 32 : index
    %c0_151 = arith.constant 0 : index
    %160 = vector.load %arg3[%c32_150, %c0_151] : memref<512x64xbf16, #tpu.memory_space<vmem>>, vector<32x64xbf16>
    %cst_152 = arith.constant dense<0.000000e+00> : vector<8x64xf32>
    %161 = tpu.matmul %159, %160, %cst_152 {dimension_numbers = #tpu.dot_dimension_numbers<[1], [0], [0], [1], [0, 0, 1, 1], [], []>} : vector<8x32xbf16>, vector<32x64xbf16>, vector<8x64xf32> -> vector<8x64xf32>
    %162 = arith.addf %158, %161 : vector<8x64xf32>
    %c26_153 = arith.constant 26 : index
    %c0_154 = arith.constant 0 : index
    %163 = vector.load %arg12[%c26_153, %c0_154] : memref<288x32xbf16, #tpu.memory_space<vmem>>, vector<8x32xbf16>
    %c64_155 = arith.constant 64 : index
    %c0_156 = arith.constant 0 : index
    %164 = vector.load %arg3[%c64_155, %c0_156] : memref<512x64xbf16, #tpu.memory_space<vmem>>, vector<32x64xbf16>
    %cst_157 = arith.constant dense<0.000000e+00> : vector<8x64xf32>
    %165 = tpu.matmul %163, %164, %cst_157 {dimension_numbers = #tpu.dot_dimension_numbers<[1], [0], [0], [1], [0, 0, 1, 1], [], []>} : vector<8x32xbf16>, vector<32x64xbf16>, vector<8x64xf32> -> vector<8x64xf32>
    %166 = arith.addf %162, %165 : vector<8x64xf32>
    %c98_158 = arith.constant 98 : index
    %c0_159 = arith.constant 0 : index
    %167 = vector.load %arg12[%c98_158, %c0_159] : memref<288x32xbf16, #tpu.memory_space<vmem>>, vector<8x32xbf16>
    %c96_160 = arith.constant 96 : index
    %c0_161 = arith.constant 0 : index
    %168 = vector.load %arg3[%c96_160, %c0_161] : memref<512x64xbf16, #tpu.memory_space<vmem>>, vector<32x64xbf16>
    %cst_162 = arith.constant dense<0.000000e+00> : vector<8x64xf32>
    %169 = tpu.matmul %167, %168, %cst_162 {dimension_numbers = #tpu.dot_dimension_numbers<[1], [0], [0], [1], [0, 0, 1, 1], [], []>} : vector<8x32xbf16>, vector<32x64xbf16>, vector<8x64xf32> -> vector<8x64xf32>
    %170 = arith.addf %166, %169 : vector<8x64xf32>
    %c168_163 = arith.constant 168 : index
    %c0_164 = arith.constant 0 : index
    %171 = vector.load %arg12[%c168_163, %c0_164] : memref<288x32xbf16, #tpu.memory_space<vmem>>, vector<8x32xbf16>
    %c128_165 = arith.constant 128 : index
    %c0_166 = arith.constant 0 : index
    %172 = vector.load %arg3[%c128_165, %c0_166] : memref<512x64xbf16, #tpu.memory_space<vmem>>, vector<32x64xbf16>
    %cst_167 = arith.constant dense<0.000000e+00> : vector<8x64xf32>
    %173 = tpu.matmul %171, %172, %cst_167 {dimension_numbers = #tpu.dot_dimension_numbers<[1], [0], [0], [1], [0, 0, 1, 1], [], []>} : vector<8x32xbf16>, vector<32x64xbf16>, vector<8x64xf32> -> vector<8x64xf32>
    %174 = arith.addf %170, %173 : vector<8x64xf32>
    %c240_168 = arith.constant 240 : index
    %c0_169 = arith.constant 0 : index
    %175 = vector.load %arg12[%c240_168, %c0_169] : memref<288x32xbf16, #tpu.memory_space<vmem>>, vector<8x32xbf16>
    %c160_170 = arith.constant 160 : index
    %c0_171 = arith.constant 0 : index
    %176 = vector.load %arg3[%c160_170, %c0_171] : memref<512x64xbf16, #tpu.memory_space<vmem>>, vector<32x64xbf16>
    %cst_172 = arith.constant dense<0.000000e+00> : vector<8x64xf32>
    %177 = tpu.matmul %175, %176, %cst_172 {dimension_numbers = #tpu.dot_dimension_numbers<[1], [0], [0], [1], [0, 0, 1, 1], [], []>} : vector<8x32xbf16>, vector<32x64xbf16>, vector<8x64xf32> -> vector<8x64xf32>
    %178 = arith.addf %174, %177 : vector<8x64xf32>
    %c170_173 = arith.constant 170 : index
    %c0_174 = arith.constant 0 : index
    %179 = vector.load %arg12[%c170_173, %c0_174] : memref<288x32xbf16, #tpu.memory_space<vmem>>, vector<8x32xbf16>
    %c192_175 = arith.constant 192 : index
    %c0_176 = arith.constant 0 : index
    %180 = vector.load %arg3[%c192_175, %c0_176] : memref<512x64xbf16, #tpu.memory_space<vmem>>, vector<32x64xbf16>
    %cst_177 = arith.constant dense<0.000000e+00> : vector<8x64xf32>
    %181 = tpu.matmul %179, %180, %cst_177 {dimension_numbers = #tpu.dot_dimension_numbers<[1], [0], [0], [1], [0, 0, 1, 1], [], []>} : vector<8x32xbf16>, vector<32x64xbf16>, vector<8x64xf32> -> vector<8x64xf32>
    %182 = arith.addf %178, %181 : vector<8x64xf32>
    %c242_178 = arith.constant 242 : index
    %c0_179 = arith.constant 0 : index
    %183 = vector.load %arg12[%c242_178, %c0_179] : memref<288x32xbf16, #tpu.memory_space<vmem>>, vector<8x32xbf16>
    %c224_180 = arith.constant 224 : index
    %c0_181 = arith.constant 0 : index
    %184 = vector.load %arg3[%c224_180, %c0_181] : memref<512x64xbf16, #tpu.memory_space<vmem>>, vector<32x64xbf16>
    %cst_182 = arith.constant dense<0.000000e+00> : vector<8x64xf32>
    %185 = tpu.matmul %183, %184, %cst_182 {dimension_numbers = #tpu.dot_dimension_numbers<[1], [0], [0], [1], [0, 0, 1, 1], [], []>} : vector<8x32xbf16>, vector<32x64xbf16>, vector<8x64xf32> -> vector<8x64xf32>
    %186 = arith.addf %182, %185 : vector<8x64xf32>
    %c36 = arith.constant 36 : index
    %c0_183 = arith.constant 0 : index
    %187 = vector.load %arg12[%c36, %c0_183] : memref<288x32xbf16, #tpu.memory_space<vmem>>, vector<8x32xbf16>
    %c256_184 = arith.constant 256 : index
    %c0_185 = arith.constant 0 : index
    %188 = vector.load %arg3[%c256_184, %c0_185] : memref<512x64xbf16, #tpu.memory_space<vmem>>, vector<32x64xbf16>
    %cst_186 = arith.constant dense<0.000000e+00> : vector<8x64xf32>
    %189 = tpu.matmul %187, %188, %cst_186 {dimension_numbers = #tpu.dot_dimension_numbers<[1], [0], [0], [1], [0, 0, 1, 1], [], []>} : vector<8x32xbf16>, vector<32x64xbf16>, vector<8x64xf32> -> vector<8x64xf32>
    %190 = arith.addf %186, %189 : vector<8x64xf32>
    %c108 = arith.constant 108 : index
    %c0_187 = arith.constant 0 : index
    %191 = vector.load %arg12[%c108, %c0_187] : memref<288x32xbf16, #tpu.memory_space<vmem>>, vector<8x32xbf16>
    %c288_188 = arith.constant 288 : index
    %c0_189 = arith.constant 0 : index
    %192 = vector.load %arg3[%c288_188, %c0_189] : memref<512x64xbf16, #tpu.memory_space<vmem>>, vector<32x64xbf16>
    %cst_190 = arith.constant dense<0.000000e+00> : vector<8x64xf32>
    %193 = tpu.matmul %191, %192, %cst_190 {dimension_numbers = #tpu.dot_dimension_numbers<[1], [0], [0], [1], [0, 0, 1, 1], [], []>} : vector<8x32xbf16>, vector<32x64xbf16>, vector<8x64xf32> -> vector<8x64xf32>
    %194 = arith.addf %190, %193 : vector<8x64xf32>
    %c38 = arith.constant 38 : index
    %c0_191 = arith.constant 0 : index
    %195 = vector.load %arg12[%c38, %c0_191] : memref<288x32xbf16, #tpu.memory_space<vmem>>, vector<8x32xbf16>
    %c320_192 = arith.constant 320 : index
    %c0_193 = arith.constant 0 : index
    %196 = vector.load %arg3[%c320_192, %c0_193] : memref<512x64xbf16, #tpu.memory_space<vmem>>, vector<32x64xbf16>
    %cst_194 = arith.constant dense<0.000000e+00> : vector<8x64xf32>
    %197 = tpu.matmul %195, %196, %cst_194 {dimension_numbers = #tpu.dot_dimension_numbers<[1], [0], [0], [1], [0, 0, 1, 1], [], []>} : vector<8x32xbf16>, vector<32x64xbf16>, vector<8x64xf32> -> vector<8x64xf32>
    %198 = arith.addf %194, %197 : vector<8x64xf32>
    %c110 = arith.constant 110 : index
    %c0_195 = arith.constant 0 : index
    %199 = vector.load %arg12[%c110, %c0_195] : memref<288x32xbf16, #tpu.memory_space<vmem>>, vector<8x32xbf16>
    %c352_196 = arith.constant 352 : index
    %c0_197 = arith.constant 0 : index
    %200 = vector.load %arg3[%c352_196, %c0_197] : memref<512x64xbf16, #tpu.memory_space<vmem>>, vector<32x64xbf16>
    %cst_198 = arith.constant dense<0.000000e+00> : vector<8x64xf32>
    %201 = tpu.matmul %199, %200, %cst_198 {dimension_numbers = #tpu.dot_dimension_numbers<[1], [0], [0], [1], [0, 0, 1, 1], [], []>} : vector<8x32xbf16>, vector<32x64xbf16>, vector<8x64xf32> -> vector<8x64xf32>
    %202 = arith.addf %198, %201 : vector<8x64xf32>
    %c180 = arith.constant 180 : index
    %c0_199 = arith.constant 0 : index
    %203 = vector.load %arg12[%c180, %c0_199] : memref<288x32xbf16, #tpu.memory_space<vmem>>, vector<8x32xbf16>
    %c384_200 = arith.constant 384 : index
    %c0_201 = arith.constant 0 : index
    %204 = vector.load %arg3[%c384_200, %c0_201] : memref<512x64xbf16, #tpu.memory_space<vmem>>, vector<32x64xbf16>
    %cst_202 = arith.constant dense<0.000000e+00> : vector<8x64xf32>
    %205 = tpu.matmul %203, %204, %cst_202 {dimension_numbers = #tpu.dot_dimension_numbers<[1], [0], [0], [1], [0, 0, 1, 1], [], []>} : vector<8x32xbf16>, vector<32x64xbf16>, vector<8x64xf32> -> vector<8x64xf32>
    %206 = arith.addf %202, %205 : vector<8x64xf32>
    %c252 = arith.constant 252 : index
    %c0_203 = arith.constant 0 : index
    %207 = vector.load %arg12[%c252, %c0_203] : memref<288x32xbf16, #tpu.memory_space<vmem>>, vector<8x32xbf16>
    %c416_204 = arith.constant 416 : index
    %c0_205 = arith.constant 0 : index
    %208 = vector.load %arg3[%c416_204, %c0_205] : memref<512x64xbf16, #tpu.memory_space<vmem>>, vector<32x64xbf16>
    %cst_206 = arith.constant dense<0.000000e+00> : vector<8x64xf32>
    %209 = tpu.matmul %207, %208, %cst_206 {dimension_numbers = #tpu.dot_dimension_numbers<[1], [0], [0], [1], [0, 0, 1, 1], [], []>} : vector<8x32xbf16>, vector<32x64xbf16>, vector<8x64xf32> -> vector<8x64xf32>
    %210 = arith.addf %206, %209 : vector<8x64xf32>
    %c182 = arith.constant 182 : index
    %c0_207 = arith.constant 0 : index
    %211 = vector.load %arg12[%c182, %c0_207] : memref<288x32xbf16, #tpu.memory_space<vmem>>, vector<8x32xbf16>
    %c448_208 = arith.constant 448 : index
    %c0_209 = arith.constant 0 : index
    %212 = vector.load %arg3[%c448_208, %c0_209] : memref<512x64xbf16, #tpu.memory_space<vmem>>, vector<32x64xbf16>
    %cst_210 = arith.constant dense<0.000000e+00> : vector<8x64xf32>
    %213 = tpu.matmul %211, %212, %cst_210 {dimension_numbers = #tpu.dot_dimension_numbers<[1], [0], [0], [1], [0, 0, 1, 1], [], []>} : vector<8x32xbf16>, vector<32x64xbf16>, vector<8x64xf32> -> vector<8x64xf32>
    %214 = arith.addf %210, %213 : vector<8x64xf32>
    %c254 = arith.constant 254 : index
    %c0_211 = arith.constant 0 : index
    %215 = vector.load %arg12[%c254, %c0_211] : memref<288x32xbf16, #tpu.memory_space<vmem>>, vector<8x32xbf16>
    %c480_212 = arith.constant 480 : index
    %c0_213 = arith.constant 0 : index
    %216 = vector.load %arg3[%c480_212, %c0_213] : memref<512x64xbf16, #tpu.memory_space<vmem>>, vector<32x64xbf16>
    %cst_214 = arith.constant dense<0.000000e+00> : vector<8x64xf32>
    %217 = tpu.matmul %215, %216, %cst_214 {dimension_numbers = #tpu.dot_dimension_numbers<[1], [0], [0], [1], [0, 0, 1, 1], [], []>} : vector<8x32xbf16>, vector<32x64xbf16>, vector<8x64xf32> -> vector<8x64xf32>
    %218 = arith.addf %214, %217 : vector<8x64xf32>
    %c0_215 = arith.constant 0 : index
    %c0_216 = arith.constant 0 : index
    %219 = vector.load %arg4[%c0_215, %c0_216] : memref<1x64xf32, #tpu.memory_space<vmem>>, vector<1x64xf32>
    %220 = vector.broadcast %219 : vector<1x64xf32> to vector<8x64xf32>
    %221 = arith.addf %218, %220 : vector<8x64xf32>
    %cst_217 = arith.constant 0.000000e+00 : f32
    %222 = vector.broadcast %cst_217 : f32 to vector<8x64xf32>
    %223 = arith.maximumf %221, %222 : vector<8x64xf32>
    %224 = arith.truncf %223 : vector<8x64xf32> to vector<8x64xbf16>
    %c16 = arith.constant 16 : index
    %c0_218 = arith.constant 0 : index
    %225 = vector.load %arg13[%c16, %c0_218] : memref<32x64xbf16, #tpu.memory_space<vmem>>, vector<8x64xbf16>
    tpu.vector_store %arg13[%c16, %c0_218], %224 {strides = array<i32>} : memref<32x64xbf16, #tpu.memory_space<vmem>>, vector<8x64xbf16>,
    %cst_219 = arith.constant 0.000000e+00 : f32
    %226 = vector.broadcast %cst_219 : f32 to vector<8x64xf32>
    %c36_220 = arith.constant 36 : index
    %c0_221 = arith.constant 0 : index
    %227 = vector.load %arg12[%c36_220, %c0_221] : memref<288x32xbf16, #tpu.memory_space<vmem>>, vector<8x32xbf16>
    %c0_222 = arith.constant 0 : index
    %c0_223 = arith.constant 0 : index
    %228 = vector.load %arg3[%c0_222, %c0_223] : memref<512x64xbf16, #tpu.memory_space<vmem>>, vector<32x64xbf16>
    %cst_224 = arith.constant dense<0.000000e+00> : vector<8x64xf32>
    %229 = tpu.matmul %227, %228, %cst_224 {dimension_numbers = #tpu.dot_dimension_numbers<[1], [0], [0], [1], [0, 0, 1, 1], [], []>} : vector<8x32xbf16>, vector<32x64xbf16>, vector<8x64xf32> -> vector<8x64xf32>
    %230 = arith.addf %226, %229 : vector<8x64xf32>
    %c108_225 = arith.constant 108 : index
    %c0_226 = arith.constant 0 : index
    %231 = vector.load %arg12[%c108_225, %c0_226] : memref<288x32xbf16, #tpu.memory_space<vmem>>, vector<8x32xbf16>
    %c32_227 = arith.constant 32 : index
    %c0_228 = arith.constant 0 : index
    %232 = vector.load %arg3[%c32_227, %c0_228] : memref<512x64xbf16, #tpu.memory_space<vmem>>, vector<32x64xbf16>
    %cst_229 = arith.constant dense<0.000000e+00> : vector<8x64xf32>
    %233 = tpu.matmul %231, %232, %cst_229 {dimension_numbers = #tpu.dot_dimension_numbers<[1], [0], [0], [1], [0, 0, 1, 1], [], []>} : vector<8x32xbf16>, vector<32x64xbf16>, vector<8x64xf32> -> vector<8x64xf32>
    %234 = arith.addf %230, %233 : vector<8x64xf32>
    %c38_230 = arith.constant 38 : index
    %c0_231 = arith.constant 0 : index
    %235 = vector.load %arg12[%c38_230, %c0_231] : memref<288x32xbf16, #tpu.memory_space<vmem>>, vector<8x32xbf16>
    %c64_232 = arith.constant 64 : index
    %c0_233 = arith.constant 0 : index
    %236 = vector.load %arg3[%c64_232, %c0_233] : memref<512x64xbf16, #tpu.memory_space<vmem>>, vector<32x64xbf16>
    %cst_234 = arith.constant dense<0.000000e+00> : vector<8x64xf32>
    %237 = tpu.matmul %235, %236, %cst_234 {dimension_numbers = #tpu.dot_dimension_numbers<[1], [0], [0], [1], [0, 0, 1, 1], [], []>} : vector<8x32xbf16>, vector<32x64xbf16>, vector<8x64xf32> -> vector<8x64xf32>
    %238 = arith.addf %234, %237 : vector<8x64xf32>
    %c110_235 = arith.constant 110 : index
    %c0_236 = arith.constant 0 : index
    %239 = vector.load %arg12[%c110_235, %c0_236] : memref<288x32xbf16, #tpu.memory_space<vmem>>, vector<8x32xbf16>
    %c96_237 = arith.constant 96 : index
    %c0_238 = arith.constant 0 : index
    %240 = vector.load %arg3[%c96_237, %c0_238] : memref<512x64xbf16, #tpu.memory_space<vmem>>, vector<32x64xbf16>
    %cst_239 = arith.constant dense<0.000000e+00> : vector<8x64xf32>
    %241 = tpu.matmul %239, %240, %cst_239 {dimension_numbers = #tpu.dot_dimension_numbers<[1], [0], [0], [1], [0, 0, 1, 1], [], []>} : vector<8x32xbf16>, vector<32x64xbf16>, vector<8x64xf32> -> vector<8x64xf32>
    %242 = arith.addf %238, %241 : vector<8x64xf32>
    %c180_240 = arith.constant 180 : index
    %c0_241 = arith.constant 0 : index
    %243 = vector.load %arg12[%c180_240, %c0_241] : memref<288x32xbf16, #tpu.memory_space<vmem>>, vector<8x32xbf16>
    %c128_242 = arith.constant 128 : index
    %c0_243 = arith.constant 0 : index
    %244 = vector.load %arg3[%c128_242, %c0_243] : memref<512x64xbf16, #tpu.memory_space<vmem>>, vector<32x64xbf16>
    %cst_244 = arith.constant dense<0.000000e+00> : vector<8x64xf32>
    %245 = tpu.matmul %243, %244, %cst_244 {dimension_numbers = #tpu.dot_dimension_numbers<[1], [0], [0], [1], [0, 0, 1, 1], [], []>} : vector<8x32xbf16>, vector<32x64xbf16>, vector<8x64xf32> -> vector<8x64xf32>
    %246 = arith.addf %242, %245 : vector<8x64xf32>
    %c252_245 = arith.constant 252 : index
    %c0_246 = arith.constant 0 : index
    %247 = vector.load %arg12[%c252_245, %c0_246] : memref<288x32xbf16, #tpu.memory_space<vmem>>, vector<8x32xbf16>
    %c160_247 = arith.constant 160 : index
    %c0_248 = arith.constant 0 : index
    %248 = vector.load %arg3[%c160_247, %c0_248] : memref<512x64xbf16, #tpu.memory_space<vmem>>, vector<32x64xbf16>
    %cst_249 = arith.constant dense<0.000000e+00> : vector<8x64xf32>
    %249 = tpu.matmul %247, %248, %cst_249 {dimension_numbers = #tpu.dot_dimension_numbers<[1], [0], [0], [1], [0, 0, 1, 1], [], []>} : vector<8x32xbf16>, vector<32x64xbf16>, vector<8x64xf32> -> vector<8x64xf32>
    %250 = arith.addf %246, %249 : vector<8x64xf32>
    %c182_250 = arith.constant 182 : index
    %c0_251 = arith.constant 0 : index
    %251 = vector.load %arg12[%c182_250, %c0_251] : memref<288x32xbf16, #tpu.memory_space<vmem>>, vector<8x32xbf16>
    %c192_252 = arith.constant 192 : index
    %c0_253 = arith.constant 0 : index
    %252 = vector.load %arg3[%c192_252, %c0_253] : memref<512x64xbf16, #tpu.memory_space<vmem>>, vector<32x64xbf16>
    %cst_254 = arith.constant dense<0.000000e+00> : vector<8x64xf32>
    %253 = tpu.matmul %251, %252, %cst_254 {dimension_numbers = #tpu.dot_dimension_numbers<[1], [0], [0], [1], [0, 0, 1, 1], [], []>} : vector<8x32xbf16>, vector<32x64xbf16>, vector<8x64xf32> -> vector<8x64xf32>
    %254 = arith.addf %250, %253 : vector<8x64xf32>
    %c254_255 = arith.constant 254 : index
    %c0_256 = arith.constant 0 : index
    %255 = vector.load %arg12[%c254_255, %c0_256] : memref<288x32xbf16, #tpu.memory_space<vmem>>, vector<8x32xbf16>
    %c224_257 = arith.constant 224 : index
    %c0_258 = arith.constant 0 : index
    %256 = vector.load %arg3[%c224_257, %c0_258] : memref<512x64xbf16, #tpu.memory_space<vmem>>, vector<32x64xbf16>
    %cst_259 = arith.constant dense<0.000000e+00> : vector<8x64xf32>
    %257 = tpu.matmul %255, %256, %cst_259 {dimension_numbers = #tpu.dot_dimension_numbers<[1], [0], [0], [1], [0, 0, 1, 1], [], []>} : vector<8x32xbf16>, vector<32x64xbf16>, vector<8x64xf32> -> vector<8x64xf32>
    %258 = arith.addf %254, %257 : vector<8x64xf32>
    %c48 = arith.constant 48 : index
    %c0_260 = arith.constant 0 : index
    %259 = vector.load %arg12[%c48, %c0_260] : memref<288x32xbf16, #tpu.memory_space<vmem>>, vector<8x32xbf16>
    %c256_261 = arith.constant 256 : index
    %c0_262 = arith.constant 0 : index
    %260 = vector.load %arg3[%c256_261, %c0_262] : memref<512x64xbf16, #tpu.memory_space<vmem>>, vector<32x64xbf16>
    %cst_263 = arith.constant dense<0.000000e+00> : vector<8x64xf32>
    %261 = tpu.matmul %259, %260, %cst_263 {dimension_numbers = #tpu.dot_dimension_numbers<[1], [0], [0], [1], [0, 0, 1, 1], [], []>} : vector<8x32xbf16>, vector<32x64xbf16>, vector<8x64xf32> -> vector<8x64xf32>
    %262 = arith.addf %258, %261 : vector<8x64xf32>
    %c120 = arith.constant 120 : index
    %c0_264 = arith.constant 0 : index
    %263 = vector.load %arg12[%c120, %c0_264] : memref<288x32xbf16, #tpu.memory_space<vmem>>, vector<8x32xbf16>
    %c288_265 = arith.constant 288 : index
    %c0_266 = arith.constant 0 : index
    %264 = vector.load %arg3[%c288_265, %c0_266] : memref<512x64xbf16, #tpu.memory_space<vmem>>, vector<32x64xbf16>
    %cst_267 = arith.constant dense<0.000000e+00> : vector<8x64xf32>
    %265 = tpu.matmul %263, %264, %cst_267 {dimension_numbers = #tpu.dot_dimension_numbers<[1], [0], [0], [1], [0, 0, 1, 1], [], []>} : vector<8x32xbf16>, vector<32x64xbf16>, vector<8x64xf32> -> vector<8x64xf32>
    %266 = arith.addf %262, %265 : vector<8x64xf32>
    %c50 = arith.constant 50 : index
    %c0_268 = arith.constant 0 : index
    %267 = vector.load %arg12[%c50, %c0_268] : memref<288x32xbf16, #tpu.memory_space<vmem>>, vector<8x32xbf16>
    %c320_269 = arith.constant 320 : index
    %c0_270 = arith.constant 0 : index
    %268 = vector.load %arg3[%c320_269, %c0_270] : memref<512x64xbf16, #tpu.memory_space<vmem>>, vector<32x64xbf16>
    %cst_271 = arith.constant dense<0.000000e+00> : vector<8x64xf32>
    %269 = tpu.matmul %267, %268, %cst_271 {dimension_numbers = #tpu.dot_dimension_numbers<[1], [0], [0], [1], [0, 0, 1, 1], [], []>} : vector<8x32xbf16>, vector<32x64xbf16>, vector<8x64xf32> -> vector<8x64xf32>
    %270 = arith.addf %266, %269 : vector<8x64xf32>
    %c122 = arith.constant 122 : index
    %c0_272 = arith.constant 0 : index
    %271 = vector.load %arg12[%c122, %c0_272] : memref<288x32xbf16, #tpu.memory_space<vmem>>, vector<8x32xbf16>
    %c352_273 = arith.constant 352 : index
    %c0_274 = arith.constant 0 : index
    %272 = vector.load %arg3[%c352_273, %c0_274] : memref<512x64xbf16, #tpu.memory_space<vmem>>, vector<32x64xbf16>
    %cst_275 = arith.constant dense<0.000000e+00> : vector<8x64xf32>
    %273 = tpu.matmul %271, %272, %cst_275 {dimension_numbers = #tpu.dot_dimension_numbers<[1], [0], [0], [1], [0, 0, 1, 1], [], []>} : vector<8x32xbf16>, vector<32x64xbf16>, vector<8x64xf32> -> vector<8x64xf32>
    %274 = arith.addf %270, %273 : vector<8x64xf32>
    %c192_276 = arith.constant 192 : index
    %c0_277 = arith.constant 0 : index
    %275 = vector.load %arg12[%c192_276, %c0_277] : memref<288x32xbf16, #tpu.memory_space<vmem>>, vector<8x32xbf16>
    %c384_278 = arith.constant 384 : index
    %c0_279 = arith.constant 0 : index
    %276 = vector.load %arg3[%c384_278, %c0_279] : memref<512x64xbf16, #tpu.memory_space<vmem>>, vector<32x64xbf16>
    %cst_280 = arith.constant dense<0.000000e+00> : vector<8x64xf32>
    %277 = tpu.matmul %275, %276, %cst_280 {dimension_numbers = #tpu.dot_dimension_numbers<[1], [0], [0], [1], [0, 0, 1, 1], [], []>} : vector<8x32xbf16>, vector<32x64xbf16>, vector<8x64xf32> -> vector<8x64xf32>
    %278 = arith.addf %274, %277 : vector<8x64xf32>
    %c264 = arith.constant 264 : index
    %c0_281 = arith.constant 0 : index
    %279 = vector.load %arg12[%c264, %c0_281] : memref<288x32xbf16, #tpu.memory_space<vmem>>, vector<8x32xbf16>
    %c416_282 = arith.constant 416 : index
    %c0_283 = arith.constant 0 : index
    %280 = vector.load %arg3[%c416_282, %c0_283] : memref<512x64xbf16, #tpu.memory_space<vmem>>, vector<32x64xbf16>
    %cst_284 = arith.constant dense<0.000000e+00> : vector<8x64xf32>
    %281 = tpu.matmul %279, %280, %cst_284 {dimension_numbers = #tpu.dot_dimension_numbers<[1], [0], [0], [1], [0, 0, 1, 1], [], []>} : vector<8x32xbf16>, vector<32x64xbf16>, vector<8x64xf32> -> vector<8x64xf32>
    %282 = arith.addf %278, %281 : vector<8x64xf32>
    %c194 = arith.constant 194 : index
    %c0_285 = arith.constant 0 : index
    %283 = vector.load %arg12[%c194, %c0_285] : memref<288x32xbf16, #tpu.memory_space<vmem>>, vector<8x32xbf16>
    %c448_286 = arith.constant 448 : index
    %c0_287 = arith.constant 0 : index
    %284 = vector.load %arg3[%c448_286, %c0_287] : memref<512x64xbf16, #tpu.memory_space<vmem>>, vector<32x64xbf16>
    %cst_288 = arith.constant dense<0.000000e+00> : vector<8x64xf32>
    %285 = tpu.matmul %283, %284, %cst_288 {dimension_numbers = #tpu.dot_dimension_numbers<[1], [0], [0], [1], [0, 0, 1, 1], [], []>} : vector<8x32xbf16>, vector<32x64xbf16>, vector<8x64xf32> -> vector<8x64xf32>
    %286 = arith.addf %282, %285 : vector<8x64xf32>
    %c266 = arith.constant 266 : index
    %c0_289 = arith.constant 0 : index
    %287 = vector.load %arg12[%c266, %c0_289] : memref<288x32xbf16, #tpu.memory_space<vmem>>, vector<8x32xbf16>
    %c480_290 = arith.constant 480 : index
    %c0_291 = arith.constant 0 : index
    %288 = vector.load %arg3[%c480_290, %c0_291] : memref<512x64xbf16, #tpu.memory_space<vmem>>, vector<32x64xbf16>
    %cst_292 = arith.constant dense<0.000000e+00> : vector<8x64xf32>
    %289 = tpu.matmul %287, %288, %cst_292 {dimension_numbers = #tpu.dot_dimension_numbers<[1], [0], [0], [1], [0, 0, 1, 1], [], []>} : vector<8x32xbf16>, vector<32x64xbf16>, vector<8x64xf32> -> vector<8x64xf32>
    %290 = arith.addf %286, %289 : vector<8x64xf32>
    %c0_293 = arith.constant 0 : index
    %c0_294 = arith.constant 0 : index
    %291 = vector.load %arg4[%c0_293, %c0_294] : memref<1x64xf32, #tpu.memory_space<vmem>>, vector<1x64xf32>
    %292 = vector.broadcast %291 : vector<1x64xf32> to vector<8x64xf32>
    %293 = arith.addf %290, %292 : vector<8x64xf32>
    %cst_295 = arith.constant 0.000000e+00 : f32
    %294 = vector.broadcast %cst_295 : f32 to vector<8x64xf32>
    %295 = arith.maximumf %293, %294 : vector<8x64xf32>
    %296 = arith.truncf %295 : vector<8x64xf32> to vector<8x64xbf16>
    %c24_296 = arith.constant 24 : index
    %c0_297 = arith.constant 0 : index
    %297 = vector.load %arg13[%c24_296, %c0_297] : memref<32x64xbf16, #tpu.memory_space<vmem>>, vector<8x64xbf16>
    tpu.vector_store %arg13[%c24_296, %c0_297], %296 {strides = array<i32>} : memref<32x64xbf16, #tpu.memory_space<vmem>>, vector<8x64xbf16>,
    %cst_298 = arith.constant 0.000000e+00 : f32
    %298 = vector.broadcast %cst_298 : f32 to vector<4x64xf32>
    %c0_299 = arith.constant 0 : index
    %c0_300 = arith.constant 0 : index
    %299 = vector.load %arg13[%c0_299, %c0_300] : memref<32x64xbf16, #tpu.memory_space<vmem>>, vector<4x64xbf16>
    %c0_301 = arith.constant 0 : index
    %c0_302 = arith.constant 0 : index
    %300 = vector.load %arg5[%c0_301, %c0_302] : memref<576x64xbf16, #tpu.memory_space<vmem>>, vector<64x64xbf16>
    %cst_303 = arith.constant dense<0.000000e+00> : vector<4x64xf32>
    %301 = tpu.matmul %299, %300, %cst_303 {dimension_numbers = #tpu.dot_dimension_numbers<[1], [0], [0], [1], [0, 0, 1, 1], [], []>} : vector<4x64xbf16>, vector<64x64xbf16>, vector<4x64xf32> -> vector<4x64xf32>
    %302 = arith.addf %298, %301 : vector<4x64xf32>
    %c2_304 = arith.constant 2 : index
    %c0_305 = arith.constant 0 : index
    %303 = vector.load %arg13[%c2_304, %c0_305] : memref<32x64xbf16, #tpu.memory_space<vmem>>, vector<4x64xbf16>
    %c64_306 = arith.constant 64 : index
    %c0_307 = arith.constant 0 : index
    %304 = vector.load %arg5[%c64_306, %c0_307] : memref<576x64xbf16, #tpu.memory_space<vmem>>, vector<64x64xbf16>
    %cst_308 = arith.constant dense<0.000000e+00> : vector<4x64xf32>
    %305 = tpu.matmul %303, %304, %cst_308 {dimension_numbers = #tpu.dot_dimension_numbers<[1], [0], [0], [1], [0, 0, 1, 1], [], []>} : vector<4x64xbf16>, vector<64x64xbf16>, vector<4x64xf32> -> vector<4x64xf32>
    %306 = arith.addf %302, %305 : vector<4x64xf32>
    %c4 = arith.constant 4 : index
    %c0_309 = arith.constant 0 : index
    %307 = vector.load %arg13[%c4, %c0_309] : memref<32x64xbf16, #tpu.memory_space<vmem>>, vector<4x64xbf16>
    %c128_310 = arith.constant 128 : index
    %c0_311 = arith.constant 0 : index
    %308 = vector.load %arg5[%c128_310, %c0_311] : memref<576x64xbf16, #tpu.memory_space<vmem>>, vector<64x64xbf16>
    %cst_312 = arith.constant dense<0.000000e+00> : vector<4x64xf32>
    %309 = tpu.matmul %307, %308, %cst_312 {dimension_numbers = #tpu.dot_dimension_numbers<[1], [0], [0], [1], [0, 0, 1, 1], [], []>} : vector<4x64xbf16>, vector<64x64xbf16>, vector<4x64xf32> -> vector<4x64xf32>
    %310 = arith.addf %306, %309 : vector<4x64xf32>
    %c8_313 = arith.constant 8 : index
    %c0_314 = arith.constant 0 : index
    %311 = vector.load %arg13[%c8_313, %c0_314] : memref<32x64xbf16, #tpu.memory_space<vmem>>, vector<4x64xbf16>
    %c192_315 = arith.constant 192 : index
    %c0_316 = arith.constant 0 : index
    %312 = vector.load %arg5[%c192_315, %c0_316] : memref<576x64xbf16, #tpu.memory_space<vmem>>, vector<64x64xbf16>
    %cst_317 = arith.constant dense<0.000000e+00> : vector<4x64xf32>
    %313 = tpu.matmul %311, %312, %cst_317 {dimension_numbers = #tpu.dot_dimension_numbers<[1], [0], [0], [1], [0, 0, 1, 1], [], []>} : vector<4x64xbf16>, vector<64x64xbf16>, vector<4x64xf32> -> vector<4x64xf32>
    %314 = arith.addf %310, %313 : vector<4x64xf32>
    %c10 = arith.constant 10 : index
    %c0_318 = arith.constant 0 : index
    %315 = vector.load %arg13[%c10, %c0_318] : memref<32x64xbf16, #tpu.memory_space<vmem>>, vector<4x64xbf16>
    %c256_319 = arith.constant 256 : index
    %c0_320 = arith.constant 0 : index
    %316 = vector.load %arg5[%c256_319, %c0_320] : memref<576x64xbf16, #tpu.memory_space<vmem>>, vector<64x64xbf16>
    %cst_321 = arith.constant dense<0.000000e+00> : vector<4x64xf32>
    %317 = tpu.matmul %315, %316, %cst_321 {dimension_numbers = #tpu.dot_dimension_numbers<[1], [0], [0], [1], [0, 0, 1, 1], [], []>} : vector<4x64xbf16>, vector<64x64xbf16>, vector<4x64xf32> -> vector<4x64xf32>
    %318 = arith.addf %314, %317 : vector<4x64xf32>
    %c12_322 = arith.constant 12 : index
    %c0_323 = arith.constant 0 : index
    %319 = vector.load %arg13[%c12_322, %c0_323] : memref<32x64xbf16, #tpu.memory_space<vmem>>, vector<4x64xbf16>
    %c320_324 = arith.constant 320 : index
    %c0_325 = arith.constant 0 : index
    %320 = vector.load %arg5[%c320_324, %c0_325] : memref<576x64xbf16, #tpu.memory_space<vmem>>, vector<64x64xbf16>
    %cst_326 = arith.constant dense<0.000000e+00> : vector<4x64xf32>
    %321 = tpu.matmul %319, %320, %cst_326 {dimension_numbers = #tpu.dot_dimension_numbers<[1], [0], [0], [1], [0, 0, 1, 1], [], []>} : vector<4x64xbf16>, vector<64x64xbf16>, vector<4x64xf32> -> vector<4x64xf32>
    %322 = arith.addf %318, %321 : vector<4x64xf32>
    %c16_327 = arith.constant 16 : index
    %c0_328 = arith.constant 0 : index
    %323 = vector.load %arg13[%c16_327, %c0_328] : memref<32x64xbf16, #tpu.memory_space<vmem>>, vector<4x64xbf16>
    %c384_329 = arith.constant 384 : index
    %c0_330 = arith.constant 0 : index
    %324 = vector.load %arg5[%c384_329, %c0_330] : memref<576x64xbf16, #tpu.memory_space<vmem>>, vector<64x64xbf16>
    %cst_331 = arith.constant dense<0.000000e+00> : vector<4x64xf32>
    %325 = tpu.matmul %323, %324, %cst_331 {dimension_numbers = #tpu.dot_dimension_numbers<[1], [0], [0], [1], [0, 0, 1, 1], [], []>} : vector<4x64xbf16>, vector<64x64xbf16>, vector<4x64xf32> -> vector<4x64xf32>
    %326 = arith.addf %322, %325 : vector<4x64xf32>
    %c18 = arith.constant 18 : index
    %c0_332 = arith.constant 0 : index
    %327 = vector.load %arg13[%c18, %c0_332] : memref<32x64xbf16, #tpu.memory_space<vmem>>, vector<4x64xbf16>
    %c448_333 = arith.constant 448 : index
    %c0_334 = arith.constant 0 : index
    %328 = vector.load %arg5[%c448_333, %c0_334] : memref<576x64xbf16, #tpu.memory_space<vmem>>, vector<64x64xbf16>
    %cst_335 = arith.constant dense<0.000000e+00> : vector<4x64xf32>
    %329 = tpu.matmul %327, %328, %cst_335 {dimension_numbers = #tpu.dot_dimension_numbers<[1], [0], [0], [1], [0, 0, 1, 1], [], []>} : vector<4x64xbf16>, vector<64x64xbf16>, vector<4x64xf32> -> vector<4x64xf32>
    %330 = arith.addf %326, %329 : vector<4x64xf32>
    %c20 = arith.constant 20 : index
    %c0_336 = arith.constant 0 : index
    %331 = vector.load %arg13[%c20, %c0_336] : memref<32x64xbf16, #tpu.memory_space<vmem>>, vector<4x64xbf16>
    %c512 = arith.constant 512 : index
    %c0_337 = arith.constant 0 : index
    %332 = vector.load %arg5[%c512, %c0_337] : memref<576x64xbf16, #tpu.memory_space<vmem>>, vector<64x64xbf16>
    %cst_338 = arith.constant dense<0.000000e+00> : vector<4x64xf32>
    %333 = tpu.matmul %331, %332, %cst_338 {dimension_numbers = #tpu.dot_dimension_numbers<[1], [0], [0], [1], [0, 0, 1, 1], [], []>} : vector<4x64xbf16>, vector<64x64xbf16>, vector<4x64xf32> -> vector<4x64xf32>
    %334 = arith.addf %330, %333 : vector<4x64xf32>
    %c0_339 = arith.constant 0 : index
    %c0_340 = arith.constant 0 : index
    %335 = vector.load %arg6[%c0_339, %c0_340] : memref<1x64xf32, #tpu.memory_space<vmem>>, vector<1x64xf32>
    %336 = vector.broadcast %335 : vector<1x64xf32> to vector<4x64xf32>
    %337 = arith.addf %334, %336 : vector<4x64xf32>
    %cst_341 = arith.constant 0.000000e+00 : f32
    %338 = vector.broadcast %cst_341 : f32 to vector<4x64xf32>
    %339 = arith.maximumf %337, %338 : vector<4x64xf32>
    %340 = arith.truncf %339 : vector<4x64xf32> to vector<4x64xbf16>
    %c0_342 = arith.constant 0 : index
    %c0_343 = arith.constant 0 : index
    %341 = vector.load %arg14[%c0_342, %c0_343] : memref<8x64xbf16, #tpu.memory_space<vmem>>, vector<4x64xbf16>
    tpu.vector_store %arg14[%c0_342, %c0_343], %340 {strides = array<i32>} : memref<8x64xbf16, #tpu.memory_space<vmem>>, vector<4x64xbf16>,
    %cst_344 = arith.constant 0.000000e+00 : f32
    %342 = vector.broadcast %cst_344 : f32 to vector<4x64xf32>
    %c8_345 = arith.constant 8 : index
    %c0_346 = arith.constant 0 : index
    %343 = vector.load %arg13[%c8_345, %c0_346] : memref<32x64xbf16, #tpu.memory_space<vmem>>, vector<4x64xbf16>
    %c0_347 = arith.constant 0 : index
    %c0_348 = arith.constant 0 : index
    %344 = vector.load %arg5[%c0_347, %c0_348] : memref<576x64xbf16, #tpu.memory_space<vmem>>, vector<64x64xbf16>
    %cst_349 = arith.constant dense<0.000000e+00> : vector<4x64xf32>
    %345 = tpu.matmul %343, %344, %cst_349 {dimension_numbers = #tpu.dot_dimension_numbers<[1], [0], [0], [1], [0, 0, 1, 1], [], []>} : vector<4x64xbf16>, vector<64x64xbf16>, vector<4x64xf32> -> vector<4x64xf32>
    %346 = arith.addf %342, %345 : vector<4x64xf32>
    %c10_350 = arith.constant 10 : index
    %c0_351 = arith.constant 0 : index
    %347 = vector.load %arg13[%c10_350, %c0_351] : memref<32x64xbf16, #tpu.memory_space<vmem>>, vector<4x64xbf16>
    %c64_352 = arith.constant 64 : index
    %c0_353 = arith.constant 0 : index
    %348 = vector.load %arg5[%c64_352, %c0_353] : memref<576x64xbf16, #tpu.memory_space<vmem>>, vector<64x64xbf16>
    %cst_354 = arith.constant dense<0.000000e+00> : vector<4x64xf32>
    %349 = tpu.matmul %347, %348, %cst_354 {dimension_numbers = #tpu.dot_dimension_numbers<[1], [0], [0], [1], [0, 0, 1, 1], [], []>} : vector<4x64xbf16>, vector<64x64xbf16>, vector<4x64xf32> -> vector<4x64xf32>
    %350 = arith.addf %346, %349 : vector<4x64xf32>
    %c12_355 = arith.constant 12 : index
    %c0_356 = arith.constant 0 : index
    %351 = vector.load %arg13[%c12_355, %c0_356] : memref<32x64xbf16, #tpu.memory_space<vmem>>, vector<4x64xbf16>
    %c128_357 = arith.constant 128 : index
    %c0_358 = arith.constant 0 : index
    %352 = vector.load %arg5[%c128_357, %c0_358] : memref<576x64xbf16, #tpu.memory_space<vmem>>, vector<64x64xbf16>
    %cst_359 = arith.constant dense<0.000000e+00> : vector<4x64xf32>
    %353 = tpu.matmul %351, %352, %cst_359 {dimension_numbers = #tpu.dot_dimension_numbers<[1], [0], [0], [1], [0, 0, 1, 1], [], []>} : vector<4x64xbf16>, vector<64x64xbf16>, vector<4x64xf32> -> vector<4x64xf32>
    %354 = arith.addf %350, %353 : vector<4x64xf32>
    %c16_360 = arith.constant 16 : index
    %c0_361 = arith.constant 0 : index
    %355 = vector.load %arg13[%c16_360, %c0_361] : memref<32x64xbf16, #tpu.memory_space<vmem>>, vector<4x64xbf16>
    %c192_362 = arith.constant 192 : index
    %c0_363 = arith.constant 0 : index
    %356 = vector.load %arg5[%c192_362, %c0_363] : memref<576x64xbf16, #tpu.memory_space<vmem>>, vector<64x64xbf16>
    %cst_364 = arith.constant dense<0.000000e+00> : vector<4x64xf32>
    %357 = tpu.matmul %355, %356, %cst_364 {dimension_numbers = #tpu.dot_dimension_numbers<[1], [0], [0], [1], [0, 0, 1, 1], [], []>} : vector<4x64xbf16>, vector<64x64xbf16>, vector<4x64xf32> -> vector<4x64xf32>
    %358 = arith.addf %354, %357 : vector<4x64xf32>
    %c18_365 = arith.constant 18 : index
    %c0_366 = arith.constant 0 : index
    %359 = vector.load %arg13[%c18_365, %c0_366] : memref<32x64xbf16, #tpu.memory_space<vmem>>, vector<4x64xbf16>
    %c256_367 = arith.constant 256 : index
    %c0_368 = arith.constant 0 : index
    %360 = vector.load %arg5[%c256_367, %c0_368] : memref<576x64xbf16, #tpu.memory_space<vmem>>, vector<64x64xbf16>
    %cst_369 = arith.constant dense<0.000000e+00> : vector<4x64xf32>
    %361 = tpu.matmul %359, %360, %cst_369 {dimension_numbers = #tpu.dot_dimension_numbers<[1], [0], [0], [1], [0, 0, 1, 1], [], []>} : vector<4x64xbf16>, vector<64x64xbf16>, vector<4x64xf32> -> vector<4x64xf32>
    %362 = arith.addf %358, %361 : vector<4x64xf32>
    %c20_370 = arith.constant 20 : index
    %c0_371 = arith.constant 0 : index
    %363 = vector.load %arg13[%c20_370, %c0_371] : memref<32x64xbf16, #tpu.memory_space<vmem>>, vector<4x64xbf16>
    %c320_372 = arith.constant 320 : index
    %c0_373 = arith.constant 0 : index
    %364 = vector.load %arg5[%c320_372, %c0_373] : memref<576x64xbf16, #tpu.memory_space<vmem>>, vector<64x64xbf16>
    %cst_374 = arith.constant dense<0.000000e+00> : vector<4x64xf32>
    %365 = tpu.matmul %363, %364, %cst_374 {dimension_numbers = #tpu.dot_dimension_numbers<[1], [0], [0], [1], [0, 0, 1, 1], [], []>} : vector<4x64xbf16>, vector<64x64xbf16>, vector<4x64xf32> -> vector<4x64xf32>
    %366 = arith.addf %362, %365 : vector<4x64xf32>
    %c24_375 = arith.constant 24 : index
    %c0_376 = arith.constant 0 : index
    %367 = vector.load %arg13[%c24_375, %c0_376] : memref<32x64xbf16, #tpu.memory_space<vmem>>, vector<4x64xbf16>
    %c384_377 = arith.constant 384 : index
    %c0_378 = arith.constant 0 : index
    %368 = vector.load %arg5[%c384_377, %c0_378] : memref<576x64xbf16, #tpu.memory_space<vmem>>, vector<64x64xbf16>
    %cst_379 = arith.constant dense<0.000000e+00> : vector<4x64xf32>
    %369 = tpu.matmul %367, %368, %cst_379 {dimension_numbers = #tpu.dot_dimension_numbers<[1], [0], [0], [1], [0, 0, 1, 1], [], []>} : vector<4x64xbf16>, vector<64x64xbf16>, vector<4x64xf32> -> vector<4x64xf32>
    %370 = arith.addf %366, %369 : vector<4x64xf32>
    %c26_380 = arith.constant 26 : index
    %c0_381 = arith.constant 0 : index
    %371 = vector.load %arg13[%c26_380, %c0_381] : memref<32x64xbf16, #tpu.memory_space<vmem>>, vector<4x64xbf16>
    %c448_382 = arith.constant 448 : index
    %c0_383 = arith.constant 0 : index
    %372 = vector.load %arg5[%c448_382, %c0_383] : memref<576x64xbf16, #tpu.memory_space<vmem>>, vector<64x64xbf16>
    %cst_384 = arith.constant dense<0.000000e+00> : vector<4x64xf32>
    %373 = tpu.matmul %371, %372, %cst_384 {dimension_numbers = #tpu.dot_dimension_numbers<[1], [0], [0], [1], [0, 0, 1, 1], [], []>} : vector<4x64xbf16>, vector<64x64xbf16>, vector<4x64xf32> -> vector<4x64xf32>
    %374 = arith.addf %370, %373 : vector<4x64xf32>
    %c28 = arith.constant 28 : index
    %c0_385 = arith.constant 0 : index
    %375 = vector.load %arg13[%c28, %c0_385] : memref<32x64xbf16, #tpu.memory_space<vmem>>, vector<4x64xbf16>
    %c512_386 = arith.constant 512 : index
    %c0_387 = arith.constant 0 : index
    %376 = vector.load %arg5[%c512_386, %c0_387] : memref<576x64xbf16, #tpu.memory_space<vmem>>, vector<64x64xbf16>
    %cst_388 = arith.constant dense<0.000000e+00> : vector<4x64xf32>
    %377 = tpu.matmul %375, %376, %cst_388 {dimension_numbers = #tpu.dot_dimension_numbers<[1], [0], [0], [1], [0, 0, 1, 1], [], []>} : vector<4x64xbf16>, vector<64x64xbf16>, vector<4x64xf32> -> vector<4x64xf32>
    %378 = arith.addf %374, %377 : vector<4x64xf32>
    %c0_389 = arith.constant 0 : index
    %c0_390 = arith.constant 0 : index
    %379 = vector.load %arg6[%c0_389, %c0_390] : memref<1x64xf32, #tpu.memory_space<vmem>>, vector<1x64xf32>
    %380 = vector.broadcast %379 : vector<1x64xf32> to vector<4x64xf32>
    %381 = arith.addf %378, %380 : vector<4x64xf32>
    %cst_391 = arith.constant 0.000000e+00 : f32
    %382 = vector.broadcast %cst_391 : f32 to vector<4x64xf32>
    %383 = arith.maximumf %381, %382 : vector<4x64xf32>
    %384 = arith.truncf %383 : vector<4x64xf32> to vector<4x64xbf16>
    %c4_392 = arith.constant 4 : index
    %c0_393 = arith.constant 0 : index
    %385 = vector.load %arg14[%c4_392, %c0_393] : memref<8x64xbf16, #tpu.memory_space<vmem>>, vector<4x64xbf16>
    tpu.vector_store %arg14[%c4_392, %c0_393], %384 {strides = array<i32>} : memref<8x64xbf16, #tpu.memory_space<vmem>>, vector<4x64xbf16>,
    %cst_394 = arith.constant 0.000000e+00 : f32
    %386 = vector.broadcast %cst_394 : f32 to vector<2x512xf32>
    %c0_395 = arith.constant 0 : index
    %c0_396 = arith.constant 0 : index
    %387 = vector.load %arg14[%c0_395, %c0_396] : memref<8x64xbf16, #tpu.memory_space<vmem>>, vector<2x64xbf16>
    %c0_397 = arith.constant 0 : index
    %c0_398 = arith.constant 0 : index
    %388 = vector.load %arg7[%c0_397, %c0_398] : memref<256x512xbf16, #tpu.memory_space<vmem>>, vector<64x512xbf16>
    %cst_399 = arith.constant dense<0.000000e+00> : vector<2x512xf32>
    %389 = tpu.matmul %387, %388, %cst_399 {dimension_numbers = #tpu.dot_dimension_numbers<[1], [0], [0], [1], [0, 0, 1, 1], [], []>} : vector<2x64xbf16>, vector<64x512xbf16>, vector<2x512xf32> -> vector<2x512xf32>
    %390 = arith.addf %386, %389 : vector<2x512xf32>
    %c2_400 = arith.constant 2 : index
    %c0_401 = arith.constant 0 : index
    %391 = vector.load %arg14[%c2_400, %c0_401] : memref<8x64xbf16, #tpu.memory_space<vmem>>, vector<2x64xbf16>
    %c64_402 = arith.constant 64 : index
    %c0_403 = arith.constant 0 : index
    %392 = vector.load %arg7[%c64_402, %c0_403] : memref<256x512xbf16, #tpu.memory_space<vmem>>, vector<64x512xbf16>
    %cst_404 = arith.constant dense<0.000000e+00> : vector<2x512xf32>
    %393 = tpu.matmul %391, %392, %cst_404 {dimension_numbers = #tpu.dot_dimension_numbers<[1], [0], [0], [1], [0, 0, 1, 1], [], []>} : vector<2x64xbf16>, vector<64x512xbf16>, vector<2x512xf32> -> vector<2x512xf32>
    %394 = arith.addf %390, %393 : vector<2x512xf32>
    %c4_405 = arith.constant 4 : index
    %c0_406 = arith.constant 0 : index
    %395 = vector.load %arg14[%c4_405, %c0_406] : memref<8x64xbf16, #tpu.memory_space<vmem>>, vector<2x64xbf16>
    %c128_407 = arith.constant 128 : index
    %c0_408 = arith.constant 0 : index
    %396 = vector.load %arg7[%c128_407, %c0_408] : memref<256x512xbf16, #tpu.memory_space<vmem>>, vector<64x512xbf16>
    %cst_409 = arith.constant dense<0.000000e+00> : vector<2x512xf32>
    %397 = tpu.matmul %395, %396, %cst_409 {dimension_numbers = #tpu.dot_dimension_numbers<[1], [0], [0], [1], [0, 0, 1, 1], [], []>} : vector<2x64xbf16>, vector<64x512xbf16>, vector<2x512xf32> -> vector<2x512xf32>
    %398 = arith.addf %394, %397 : vector<2x512xf32>
    %c6 = arith.constant 6 : index
    %c0_410 = arith.constant 0 : index
    %399 = vector.load %arg14[%c6, %c0_410] : memref<8x64xbf16, #tpu.memory_space<vmem>>, vector<2x64xbf16>
    %c192_411 = arith.constant 192 : index
    %c0_412 = arith.constant 0 : index
    %400 = vector.load %arg7[%c192_411, %c0_412] : memref<256x512xbf16, #tpu.memory_space<vmem>>, vector<64x512xbf16>
    %cst_413 = arith.constant dense<0.000000e+00> : vector<2x512xf32>
    %401 = tpu.matmul %399, %400, %cst_413 {dimension_numbers = #tpu.dot_dimension_numbers<[1], [0], [0], [1], [0, 0, 1, 1], [], []>} : vector<2x64xbf16>, vector<64x512xbf16>, vector<2x512xf32> -> vector<2x512xf32>
    %402 = arith.addf %398, %401 : vector<2x512xf32>
    %c0_414 = arith.constant 0 : index
    %c0_415 = arith.constant 0 : index
    %403 = vector.load %arg8[%c0_414, %c0_415] : memref<1x512xf32, #tpu.memory_space<vmem>>, vector<1x512xf32>
    %404 = vector.broadcast %403 : vector<1x512xf32> to vector<2x512xf32>
    %405 = arith.addf %402, %404 : vector<2x512xf32>
    %cst_416 = arith.constant 0.000000e+00 : f32
    %406 = vector.broadcast %cst_416 : f32 to vector<2x512xf32>
    %407 = arith.maximumf %405, %406 : vector<2x512xf32>
    %408 = arith.truncf %407 : vector<2x512xf32> to vector<2x512xbf16>
    %c0_417 = arith.constant 0 : index
    %c0_418 = arith.constant 0 : index
    %409 = vector.load %arg9[%c0_417, %c0_418] : memref<512x128xbf16, #tpu.memory_space<vmem>>, vector<512x128xbf16>
    %cst_419 = arith.constant dense<0.000000e+00> : vector<2x128xf32>
    %410 = tpu.matmul %408, %409, %cst_419 {dimension_numbers = #tpu.dot_dimension_numbers<[1], [0], [0], [1], [0, 0, 1, 1], [], []>} : vector<2x512xbf16>, vector<512x128xbf16>, vector<2x128xf32> -> vector<2x128xf32>
    %c0_420 = arith.constant 0 : index
    %c0_421 = arith.constant 0 : index
    %411 = vector.load %arg10[%c0_420, %c0_421] : memref<1x128xf32, #tpu.memory_space<vmem>>, vector<1x128xf32>
    %412 = vector.broadcast %411 : vector<1x128xf32> to vector<2x128xf32>
    %413 = arith.addf %410, %412 : vector<2x128xf32>
    %c0_422 = arith.constant 0 : index
    %c0_423 = arith.constant 0 : index
    %414 = vector.load %arg11[%c0_422, %c0_423] : memref<2x128xf32, #tpu.memory_space<vmem>>, vector<2x128xf32>
    tpu.vector_store %arg11[%c0_422, %c0_423], %413 {strides = array<i32>} : memref<2x128xf32, #tpu.memory_space<vmem>>, vector<2x128xf32>,
    return
  }
}

</mosaic_0001>

<bundles_post_ra>
// kernel: dqn_forward.1
= control target key start
LH: loop header
LB: loop body
LE: loop exit
PB: predicated region body
PF: predicated region fallthrough
CT: control target
= control target key end

     0   :  { %v9316_v1 = vmov 0   ;;  %v9317_v52 = vmov 0.0   ;;  %vm9318_vm0 = vmmov 0   ;;  %s11081_s0 = inlined_call_operand.vmem [shape: bf16[288,256], index: 0, kind: input, shape index: {}]   ;;  %s11082_s1 = inlined_call_operand.vmem [shape: bf16[256,32], index: 1, kind: input, shape index: {}]   ;;  %s11083_s2 = inlined_call_operand.vmem [shape: f32[1,32], index: 2, kind: input, shape index: {}]   ;;  %s11084_s3 = inlined_call_operand.vmem [shape: bf16[512,64], index: 3, kind: input, shape index: {}]   ;;  %s11085_s4 = inlined_call_operand.vmem [shape: f32[1,64], index: 4, kind: input, shape index: {}]   ;;  %s11086_s5 = inlined_call_operand.vmem [shape: bf16[576,64], index: 5, kind: input, shape index: {}]   ;;  %s11087_s6 = inlined_call_operand.vmem [shape: f32[1,64], index: 6, kind: input, shape index: {}]   ;;  %s11088_s7 = inlined_call_operand.vmem [shape: bf16[256,512], index: 7, kind: input, shape index: {}]   ;;  %s11089_s8 = inlined_call_operand.vmem [shape: f32[1,512], index: 8, kind: input, shape index: {}]   ;;  %s11090_s9 = inlined_call_operand.vmem [shape: bf16[512,128], index: 9, kind: input, shape index: {}]   ;;  %s11091_s10 = inlined_call_operand.vmem [shape: f32[1,128], index: 10, kind: input, shape index: {}]   ;;  %s11092_s11 = inlined_call_operand.hbm [shape: f32[2,128], index: 11, kind: output, shape index: {}]  }
   0x1   :  { %v8891_v0 = vld [vmem:[%s11082_s1] sm:$0xff]   ;;  %391 = vmatprep.subr.bf16.mxu0 %v9316_v1  ;;  %v8892_v2 = vld [vmem:[%s11082_s1 + $0x8] sm:$0xff]   ;;  %v8893_v3 = vld [vmem:[%s11082_s1 + $0x10] sm:$0xff]   ;;  %8159 = vmatprep.subr.bf16.mxu1 %v9317_v52 }
   0x2   :  { %392 = vmatpush1.bf16.msra.mxu0 %v8891_v0  ;;  %v8894_v4 = vld [vmem:[%s11082_s1 + $0x18] sm:$0xff]   ;;  %v8895_v5 = vld [vmem:[%s11082_s1 + $0x20] sm:$0xff]   ;;  %v8896_v7 = vld [vmem:[%s11082_s1 + $0x28] sm:$0xff]   ;;  %8163 = vmatprep.mubr.msk.bf16.mxu1 %vm9318_vm0, %v9317_v52 }
   0x3   :  { %393 = vmatprep.subr.bf16.mxu0 %v9316_v1  ;;  %v8909_v6 = vld [vmem:[%s11081_s0 + $0x4] ss:$8 sps:$4 sm:$0xff]   ;;  %v8897_v8 = vld [vmem:[%s11082_s1 + $0x30] sm:$0xff]   ;;  %v8898_v9 = vld [vmem:[%s11082_s1 + $0x38] sm:$0xff]  }
   0x4   :  { %423 = vmatprep.mubr.bf16.mxu0 %v8909_v6  ;;  %v8899_v10 = vld [vmem:[%s11082_s1 + $0x40] sm:$0xff]   ;;  %v8900_v11 = vld [vmem:[%s11082_s1 + $0x48] sm:$0xff]   ;;  %v8901_v12 = vld [vmem:[%s11082_s1 + $0x50] sm:$0xff]  }
   0x5   :  { %v8902_v13 = vld [vmem:[%s11082_s1 + $0x58] sm:$0xff]   ;;  %v8903_v14 = vld [vmem:[%s11082_s1 + $0x60] sm:$0xff]   ;;  %v8904_v15 = vld [vmem:[%s11082_s1 + $0x68] sm:$0xff]  }
   0x6   :  { %394 = vmatpush1.bf16.msra.mxu0 %v8892_v2  ;;  %v8905_v16 = vld [vmem:[%s11082_s1 + $0x70] sm:$0xff]   ;;  %v8906_v17 = vld [vmem:[%s11082_s1 + $0x78] sm:$0xff]   ;;  %v8907_v18 = vld [vmem:[%s11081_s0] ss:$8 sps:$4 sm:$0xff]  }
   0x7   :  { %395 = vmatprep.subr.bf16.mxu0 %v9316_v1  ;;  %v8910_v19 = vld [vmem:[%s11081_s0 + $0x14] ss:$8 sps:$4 sm:$0xff]   ;;  %v8912_v20 = vld [vmem:[%s11081_s0 + $0x10] ss:$8 sps:$4 sm:$0xff]   ;;  %v8913_v21 = vld [vmem:[%s11081_s0 + $0x24] ss:$8 sps:$4 sm:$0xff]  }
   0x8   :  { %v8915_v22 = vld [vmem:[%s11081_s0 + $0x20] ss:$8 sps:$4 sm:$0xff]   ;;  %v8916_v23 = vld [vmem:[%s11081_s0 + $0x34] ss:$8 sps:$4 sm:$0xff]   ;;  %v8918_v24 = vld [vmem:[%s11081_s0 + $0x30] ss:$8 sps:$4 sm:$0xff]  }
   0x9   :  { %v8919_v25 = vld [vmem:[%s11081_s0 + $0x44] ss:$8 sps:$4 sm:$0xff]   ;;  %v8921_v26 = vld [vmem:[%s11081_s0 + $0x40] ss:$8 sps:$4 sm:$0xff]   ;;  %v8922_v27 = vld [vmem:[%s11081_s0 + $0x54] ss:$8 sps:$4 sm:$0xff]  }
   0xa   :  { %396 = vmatpush1.bf16.msra.mxu0 %v8893_v3  ;;  %v8924_v28 = vld [vmem:[%s11081_s0 + $0x50] ss:$8 sps:$4 sm:$0xff]   ;;  %v8925_v29 = vld [vmem:[%s11081_s0 + $0x64] ss:$8 sps:$4 sm:$0xff]   ;;  %v8927_v30 = vld [vmem:[%s11081_s0 + $0x60] ss:$8 sps:$4 sm:$0xff]  }
   0xb   :  { %397 = vmatprep.subr.bf16.mxu0 %v9316_v1  ;;  %v8928_v31 = vld [vmem:[%s11081_s0 + $0x74] ss:$8 sps:$4 sm:$0xff]   ;;  %v8930_v32 = vld [vmem:[%s11081_s0 + $0x70] ss:$8 sps:$4 sm:$0xff]   ;;  %v8931_v33 = vld [vmem:[%s11081_s0 + $0x84] ss:$8 sps:$4 sm:$0xff]  }
   0xc   :  { %v8933_v34 = vld [vmem:[%s11081_s0 + $0x80] ss:$8 sps:$4 sm:$0xff]   ;;  %v8934_v35 = vld [vmem:[%s11081_s0 + $0x94] ss:$8 sps:$4 sm:$0xff]   ;;  %v8936_v36 = vld [vmem:[%s11081_s0 + $0x90] ss:$8 sps:$4 sm:$0xff]  }
   0xd   :  { %v8937_v37 = vld [vmem:[%s11081_s0 + $0xa4] ss:$8 sps:$4 sm:$0xff]   ;;  %v8939_v38 = vld [vmem:[%s11081_s0 + $0xa0] ss:$8 sps:$4 sm:$0xff]   ;;  %v8940_v39 = vld [vmem:[%s11081_s0 + $0xb4] ss:$8 sps:$4 sm:$0xff]  }
   0xe   :  { %398 = vmatpush1.bf16.msra.mxu0 %v8894_v4  ;;  %v8942_v40 = vld [vmem:[%s11081_s0 + $0xb0] ss:$8 sps:$4 sm:$0xff]   ;;  %v8943_v41 = vld [vmem:[%s11081_s0 + $0xc4] ss:$8 sps:$4 sm:$0xff]   ;;  %v8945_v42 = vld [vmem:[%s11081_s0 + $0xc0] ss:$8 sps:$4 sm:$0xff]  }
   0xf   :  { %399 = vmatprep.subr.bf16.mxu0 %v9316_v1  ;;  %v8946_v43 = vld [vmem:[%s11081_s0 + $0xd4] ss:$8 sps:$4 sm:$0xff]   ;;  %v8948_v44 = vld [vmem:[%s11081_s0 + $0xd0] ss:$8 sps:$4 sm:$0xff]   ;;  %v8949_v45 = vld [vmem:[%s11081_s0 + $0xe4] ss:$8 sps:$4 sm:$0xff]  }
  0x10   :  { %v8951_v46 = vld [vmem:[%s11081_s0 + $0xe0] ss:$8 sps:$4 sm:$0xff]   ;;  %v8952_v47 = vld [vmem:[%s11081_s0 + $0xf4] ss:$8 sps:$4 sm:$0xff]   ;;  %v8954_v48 = vld [vmem:[%s11081_s0 + $0xf0] ss:$8 sps:$4 sm:$0xff]  }
  0x11   :  { %v8955_v49 = vld [vmem:[%s11081_s0 + $0x104] ss:$8 sps:$4 sm:$0xff]   ;;  %v8957_v50 = vld [vmem:[%s11081_s0 + $0x100] ss:$8 sps:$4 sm:$0xff]   ;;  %v8958_v51 = vld [vmem:[%s11084_s3 + $0x10] sm:$0xff]  }
  0x12   :  { %400 = vmatpush1.bf16.msra.mxu0 %v8895_v5  ;;  %8160 = vmatpush3.bf16.msra.mxu1 %v8958_v51  ;;  %v8959_v53 = vld [vmem:[%s11084_s3 + $0x18] sm:$0xff]   ;;  %v8965_v56 = vld [vmem:[%s11084_s3 + $0x90] sm:$0xff]  }
  0x13   :  { %401 = vmatprep.subr.bf16.mxu0 %v9316_v1  ;;  %8161 = vmatprep.subr.bf16.mxu1 %v9317_v52  ;;  %v8961_v54 = vld [vmem:[%s11081_s0 + $0x114] ss:$8 sps:$4 sm:$0xff]   ;;  %v8964_v55 = vld [vmem:[%s11081_s0 + $0x110] ss:$8 sps:$4 sm:$0xff]  }
  0x14   :  { %v8967_v57 = vld [vmem:[%s11084_s3 + $0x98] sm:$0xff]  }
  0x16   :  { %402 = vmatpush1.bf16.msra.mxu0 %v8896_v7  ;;  %8162 = vmatpush3.bf16.msra.mxu1 %v8959_v53 }
  0x17   :  { %403 = vmatprep.subr.bf16.mxu0 %v9316_v1  ;;  %8167 = vmatprep.subr.bf16.mxu1 %v9317_v52 }
  0x1a   :  { %404 = vmatpush1.bf16.msra.mxu0 %v8897_v8 }
  0x1b   :  { %405 = vmatprep.subr.bf16.mxu0 %v9316_v1 }
  0x1e   :  { %406 = vmatpush1.bf16.msra.mxu0 %v8898_v9 }
  0x1f   :  { %407 = vmatprep.subr.bf16.mxu0 %v9316_v1 }
  0x22   :  { %408 = vmatpush1.bf16.msra.mxu0 %v8899_v10 }
  0x23   :  { %409 = vmatprep.subr.bf16.mxu0 %v9316_v1 }
  0x26   :  { %410 = vmatpush1.bf16.msra.mxu0 %v8900_v11 }
  0x27   :  { %411 = vmatprep.subr.bf16.mxu0 %v9316_v1 }
  0x2a   :  { %412 = vmatpush1.bf16.msra.mxu0 %v8901_v12 }
  0x2b   :  { %413 = vmatprep.subr.bf16.mxu0 %v9316_v1 }
  0x2e   :  { %414 = vmatpush1.bf16.msra.mxu0 %v8902_v13 }
  0x2f   :  { %415 = vmatprep.subr.bf16.mxu0 %v9316_v1 }
  0x32   :  { %416 = vmatpush1.bf16.msra.mxu0 %v8903_v14 }
  0x33   :  { %417 = vmatprep.subr.bf16.mxu0 %v9316_v1 }
  0x36   :  { %418 = vmatpush1.bf16.msra.mxu0 %v8904_v15 }
  0x37   :  { %419 = vmatprep.subr.bf16.mxu0 %v9316_v1 }
  0x3a   :  { %420 = vmatpush1.bf16.msra.mxu0 %v8905_v16 }
  0x3b   :  { %421 = vmatprep.subr.bf16.mxu0 %v9316_v1 }
  0x3e   :  { %422 = vmatpush1.bf16.msra.mxu0 %v8906_v17 }
  0x3f   :  { %8359 = vmatprep.subr.bf16.mxu0 %v9317_v52 }
  0x41   :  { %424 = vmatmul.mubr.bf16.vlgmr.msra.gmra.mrb[0].mxu0 %v8907_v18 }
  0x42   :  { %431 = vmatprep.mubr.bf16.mxu0 %v8910_v19  ;;  %8360 = vmatpush3.bf16.msra.mxu0 %v8965_v56 }
  0x43   :  { %8361 = vmatprep.subr.bf16.mxu0 %v9317_v52 }
  0x46   :  { %8362 = vmatpush3.bf16.msra.mxu0 %v8967_v57 }
  0x47   :  { %8375 = vmatprep.subr.bf16.mxu0 %v9317_v52 }
  0x49   :  { %432 = vmatmul.mubr.bf16.gmra.mrb[4].mxu0 %v8912_v20 }
  0x4a   :  { %439 = vmatprep.mubr.bf16.mxu0 %v8913_v21 }
  0x51   :  { %440 = vmatmul.mubr.bf16.gmra.mrb[8].mxu0 %v8915_v22 }
  0x52   :  { %447 = vmatprep.mubr.bf16.mxu0 %v8916_v23 }
  0x59   :  { %448 = vmatmul.mubr.bf16.gmra.mrb[12].mxu0 %v8918_v24 }
  0x5a   :  { %455 = vmatprep.mubr.bf16.mxu0 %v8919_v25 }
  0x61   :  { %456 = vmatmul.mubr.bf16.gmra.mrb[16].mxu0 %v8921_v26 }
  0x62   :  { %463 = vmatprep.mubr.bf16.mxu0 %v8922_v27 }
  0x69   :  { %464 = vmatmul.mubr.bf16.gmra.mrb[20].mxu0 %v8924_v28 }
  0x6a   :  { %471 = vmatprep.mubr.bf16.mxu0 %v8925_v29 }
  0x71   :  { %472 = vmatmul.mubr.bf16.gmra.mrb[24].mxu0 %v8927_v30 }
  0x72   :  { %479 = vmatprep.mubr.bf16.mxu0 %v8928_v31 }
  0x79   :  { %480 = vmatmul.mubr.bf16.gmra.mrb[28].mxu0 %v8930_v32 }
  0x7a   :  { %487 = vmatprep.mubr.bf16.mxu0 %v8931_v33 }
  0x81   :  { %488 = vmatmul.mubr.bf16.gmra.mrb[32].mxu0 %v8933_v34 }
  0x82   :  { %495 = vmatprep.mubr.bf16.mxu0 %v8934_v35 }
  0x89   :  { %496 = vmatmul.mubr.bf16.gmra.mrb[36].mxu0 %v8936_v36 }
  0x8a   :  { %503 = vmatprep.mubr.bf16.mxu0 %v8937_v37 }
  0x91   :  { %504 = vmatmul.mubr.bf16.gmra.mrb[40].mxu0 %v8939_v38 }
  0x92   :  { %511 = vmatprep.mubr.bf16.mxu0 %v8940_v39 }
  0x99   :  { %512 = vmatmul.mubr.bf16.gmra.mrb[44].mxu0 %v8942_v40 }
  0x9a   :  { %519 = vmatprep.mubr.bf16.mxu0 %v8943_v41 }
  0xa1   :  { %520 = vmatmul.mubr.bf16.gmra.mrb[48].mxu0 %v8945_v42 }
  0xa2   :  { %527 = vmatprep.mubr.bf16.mxu0 %v8946_v43 }
  0xa9   :  { %528 = vmatmul.mubr.bf16.gmra.mrb[52].mxu0 %v8948_v44 }
  0xaa   :  { %535 = vmatprep.mubr.bf16.mxu0 %v8949_v45 }
  0xb1   :  { %536 = vmatmul.mubr.bf16.gmra.mrb[56].mxu0 %v8951_v46 }
  0xb2   :  { %543 = vmatprep.mubr.bf16.mxu0 %v8952_v47 }
  0xb9   :  { %544 = vmatmul.mubr.bf16.gmra.mrb[60].mxu0 %v8954_v48 }
  0xba   :  { %551 = vmatprep.mubr.bf16.mxu0 %v8955_v49 }
  0xc1   :  { %552 = vmatmul.mubr.bf16.gmra.mrb[64].mxu0 %v8957_v50 }
  0xc2   :  { %559 = vmatprep.mubr.bf16.mxu0 %v8961_v54 }
  0xc9   :  { %560 = vmatmul.mubr.bf16.gmra.mrb[68].mxu0 %v8964_v55 }
  0xca   :  { %8363 = vmatprep.mubr.msk.bf16.mxu0 %vm9318_vm0, %v9317_v52 }
  0xcb   :  { %16 = vsyncpa [#allocation6], 0  ;;  %v9577_v58 = vld [vmem:[%s11083_s2] ss:$0 sm:$0xff]  ;;  %vm622_vm1 = vcmask 261120   ;;  %vm834_vm2 = vcmask 1042432  }
  0xcc   :  { %v8960_v53 = vld [vmem:[%s11084_s3] sm:$0xff]   ;;  %vm1156_vm3 = vcmask 1041408   ;;  %vm1287_vm4 = vcmask 1040384   ;;  %vm1680_vm5 = vcmask 519168   ;;  %vm4844_vm6 = vcmask 523264   ;;  %s9319_s13 = smov [#allocation5]  }
  0xcd   :  { %vm2721_vm7 = vcmask 523268   ;;  %vm5516_vm8 = vcmask 517120   ;;  %s7374_s14 = sshll.u32 %s9319_s13, 4  ;;  %s7375_s14 = int_to_ptr.vmem [resolvable:$true] %s7374_s14 }
  0xce   :  { %s9292_s15 = scalar_lea.vmem %s7375_s14, 32  ;;  %p9297_p1 = scmp.lt.s32.totalorder %s7375_s14, %s7375_s14 }
  0xcf   :  { %p9293_p0 = scmp.ne.s32.totalorder %s7375_s14, %s9292_s15  ;;  %p9298_p2 = scmp.lt.s32.totalorder %s9292_s15, %s9292_s15 }
  0xd1   :  { %p9299_p3 = por %p9298_p2, %p9297_p1 }
  0xd3   :  { %p9300_p4 = pnand %p9299_p3, %p9293_p0 }
 0x114   :  { %v425_v59 = vpop.f32.mrb[0].mxu0 }
 0x115   :  { %v426_v60 = vadd.f32 %v9577_v58, %v425_v59  ;;  %v427_v61 = vpop.f32.mrb[1].mxu0 }
 0x116   :  { %v428_v62 = vpop.f32.mrb[2].mxu0  ;;  %v8963_v61 = vld [vmem:[%s11084_s3 + $0x8] sm:$0xff]  }
 0x117   :  { %v429_v63 = vadd.f32 %v9577_v58, %v428_v62  ;;  %v430_v0 = vpop.f32.mrb[3].mxu0  ;;  %v568_v2 = vmax.f32 %v426_v60, 0.0 }
 0x119   :  { %v569_v3 = vmax.f32 %v429_v63, 0.0 }
 0x11b   :  { %v604_v4 = vpack.c.bf16 %v569_v3, %v568_v2  ;;  %v8966_v3 = vld [vmem:[%s11084_s3 + $0x20] sm:$0xff]  }
 0x11c   :  { %v433_v5 = vpop.f32.mrb[4].mxu0 }
 0x11d   :  { %623 = vst.msk [vmem:[#allocation2] sm:$0xff] %vm622_vm1, %v604_v4  ;;  %v434_v6 = vadd.f32 %v9577_v58, %v433_v5  ;;  %v435_v7 = vpop.f32.mrb[5].mxu0 }
 0x11e   :  { %v436_v8 = vpop.f32.mrb[6].mxu0 }
 0x11f   :  { %v437_v9 = vadd.f32 %v9577_v58, %v436_v8  ;;  %v438_v10 = vpop.f32.mrb[7].mxu0  ;;  %v570_v11 = vmax.f32 %v434_v6, 0.0 }
 0x120   :  { %v8968_v10 = vld [vmem:[%s11084_s3 + $0x28] sm:$0xff]  }
 0x121   :  { %v571_v12 = vmax.f32 %v437_v9, 0.0 }
 0x123   :  { %v605_v13 = vpack.c.bf16 %v571_v12, %v570_v11 }
 0x124   :  { %v441_v14 = vpop.f32.mrb[8].mxu0  ;;  %v641_v7 = vld [vmem:[#allocation2] sm:$0xf] }
 0x125   :  { %624 = vst.msk [vmem:[#allocation2 + $0x8] sm:$0xff] %vm622_vm1, %v605_v13  ;;  %v442_v15 = vadd.f32 %v9577_v58, %v441_v14  ;;  %v443_v16 = vpop.f32.mrb[9].mxu0  ;;  %v8969_v13 = vld [vmem:[%s11084_s3 + $0xb0] sm:$0xff]   ;;  %v763_v14 = vld [vmem:[#allocation2] sm:$0x1e] }
 0x126   :  { %v444_v17 = vpop.f32.mrb[10].mxu0 }
 0x127   :  { %v445_v18 = vadd.f32 %v9577_v58, %v444_v17  ;;  %v446_v19 = vpop.f32.mrb[11].mxu0  ;;  %v572_v20 = vmax.f32 %v442_v15, 0.0 }
 0x129   :  { %v573_v21 = vmax.f32 %v445_v18, 0.0  ;;  %v8970_v18 = vld [vmem:[%s11084_s3 + $0x30] sm:$0xff]  }
 0x12b   :  { %v606_v22 = vpack.c.bf16 %v573_v21, %v572_v20  ;;  %v769_v21 = vrot.slane %v763_v14, 1 }
 0x12c   :  { %v449_v23 = vpop.f32.mrb[12].mxu0 }
 0x12d   :  { %625 = vst.msk [vmem:[#allocation2 + $0x10] sm:$0xff] %vm622_vm1, %v606_v22  ;;  %v450_v24 = vadd.f32 %v9577_v58, %v449_v23  ;;  %v451_v25 = vpop.f32.mrb[13].mxu0  ;;  %v8971_v23 = vld [vmem:[%s11084_s3 + $0xb8] sm:$0xff]  }
 0x12e   :  { %v452_v26 = vpop.f32.mrb[14].mxu0 }
 0x12f   :  { %v453_v27 = vadd.f32 %v9577_v58, %v452_v26  ;;  %v454_v28 = vpop.f32.mrb[15].mxu0  ;;  %v574_v29 = vmax.f32 %v450_v24, 0.0 }
 0x131   :  { %v575_v30 = vmax.f32 %v453_v27, 0.0  ;;  %v8972_v27 = vld [vmem:[%s11084_s3 + $0x38] sm:$0xff]  }
 0x133   :  { %v607_v31 = vpack.c.bf16 %v575_v30, %v574_v29 }
 0x134   :  { %v457_v32 = vpop.f32.mrb[16].mxu0 }
 0x135   :  { %626 = vst.msk [vmem:[#allocation2 + $0x18] sm:$0xff] %vm622_vm1, %v607_v31  ;;  %v458_v33 = vadd.f32 %v9577_v58, %v457_v32  ;;  %v459_v34 = vpop.f32.mrb[17].mxu0 }
 0x136   :  { %v460_v35 = vpop.f32.mrb[18].mxu0 }
 0x137   :  { %v461_v36 = vadd.f32 %v9577_v58, %v460_v35  ;;  %v462_v37 = vpop.f32.mrb[19].mxu0  ;;  %v576_v38 = vmax.f32 %v458_v33, 0.0  ;;  %v8979_v33 = vld [vmem:[%s11084_s3 + $0xd0] sm:$0xff]  }
 0x139   :  { %v577_v39 = vmax.f32 %v461_v36, 0.0 }
 0x13b   :  { %v608_v40 = vpack.c.bf16 %v577_v39, %v576_v38  ;;  %v8973_v38 = vld [vmem:[%s11084_s3 + $0x40] sm:$0xff]  }
 0x13c   :  { %v465_v41 = vpop.f32.mrb[20].mxu0 }
 0x13d   :  { %627 = vst.msk [vmem:[#allocation2 + $0x20] sm:$0xff] %vm622_vm1, %v608_v40  ;;  %v466_v42 = vadd.f32 %v9577_v58, %v465_v41  ;;  %v467_v43 = vpop.f32.mrb[21].mxu0 }
 0x13e   :  { %v468_v44 = vpop.f32.mrb[22].mxu0  ;;  %v8981_v43 = vld [vmem:[%s11084_s3 + $0xd8] sm:$0xff]  }
 0x13f   :  { %v469_v45 = vadd.f32 %v9577_v58, %v468_v44  ;;  %v470_v46 = vpop.f32.mrb[23].mxu0  ;;  %v578_v47 = vmax.f32 %v466_v42, 0.0 }
 0x140   :  { %v8974_v46 = vld [vmem:[%s11084_s3 + $0x48] sm:$0xff]  }
 0x141   :  { %v579_v48 = vmax.f32 %v469_v45, 0.0 }
 0x143   :  { %v609_v49 = vpack.c.bf16 %v579_v48, %v578_v47 }
 0x144   :  { %v473_v50 = vpop.f32.mrb[24].mxu0  ;;  %v646_v51 = vld [vmem:[#allocation2 + $0x20] sm:$0xf0] }
 0x145   :  { %628 = vst.msk [vmem:[#allocation2 + $0x28] sm:$0xff] %vm622_vm1, %v609_v49  ;;  %v474_v54 = vadd.f32 %v9577_v58, %v473_v50  ;;  %v475_v55 = vpop.f32.mrb[25].mxu0  ;;  %v652_v56 = vrot.slane %v646_v51, 4  ;;  %v826_v31 = vld [vmem:[#allocation2 + $0x20] sm:$0xe0] }
 0x146   :  { %v476_v57 = vpop.f32.mrb[26].mxu0  ;;  %v835_v37 = vrot.slane %v826_v31, 5 }
 0x147   :  { %v477_v59 = vadd.f32 %v9577_v58, %v476_v57  ;;  %v478_v60 = vpop.f32.mrb[27].mxu0  ;;  %8164 = vmatmul.mubr.msk.bf16.vlgmr.msra.gmra.mrb[0].mxu1 %vm622_vm1, %v652_v56  ;;  %v580_v62 = vmax.f32 %v474_v54, 0.0 }
 0x148   :  { %8168 = vmatpush3.bf16.msra.mxu1 %v8960_v53  ;;  %8171 = vmatprep.mubr.msk.bf16.mxu1 %vm9318_vm0, %v9317_v52  ;;  %v8975_v60 = vld [vmem:[%s11084_s3 + $0x50] sm:$0xff]  }
 0x149   :  { %v581_v63 = vmax.f32 %v477_v59, 0.0  ;;  %8169 = vmatprep.subr.bf16.mxu1 %v9317_v52 }
 0x14b   :  { %v610_v0 = vpack.c.bf16 %v581_v63, %v580_v62 }
 0x14c   :  { %v481_v2 = vpop.f32.mrb[28].mxu0  ;;  %8170 = vmatpush3.bf16.msra.mxu1 %v8963_v61  ;;  %v827_v26 = vld [vmem:[#allocation2 + $0x28] sm:$0x1] }
 0x14d   :  { %629 = vst.msk [vmem:[#allocation2 + $0x30] sm:$0xff] %vm622_vm1, %v610_v0  ;;  %v482_v4 = vadd.f32 %v9577_v58, %v481_v2  ;;  %v483_v5 = vpop.f32.mrb[29].mxu0  ;;  %8175 = vmatprep.subr.bf16.mxu1 %v9317_v52  ;;  %v836_v32 = vrot.slane %v827_v26, 5 }
 0x14e   :  { %v484_v6 = vpop.f32.mrb[30].mxu0 }
 0x14f   :  { %v485_v8 = vadd.f32 %v9577_v58, %v484_v6  ;;  %v486_v9 = vpop.f32.mrb[31].mxu0  ;;  %8172 = vmatmul.mubr.msk.bf16.vlgmr.msra.gmra.mrb[4].mxu1 %vm622_vm1, %v641_v7  ;;  %v582_v11 = vmax.f32 %v482_v4, 0.0  ;;  %v837_v42 = vsel %vm834_vm2, %v835_v37, %v836_v32  ;;  %v8976_v4 = vld [vmem:[%s11084_s3 + $0x58] sm:$0xff]  }
 0x150   :  { %8176 = vmatpush3.bf16.msra.mxu1 %v8966_v3  ;;  %8179 = vmatprep.mubr.msk.bf16.mxu1 %vm9318_vm0, %v9317_v52 }
 0x151   :  { %v583_v12 = vmax.f32 %v485_v8, 0.0  ;;  %8177 = vmatprep.subr.bf16.mxu1 %v9317_v52 }
 0x153   :  { %v611_v15 = vpack.c.bf16 %v583_v12, %v582_v11 }
 0x154   :  { %v489_v16 = vpop.f32.mrb[32].mxu0  ;;  %8178 = vmatpush3.bf16.msra.mxu1 %v8968_v10  ;;  %v2263_v17 = vld [vmem:[#allocation2 + $0x30] sm:$0xf] }
 0x155   :  { %630 = vst.msk [vmem:[#allocation2 + $0x38] sm:$0xff] %vm622_vm1, %v611_v15  ;;  %v490_v19 = vadd.f32 %v9577_v58, %v489_v16  ;;  %v491_v20 = vpop.f32.mrb[33].mxu0  ;;  %8364 = vmatmul.mubr.msk.bf16.vlgmr.msra.gmra.mrb[72].mxu0 %vm622_vm1, %v2263_v17  ;;  %8183 = vmatprep.subr.bf16.mxu1 %v9317_v52  ;;  %v2391_v28 = vld [vmem:[#allocation2 + $0x30] sm:$0x1e] }
 0x156   :  { %v492_v22 = vpop.f32.mrb[34].mxu0  ;;  %8376 = vmatpush3.bf16.msra.mxu0 %v8969_v13  ;;  %8379 = vmatprep.mubr.msk.bf16.mxu0 %vm9318_vm0, %v9317_v52  ;;  %v2397_v35 = vrot.slane %v2391_v28, 1 }
 0x157   :  { %v493_v24 = vadd.f32 %v9577_v58, %v492_v22  ;;  %v494_v25 = vpop.f32.mrb[35].mxu0  ;;  %8180 = vmatmul.mubr.msk.bf16.vlgmr.msra.gmra.mrb[8].mxu1 %vm622_vm1, %v769_v21  ;;  %8377 = vmatprep.subr.bf16.mxu0 %v9317_v52  ;;  %v584_v29 = vmax.f32 %v490_v19, 0.0 }
 0x158   :  { %8184 = vmatpush3.bf16.msra.mxu1 %v8970_v18  ;;  %8187 = vmatprep.mubr.msk.bf16.mxu1 %vm9318_vm0, %v9317_v52 }
 0x159   :  { %v585_v30 = vmax.f32 %v493_v24, 0.0  ;;  %8185 = vmatprep.subr.bf16.mxu1 %v9317_v52 }
 0x15a   :  { %8378 = vmatpush3.bf16.msra.mxu0 %v8971_v23 }
 0x15b   :  { %v612_v34 = vpack.c.bf16 %v585_v30, %v584_v29  ;;  %8391 = vmatprep.subr.bf16.mxu0 %v9317_v52 }
 0x15c   :  { %v497_v36 = vpop.f32.mrb[36].mxu0  ;;  %8186 = vmatpush3.bf16.msra.mxu1 %v8972_v27 }
 0x15d   :  { %631 = vst.msk [vmem:[#allocation2 + $0x40] sm:$0xff] %vm622_vm1, %v612_v34  ;;  %v498_v39 = vadd.f32 %v9577_v58, %v497_v36  ;;  %v499_v40 = vpop.f32.mrb[37].mxu0  ;;  %8380 = vmatmul.mubr.msk.bf16.vlgmr.msra.gmra.mrb[76].mxu0 %vm622_vm1, %v2397_v35  ;;  %8191 = vmatprep.subr.bf16.mxu1 %v9317_v52 }
 0x15e   :  { %v500_v41 = vpop.f32.mrb[38].mxu0  ;;  %8392 = vmatpush3.bf16.msra.mxu0 %v8979_v33  ;;  %8395 = vmatprep.mubr.msk.bf16.mxu0 %vm9318_vm0, %v9317_v52 }
 0x15f   :  { %v501_v44 = vadd.f32 %v9577_v58, %v500_v41  ;;  %v502_v45 = vpop.f32.mrb[39].mxu0  ;;  %8188 = vmatmul.mubr.msk.bf16.vlgmr.msra.gmra.mrb[12].mxu1 %vm622_vm1, %v837_v42  ;;  %8393 = vmatprep.subr.bf16.mxu0 %v9317_v52  ;;  %v586_v47 = vmax.f32 %v498_v39, 0.0  ;;  %v8977_v39 = vld [vmem:[%s11084_s3 + $0x60] sm:$0xff]  }
 0x160   :  { %8192 = vmatpush3.bf16.msra.mxu1 %v8973_v38  ;;  %8195 = vmatprep.mubr.msk.bf16.mxu1 %vm9318_vm0, %v9317_v52 }
 0x161   :  { %v587_v48 = vmax.f32 %v501_v44, 0.0  ;;  %8193 = vmatprep.subr.bf16.mxu1 %v9317_v52 }
 0x162   :  { %8394 = vmatpush3.bf16.msra.mxu0 %v8981_v43 }
 0x163   :  { %v613_v49 = vpack.c.bf16 %v587_v48, %v586_v47  ;;  %8407 = vmatprep.subr.bf16.mxu0 %v9317_v52  ;;  %v8978_v47 = vld [vmem:[%s11084_s3 + $0x68] sm:$0xff]  }
 0x164   :  { %v505_v50 = vpop.f32.mrb[40].mxu0  ;;  %8194 = vmatpush3.bf16.msra.mxu1 %v8974_v46 }
 0x165   :  { %632 = vst.msk [vmem:[#allocation2 + $0x48] sm:$0xff] %vm622_vm1, %v613_v49  ;;  %v506_v51 = vadd.f32 %v9577_v58, %v505_v50  ;;  %v507_v53 = vpop.f32.mrb[41].mxu0  ;;  %8199 = vmatprep.subr.bf16.mxu1 %v9317_v52 }
 0x166   :  { %v508_v54 = vpop.f32.mrb[42].mxu0 }
 0x167   :  { %v509_v55 = vadd.f32 %v9577_v58, %v508_v54  ;;  %v510_v56 = vpop.f32.mrb[43].mxu0  ;;  %v588_v57 = vmax.f32 %v506_v51, 0.0  ;;  %v8980_v51 = vld [vmem:[%s11084_s3 + $0x70] sm:$0xff]  }
 0x169   :  { %v589_v59 = vmax.f32 %v509_v55, 0.0 }
 0x16b   :  { %v614_v61 = vpack.c.bf16 %v589_v59, %v588_v57 }
 0x16c   :  { %v513_v62 = vpop.f32.mrb[44].mxu0  ;;  %v894_v63 = vld [vmem:[#allocation2 + $0x48] sm:$0xf] }
 0x16d   :  { %633 = vst.msk [vmem:[#allocation2 + $0x50] sm:$0xff] %vm622_vm1, %v614_v61  ;;  %v514_v0 = vadd.f32 %v9577_v58, %v513_v62  ;;  %v515_v2 = vpop.f32.mrb[45].mxu0  ;;  %8196 = vmatmul.mubr.msk.bf16.vlgmr.msra.gmra.mrb[16].mxu1 %vm622_vm1, %v894_v63  ;;  %v1018_v49 = vld [vmem:[#allocation2 + $0x48] sm:$0x1e]  ;;  %v8982_v63 = vld [vmem:[%s11084_s3 + $0x78] sm:$0xff]  }
 0x16e   :  { %v516_v3 = vpop.f32.mrb[46].mxu0  ;;  %8200 = vmatpush3.bf16.msra.mxu1 %v8975_v60  ;;  %8203 = vmatprep.mubr.msk.bf16.mxu1 %vm9318_vm0, %v9317_v52  ;;  %v1024_v54 = vrot.slane %v1018_v49, 1  ;;  %v8998_v49 = vld [vmem:[%s11084_s3 + $0xb8] sm:$0xff]  }
 0x16f   :  { %v517_v5 = vadd.f32 %v9577_v58, %v516_v3  ;;  %v518_v6 = vpop.f32.mrb[47].mxu0  ;;  %8201 = vmatprep.subr.bf16.mxu1 %v9317_v52  ;;  %v590_v7 = vmax.f32 %v514_v0, 0.0  ;;  %v8983_v3 = vld [vmem:[%s11084_s3 + $0xf0] sm:$0xff]  }
 0x171   :  { %v591_v8 = vmax.f32 %v517_v5, 0.0 }
 0x172   :  { %8202 = vmatpush3.bf16.msra.mxu1 %v8976_v4 }
 0x173   :  { %v615_v9 = vpack.c.bf16 %v591_v8, %v590_v7  ;;  %8207 = vmatprep.subr.bf16.mxu1 %v9317_v52  ;;  %v8984_v8 = vld [vmem:[%s11084_s3 + $0x80] sm:$0xff]  }
 0x174   :  { %v521_v10 = vpop.f32.mrb[48].mxu0 }
 0x175   :  { %634 = vst.msk [vmem:[#allocation2 + $0x58] sm:$0xff] %vm622_vm1, %v615_v9  ;;  %v522_v11 = vadd.f32 %v9577_v58, %v521_v10  ;;  %v523_v12 = vpop.f32.mrb[49].mxu0  ;;  %v8985_v10 = vld [vmem:[%s11084_s3 + $0xf8] sm:$0xff]  }
 0x176   :  { %v524_v13 = vpop.f32.mrb[50].mxu0  ;;  %v1149_v12 = vld [vmem:[#allocation2 + $0x8] sm:$0x3] }
 0x177   :  { %v525_v14 = vadd.f32 %v9577_v58, %v524_v13  ;;  %v526_v15 = vpop.f32.mrb[51].mxu0  ;;  %v592_v16 = vmax.f32 %v522_v11, 0.0  ;;  %v8986_v13 = vld [vmem:[%s11084_s3 + $0x88] sm:$0xff]  }
 0x178   :  { %v1148_v15 = vld [vmem:[#allocation2] sm:$0xc0] }
 0x179   :  { %v593_v17 = vmax.f32 %v525_v14, 0.0 }
 0x17b   :  { %v616_v18 = vpack.c.bf16 %v593_v17, %v592_v16  ;;  %v8987_v16 = vld [vmem:[%s11084_s3] sm:$0xff]   ;;  %v1158_v17 = vrot.slane %v1149_v12, 6 }
 0x17c   :  { %v529_v19 = vpop.f32.mrb[52].mxu0 }
 0x17d   :  { %635 = vst.msk [vmem:[#allocation2 + $0x60] sm:$0xff] %vm622_vm1, %v616_v18  ;;  %v530_v20 = vadd.f32 %v9577_v58, %v529_v19  ;;  %v531_v21 = vpop.f32.mrb[53].mxu0  ;;  %v1157_v18 = vrot.slane %v1148_v15, 6  ;;  %v8988_v19 = vld [vmem:[%s11084_s3 + $0x90] sm:$0xff]  }
 0x17e   :  { %v532_v22 = vpop.f32.mrb[54].mxu0 }
 0x17f   :  { %v533_v23 = vadd.f32 %v9577_v58, %v532_v22  ;;  %v534_v24 = vpop.f32.mrb[55].mxu0  ;;  %v594_v25 = vmax.f32 %v530_v20, 0.0  ;;  %v1159_v21 = vsel %vm1156_vm3, %v1157_v18, %v1158_v17  ;;  %v8989_v22 = vld [vmem:[%s11084_s3 + $0x8] sm:$0xff]   ;;  %v9009_v17 = vld [vmem:[%s11084_s3 + $0xb8] sm:$0xff]   ;;  %v3422_v18 = vld [vmem:[#allocation2 + $0x30] sm:$0x80] }
 0x181   :  { %v595_v26 = vmax.f32 %v533_v23, 0.0 }
 0x183   :  { %v617_v27 = vpack.c.bf16 %v595_v26, %v594_v25  ;;  %v8990_v26 = vld [vmem:[%s11084_s3 + $0x98] sm:$0xff]  }
 0x184   :  { %v537_v28 = vpop.f32.mrb[56].mxu0 }
 0x185   :  { %636 = vst.msk [vmem:[#allocation2 + $0x68] sm:$0xff] %vm622_vm1, %v617_v27  ;;  %v538_v29 = vadd.f32 %v9577_v58, %v537_v28  ;;  %v539_v30 = vpop.f32.mrb[57].mxu0  ;;  %v2723_v27 = vld [vmem:[#allocation2 + $0x8] sm:$0xf0] }
 0x186   :  { %v540_v31 = vpop.f32.mrb[58].mxu0 }
 0x187   :  { %v596_v32 = vmax.f32 %v538_v29, 0.0  ;;  %v541_v33 = vadd.f32 %v9577_v58, %v540_v31  ;;  %v542_v34 = vpop.f32.mrb[59].mxu0  ;;  %v8991_v31 = vld [vmem:[%s11084_s3 + $0x30] sm:$0xff]  }
 0x188   :  { %v2789_v34 = vrot.slane %v2723_v27, 4 }
 0x189   :  { %v597_v35 = vmax.f32 %v541_v33, 0.0 }
 0x18b   :  { %v618_v36 = vpack.c.bf16 %v597_v35, %v596_v32  ;;  %v1216_v32 = vld [vmem:[#allocation2 + $0x28] sm:$0x3c]  ;;  %v8992_v35 = vld [vmem:[%s11084_s3 + $0xa0] sm:$0xff]  }
 0x18c   :  { %v545_v37 = vpop.f32.mrb[60].mxu0  ;;  %v955_v38 = vld [vmem:[#allocation2 + $0x68] sm:$0xf0] }
 0x18d   :  { %637 = vst.msk [vmem:[#allocation2 + $0x70] sm:$0xff] %vm622_vm1, %v618_v36  ;;  %v546_v40 = vadd.f32 %v9577_v58, %v545_v37  ;;  %v547_v41 = vpop.f32.mrb[61].mxu0  ;;  %v961_v42 = vrot.slane %v955_v38, 4  ;;  %v1081_v0 = vld [vmem:[#allocation2 + $0x68] sm:$0xe0]  ;;  %v8993_v37 = vld [vmem:[%s11084_s3 + $0x38] sm:$0xff]  }
 0x18e   :  { %v548_v43 = vpop.f32.mrb[62].mxu0  ;;  %v1089_v7 = vrot.slane %v1081_v0, 5  ;;  %v1280_v38 = vld [vmem:[#allocation2 + $0x8] sm:$0x7]  ;;  %v1279_v41 = vld [vmem:[#allocation2] sm:$0x80] }
 0x18f   :  { %v598_v44 = vmax.f32 %v546_v40, 0.0  ;;  %v549_v45 = vadd.f32 %v9577_v58, %v548_v43  ;;  %8204 = vmatmul.mubr.msk.bf16.vlgmr.msra.gmra.mrb[20].mxu1 %vm622_vm1, %v961_v42  ;;  %v550_v46 = vpop.f32.mrb[63].mxu0  ;;  %v2912_v40 = vld [vmem:[#allocation2 + $0x30] sm:$0x1e]  ;;  %v1289_v43 = vrot.slane %v1280_v38, 7 }
 0x190   :  { %8208 = vmatpush3.bf16.msra.mxu1 %v8977_v39  ;;  %8211 = vmatprep.mubr.msk.bf16.mxu1 %vm9318_vm0, %v9317_v52  ;;  %v8994_v39 = vld [vmem:[%s11084_s3 + $0xa8] sm:$0xff]   ;;  %v8995_v42 = vld [vmem:[%s11084_s3 + $0x50] sm:$0xff]  }
 0x191   :  { %v599_v48 = vmax.f32 %v549_v45, 0.0  ;;  %8209 = vmatprep.subr.bf16.mxu1 %v9317_v52  ;;  %v1288_v45 = vrot.slane %v1279_v41, 7  ;;  %v8996_v46 = vld [vmem:[%s11084_s3 + $0xb0] sm:$0xff]  }
 0x193   :  { %v619_v50 = vpack.c.bf16 %v599_v48, %v598_v44  ;;  %v2918_v44 = vrot.slane %v2912_v40, 1  ;;  %v8997_v48 = vld [vmem:[%s11084_s3 + $0x58] sm:$0xff]   ;;  %v9016_v40 = vld [vmem:[%s11084_s3 + $0x10] sm:$0xff]  }
 0x194   :  { %8210 = vmatpush3.bf16.msra.mxu1 %v8978_v47  ;;  %v553_v53 = vpop.f32.mrb[64].mxu0  ;;  %v1082_v59 = vld [vmem:[#allocation2 + $0x70] sm:$0x1]  ;;  %v1290_v47 = vsel %vm1287_vm4, %v1288_v45, %v1289_v43  ;;  %v1477_v12 = vld [vmem:[#allocation2 + $0x70] sm:$0x3c]  ;;  %v9018_v45 = vld [vmem:[%s11084_s3 + $0x18] sm:$0xff]  }
 0x195   :  { %638 = vst.msk [vmem:[#allocation2 + $0x78] sm:$0xff] %vm622_vm1, %v619_v50  ;;  %8215 = vmatprep.subr.bf16.mxu1 %v9317_v52  ;;  %v554_v55 = vadd.f32 %v9577_v58, %v553_v53  ;;  %v555_v56 = vpop.f32.mrb[65].mxu0  ;;  %v1090_v4 = vrot.slane %v1082_v59, 5  ;;  %v1347_v53 = vld [vmem:[#allocation2 + $0x28] sm:$0x78]  ;;  %v1483_v15 = vrot.slane %v1477_v12, 2 }
 0x196   :  { %v556_v57 = vpop.f32.mrb[66].mxu0  ;;  %v9001_v56 = vld [vmem:[%s11084_s3 + $0x78] sm:$0xff]   ;;  %v1411_v59 = vld [vmem:[#allocation2 + $0x50] sm:$0x3] }
 0x197   :  { %8212 = vmatmul.mubr.msk.bf16.vlgmr.msra.gmra.mrb[24].mxu1 %vm622_vm1, %v1024_v54  ;;  %v600_v60 = vmax.f32 %v554_v55, 0.0  ;;  %v557_v61 = vadd.f32 %v9577_v58, %v556_v57  ;;  %v558_v62 = vpop.f32.mrb[67].mxu0  ;;  %v1091_v9 = vsel %vm834_vm2, %v1089_v7, %v1090_v4  ;;  %v9000_v54 = vld [vmem:[%s11084_s3 + $0xc0] sm:$0xff]   ;;  %v1353_v55 = vrot.slane %v1347_v53, 3  ;;  %v3293_v4 = vld [vmem:[#allocation2 + $0x38] sm:$0x3] }
 0x198   :  { %8216 = vmatpush3.bf16.msra.mxu1 %v8980_v51  ;;  %8219 = vmatprep.mubr.msk.bf16.mxu1 %vm9318_vm0, %v9317_v52  ;;  %v8999_v51 = vld [vmem:[%s11084_s3 + $0x70] sm:$0xff]   ;;  %v1410_v62 = vld [vmem:[#allocation2 + $0x48] sm:$0xc0]  ;;  %v1419_v0 = vrot.slane %v1411_v59, 6  ;;  %v1683_v53 = vld [vmem:[#allocation2 + $0x8] sm:$0x3] }
 0x199   :  { %8217 = vmatprep.subr.bf16.mxu1 %v9317_v52  ;;  %v601_v2 = vmax.f32 %v557_v61, 0.0  ;;  %v3292_v7 = vld [vmem:[#allocation2 + $0x30] sm:$0xc0]  ;;  %v1753_v59 = vrot.slane %v1683_v53, 6 }
 0x19b   :  { %v620_v5 = vpack.c.bf16 %v601_v2, %v600_v60  ;;  %v9002_v60 = vld [vmem:[%s11084_s3 + $0xc8] sm:$0xff]   ;;  %v1418_v2 = vrot.slane %v1410_v62, 6  ;;  %v9024_v62 = vld [vmem:[%s11084_s3 + $0x20] sm:$0xff]  }
 0x19c   :  { %8218 = vmatpush3.bf16.msra.mxu1 %v8982_v63  ;;  %v2517_v6 = vld [vmem:[#allocation2 + $0x78] sm:$0xf]  ;;  %v561_v20 = vpop.f32.mrb[68].mxu0  ;;  %v9003_v63 = vld [vmem:[%s11084_s3 + $0x90] sm:$0xff]   ;;  %v3682_v38 = vld [vmem:[#allocation2 + $0x78] sm:$0x80] }
 0x19d   :  { %8396 = vmatmul.mubr.msk.bf16.vlgmr.msra.gmra.mrb[80].mxu0 %vm622_vm1, %v2517_v6  ;;  %8223 = vmatprep.subr.bf16.mxu1 %v9317_v52  ;;  %639 = vst.msk [vmem:[#allocation2 + $0x80] sm:$0xff] %vm622_vm1, %v620_v5  ;;  %v2645_v11 = vld [vmem:[#allocation2 + $0x78] sm:$0x1e]  ;;  %v562_v23 = vadd.f32 %v9577_v58, %v561_v20  ;;  %v563_v24 = vpop.f32.mrb[69].mxu0  ;;  %v1420_v5 = vsel %vm1156_vm3, %v1418_v2, %v1419_v0  ;;  %v9010_v20 = vld [vmem:[%s11084_s3 + $0xe8] sm:$0xff]   ;;  %v3690_v43 = vrot.slane %v3682_v38, 7 }
 0x19e   :  { %8408 = vmatpush3.bf16.msra.mxu0 %v8983_v3  ;;  %8411 = vmatprep.mubr.msk.bf16.mxu0 %vm9318_vm0, %v9317_v52  ;;  %v2651_v14 = vrot.slane %v2645_v11, 1  ;;  %v564_v25 = vpop.f32.mrb[70].mxu0  ;;  %v3038_v50 = vld [vmem:[#allocation2 + $0x78] sm:$0xf]  ;;  %v9004_v3 = vld [vmem:[%s11084_s3 + $0xd0] sm:$0xff]  }
 0x19f   :  { %8220 = vmatmul.mubr.msk.bf16.vlgmr.msra.gmra.mrb[28].mxu1 %vm622_vm1, %v1091_v9  ;;  %8409 = vmatprep.subr.bf16.mxu0 %v9317_v52  ;;  %v602_v28 = vmax.f32 %v562_v23, 0.0  ;;  %v565_v29 = vadd.f32 %v9577_v58, %v564_v25  ;;  %v566_v30 = vpop.f32.mrb[71].mxu0  ;;  %v1222_v58 = vrot.slane %v1216_v32, 2  ;;  %v3166_v57 = vld [vmem:[#allocation2 + $0x78] sm:$0x1e]  ;;  %v3301_v9 = vrot.slane %v3293_v4, 6 }
 0x1a0   :  { %8224 = vmatpush3.bf16.msra.mxu1 %v8984_v8  ;;  %8227 = vmatprep.mubr.msk.bf16.mxu1 %vm9318_vm0, %v9317_v52  ;;  %v3172_v61 = vrot.slane %v3166_v57, 1  ;;  %v9005_v6 = vld [vmem:[%s11084_s3 + $0x98] sm:$0xff]   ;;  %v9007_v11 = vld [vmem:[%s11084_s3 + $0xb0] sm:$0xff]   ;;  %v3430_v23 = vrot.slane %v3422_v18, 7  ;;  %v1811_v4 = vld [vmem:[#allocation2 + $0x8] sm:$0x7] }
 0x1a1   :  { %8225 = vmatprep.subr.bf16.mxu1 %v9317_v52  ;;  %v603_v33 = vmax.f32 %v565_v29, 0.0  ;;  %v9006_v8 = vld [vmem:[%s11084_s3 + $0xd8] sm:$0xff]   ;;  %v9011_v24 = vld [vmem:[%s11084_s3 + $0xd0] sm:$0xff]  }
 0x1a2   :  { %8410 = vmatpush3.bf16.msra.mxu0 %v8985_v10  ;;  %v3300_v10 = vrot.slane %v3292_v7, 6  ;;  %v9012_v30 = vld [vmem:[%s11084_s3 + $0xf0] sm:$0xff]   ;;  %v9013_v32 = vld [vmem:[%s11084_s3 + $0xd8] sm:$0xff]   ;;  %v1810_v7 = vld [vmem:[#allocation2] sm:$0x80] }
 0x1a3   :  { %8423 = vmatprep.subr.bf16.mxu0 %v9317_v52  ;;  %v621_v36 = vpack.c.bf16 %v603_v33, %v602_v28  ;;  %v9023_v57 = vld [vmem:[%s11084_s3 + $0x30] sm:$0xff]   ;;  %v9025_v2 = vld [vmem:[%s11084_s3 + $0x38] sm:$0xff]  }
 0x1a4   :  { %8226 = vmatpush3.bf16.msra.mxu1 %v8986_v13  ;;  %v3302_v13 = vsel %vm1156_vm3, %v3300_v10, %v3301_v9  ;;  %v3553_v27 = vld [vmem:[#allocation2 + $0x80] sm:$0x3]  ;;  %v9027_v9 = vld [vmem:[%s11084_s3 + $0x50] sm:$0xff]   ;;  %v1819_v10 = vrot.slane %v1811_v4, 7 }
 0x1a5   :  { %8412 = vmatmul.mubr.msk.bf16.vlgmr.msra.gmra.mrb[84].mxu0 %vm622_vm1, %v2651_v14  ;;  %8231 = vmatprep.subr.bf16.mxu1 %v9317_v52  ;;  %640 = vst.msk [vmem:[#allocation2 + $0x88] sm:$0xff] %vm622_vm1, %v621_v36  ;;  %v9008_v14 = vld [vmem:[%s11084_s3 + $0xe0] sm:$0xff]  }
 0x1a6   :  { %8424 = vmatpush3.bf16.msra.mxu0 %v8987_v16  ;;  %8427 = vmatprep.mubr.msk.bf16.mxu0 %vm9318_vm0, %v9317_v52  ;;  %v3423_v16 = vld [vmem:[#allocation2 + $0x38] sm:$0x7]  ;;  %v4082_v12 = vld [vmem:[#allocation2 + $0x80] sm:$0x3] }
 0x1a7   :  { %8228 = vmatmul.mubr.msk.bf16.vlgmr.msra.gmra.mrb[32].mxu1 %vm622_vm1, %v1159_v21  ;;  %8425 = vmatprep.subr.bf16.mxu0 %v9317_v52  ;;  %v3431_v21 = vrot.slane %v3423_v16, 7 }
 0x1a8   :  { %8232 = vmatpush3.bf16.msra.mxu1 %v8988_v19  ;;  %8235 = vmatprep.mubr.msk.bf16.mxu1 %vm9318_vm0, %v9317_v52  ;;  %v1541_v19 = vld [vmem:[#allocation2 + $0x50] sm:$0x7] }
 0x1a9   :  { %8233 = vmatprep.subr.bf16.mxu1 %v9317_v52  ;;  %v1549_v25 = vrot.slane %v1541_v19, 7  ;;  %v3432_v28 = vsel %vm1287_vm4, %v3430_v23, %v3431_v21  ;;  %v4090_v19 = vrot.slane %v4082_v12, 6  ;;  %v1877_v23 = vld [vmem:[#allocation2 + $0x28] sm:$0x78] }
 0x1aa   :  { %8426 = vmatpush3.bf16.msra.mxu0 %v8989_v22  ;;  %v1540_v22 = vld [vmem:[#allocation2 + $0x48] sm:$0x80] }
 0x1ab   :  { %8439 = vmatprep.subr.bf16.mxu0 %v9317_v52  ;;  %v1548_v29 = vrot.slane %v1540_v22, 7  ;;  %v9031_v22 = vld [vmem:[%s11084_s3 + $0x70] sm:$0xff]  }
 0x1ac   :  { %8234 = vmatpush3.bf16.msra.mxu1 %v8990_v26  ;;  %v3552_v26 = vld [vmem:[#allocation2 + $0x78] sm:$0xc0] }
 0x1ad   :  { %8428 = vmatmul.mubr.msk.bf16.vlgmr.msra.gmra.mrb[88].mxu0 %vm622_vm1, %v2789_v34  ;;  %8239 = vmatprep.subr.bf16.mxu1 %v9317_v52  ;;  %v3560_v33 = vrot.slane %v3552_v26, 6  ;;  %v3561_v34 = vrot.slane %v3553_v27, 6  ;;  %v9032_v26 = vld [vmem:[%s11084_s3 + $0x40] sm:$0xff]   ;;  %v1883_v27 = vrot.slane %v1877_v23, 3 }
 0x1ae   :  { %8440 = vmatpush3.bf16.msra.mxu0 %v8991_v31  ;;  %8443 = vmatprep.mubr.msk.bf16.mxu0 %vm9318_vm0, %v9317_v52  ;;  %v1550_v31 = vsel %vm1287_vm4, %v1548_v29, %v1549_v25  ;;  %v4212_v25 = vld [vmem:[#allocation2 + $0x80] sm:$0x7] }
 0x1af   :  { %8236 = vmatmul.mubr.msk.bf16.vlgmr.msra.gmra.mrb[36].mxu1 %vm622_vm1, %v1222_v58  ;;  %8441 = vmatprep.subr.bf16.mxu0 %v9317_v52  ;;  %v3562_v36 = vsel %vm1156_vm3, %v3560_v33, %v3561_v34  ;;  %v9015_v58 = vld [vmem:[%s11084_s3 + $0xf0] sm:$0xff]   ;;  %v1940_v33 = vld [vmem:[#allocation2 + $0x48] sm:$0xc0] }
 0x1b0   :  { %8240 = vmatpush3.bf16.msra.mxu1 %v8992_v35  ;;  %8243 = vmatprep.mubr.msk.bf16.mxu1 %vm9318_vm0, %v9317_v52  ;;  %v9014_v35 = vld [vmem:[%s11084_s3 + $0xf8] sm:$0xff]  }
 0x1b1   :  { %8241 = vmatprep.subr.bf16.mxu1 %v9317_v52 }
 0x1b2   :  { %8442 = vmatpush3.bf16.msra.mxu0 %v8993_v37  ;;  %v1607_v37 = vld [vmem:[#allocation2 + $0x70] sm:$0x78] }
 0x1b3   :  { %8455 = vmatprep.subr.bf16.mxu0 %v9317_v52  ;;  %v1613_v41 = vrot.slane %v1607_v37, 3  ;;  %v9036_v37 = vld [vmem:[%s11084_s3 + $0x50] sm:$0xff]  }
 0x1b4   :  { %8242 = vmatpush3.bf16.msra.mxu1 %v8994_v39  ;;  %v3683_v39 = vld [vmem:[#allocation2 + $0x80] sm:$0x7] }
 0x1b5   :  { %8444 = vmatmul.mubr.msk.bf16.vlgmr.msra.gmra.mrb[92].mxu0 %vm622_vm1, %v2918_v44  ;;  %8247 = vmatprep.subr.bf16.mxu1 %v9317_v52  ;;  %v3691_v44 = vrot.slane %v3683_v39, 7  ;;  %v9037_v39 = vld [vmem:[%s11084_s3 + $0x98] sm:$0xff]  }
 0x1b6   :  { %8456 = vmatpush3.bf16.msra.mxu0 %v8995_v42  ;;  %8459 = vmatprep.mubr.msk.bf16.mxu0 %vm9318_vm0, %v9317_v52  ;;  %v9017_v42 = vld [vmem:[%s11084_s3 + $0xf8] sm:$0xff]  }
 0x1b7   :  { %8244 = vmatmul.mubr.msk.bf16.vlgmr.msra.gmra.mrb[40].mxu1 %vm622_vm1, %v1290_v47  ;;  %8457 = vmatprep.subr.bf16.mxu0 %v9317_v52  ;;  %v9019_v47 = vld [vmem:[%s11084_s3] sm:$0xff]  }
 0x1b8   :  { %8248 = vmatpush3.bf16.msra.mxu1 %v8996_v46  ;;  %8251 = vmatprep.mubr.msk.bf16.mxu1 %vm9318_vm0, %v9317_v52  ;;  %v3692_v46 = vsel %vm1287_vm4, %v3690_v43, %v3691_v44  ;;  %v2007_v43 = vld [vmem:[#allocation2 + $0x70] sm:$0x3c] }
 0x1b9   :  { %8249 = vmatprep.subr.bf16.mxu1 %v9317_v52 }
 0x1ba   :  { %8458 = vmatpush3.bf16.msra.mxu0 %v8997_v48  ;;  %v1688_v48 = vld [vmem:[#allocation2 + $0x28] sm:$0x3c] }
 0x1bb   :  { %8471 = vmatprep.subr.bf16.mxu0 %v9317_v52 }
 0x1bc   :  { %8250 = vmatpush3.bf16.msra.mxu1 %v8998_v49  ;;  %v9020_v49 = vld [vmem:[%s11084_s3] sm:$0xff]  }
 0x1bd   :  { %8460 = vmatmul.mubr.msk.bf16.vlgmr.msra.gmra.mrb[96].mxu0 %vm622_vm1, %v3038_v50  ;;  %8255 = vmatprep.subr.bf16.mxu1 %v9317_v52  ;;  %v1694_v50 = vrot.slane %v1688_v48, 2  ;;  %v9041_v48 = vld [vmem:[%s11084_s3 + $0xb8] sm:$0xff]  }
 0x1be   :  { %8472 = vmatpush3.bf16.msra.mxu0 %v8999_v51  ;;  %8475 = vmatprep.mubr.msk.bf16.mxu0 %vm9318_vm0, %v9317_v52  ;;  %v9021_v51 = vld [vmem:[%s11084_s3 + $0x8] sm:$0xff]  }
 0x1bf   :  { %8252 = vmatmul.mubr.msk.bf16.vlgmr.msra.gmra.mrb[44].mxu1 %vm622_vm1, %v1353_v55  ;;  %8473 = vmatprep.subr.bf16.mxu0 %v9317_v52  ;;  %v3760_v55 = vld [vmem:[#allocation2 + $0x10] sm:$0x3c] }
 0x1c0   :  { %8256 = vmatpush3.bf16.msra.mxu1 %v9000_v54  ;;  %8259 = vmatprep.mubr.msk.bf16.mxu1 %vm9318_vm0, %v9317_v52  ;;  %v9022_v54 = vld [vmem:[%s11084_s3 + $0x8] sm:$0xff]  }
 0x1c1   :  { %8257 = vmatprep.subr.bf16.mxu1 %v9317_v52 }
 0x1c2   :  { %8474 = vmatpush3.bf16.msra.mxu0 %v9001_v56  ;;  %v1682_v56 = vld [vmem:[#allocation2] sm:$0xc0] }
 0x1c3   :  { %8487 = vmatprep.subr.bf16.mxu0 %v9317_v52 }
 0x1c4   :  { %8258 = vmatpush3.bf16.msra.mxu1 %v9002_v60  ;;  %v3832_v60 = vrot.slane %v3760_v55, 2 }
 0x1c5   :  { %8476 = vmatmul.mubr.msk.bf16.vlgmr.msra.gmra.mrb[100].mxu0 %vm622_vm1, %v3172_v61  ;;  %8263 = vmatprep.subr.bf16.mxu1 %v9317_v52  ;;  %v1752_v61 = vrot.slane %v1682_v56, 6 }
 0x1c6   :  { %8488 = vmatpush3.bf16.msra.mxu0 %v9003_v63  ;;  %8491 = vmatprep.mubr.msk.bf16.mxu0 %vm9318_vm0, %v9317_v52  ;;  %v3952_v63 = vld [vmem:[#allocation2 + $0x38] sm:$0x7] }
 0x1c7   :  { %8260 = vmatmul.mubr.msk.bf16.vlgmr.msra.gmra.mrb[48].mxu1 %vm622_vm1, %v1420_v5  ;;  %8489 = vmatprep.subr.bf16.mxu0 %v9317_v52  ;;  %v1754_v0 = vsel %vm1156_vm3, %v1752_v61, %v1753_v59  ;;  %v9026_v5 = vld [vmem:[%s11084_s3 + $0x28] sm:$0xff]   ;;  %v9043_v61 = vld [vmem:[%s11084_s3 + $0x70] sm:$0xff]  }
 0x1c8   :  { %8264 = vmatpush3.bf16.msra.mxu1 %v9004_v3  ;;  %8267 = vmatprep.mubr.msk.bf16.mxu1 %vm9318_vm0, %v9317_v52  ;;  %v3951_v3 = vld [vmem:[#allocation2 + $0x30] sm:$0x80] }
 0x1c9   :  { %8265 = vmatprep.subr.bf16.mxu1 %v9317_v52 }
 0x1ca   :  { %8490 = vmatpush3.bf16.msra.mxu0 %v9005_v6  ;;  %v3960_v6 = vrot.slane %v3952_v63, 7  ;;  %v9065_v63 = vld [vmem:[%s11084_s3 + $0xd8] sm:$0xff]  }
 0x1cb   :  { %8503 = vmatprep.subr.bf16.mxu0 %v9317_v52 }
 0x1cc   :  { %8266 = vmatpush3.bf16.msra.mxu1 %v9006_v8  ;;  %v3959_v8 = vrot.slane %v3951_v3, 7 }
 0x1cd   :  { %8492 = vmatmul.mubr.msk.bf16.vlgmr.msra.gmra.mrb[104].mxu0 %vm622_vm1, %v3302_v13  ;;  %8271 = vmatprep.subr.bf16.mxu1 %v9317_v52 }
 0x1ce   :  { %8504 = vmatpush3.bf16.msra.mxu0 %v9007_v11  ;;  %8507 = vmatprep.mubr.msk.bf16.mxu0 %vm9318_vm0, %v9317_v52  ;;  %v4081_v11 = vld [vmem:[#allocation2 + $0x78] sm:$0xc0]  ;;  %v3961_v13 = vsel %vm1287_vm4, %v3959_v8, %v3960_v6  ;;  %v9067_v6 = vld [vmem:[%s11084_s3 + $0xf0] sm:$0xff]   ;;  %v4719_v8 = vld [vmem:[#allocation2 + $0x80] sm:$0xe0] }
 0x1cf   :  { %8268 = vmatmul.mubr.msk.bf16.vlgmr.msra.gmra.mrb[52].mxu1 %vm622_vm1, %v1483_v15  ;;  %8505 = vmatprep.subr.bf16.mxu0 %v9317_v52  ;;  %v9028_v15 = vld [vmem:[%s11084_s3 + $0x30] sm:$0xff]   ;;  %v4089_v18 = vrot.slane %v4081_v11, 6  ;;  %v9045_v11 = vld [vmem:[%s11084_s3 + $0x80] sm:$0xff]  }
 0x1d0   :  { %8272 = vmatpush3.bf16.msra.mxu1 %v9008_v14  ;;  %8275 = vmatprep.mubr.msk.bf16.mxu1 %vm9318_vm0, %v9317_v52  ;;  %v1818_v14 = vrot.slane %v1810_v7, 7 }
 0x1d1   :  { %8273 = vmatprep.subr.bf16.mxu1 %v9317_v52  ;;  %v4091_v21 = vsel %vm1156_vm3, %v4089_v18, %v4090_v19  ;;  %v2200_v19 = vld [vmem:[#allocation2 + $0x8] sm:$0xf0] }
 0x1d2   :  { %8506 = vmatpush3.bf16.msra.mxu0 %v9009_v17  ;;  %v1820_v16 = vsel %vm1287_vm4, %v1818_v14, %v1819_v10  ;;  %v9029_v17 = vld [vmem:[%s11084_s3 + $0x58] sm:$0xff]  }
 0x1d3   :  { %8519 = vmatprep.subr.bf16.mxu0 %v9317_v52  ;;  %v9069_v14 = vld [vmem:[%s11084_s3 + $0xf8] sm:$0xff]  }
 0x1d4   :  { %8274 = vmatpush3.bf16.msra.mxu1 %v9010_v20  ;;  %v9030_v20 = vld [vmem:[%s11084_s3 + $0x38] sm:$0xff]  }
 0x1d5   :  { %8508 = vmatmul.mubr.msk.bf16.vlgmr.msra.gmra.mrb[108].mxu0 %vm622_vm1, %v3432_v28  ;;  %8279 = vmatprep.subr.bf16.mxu1 %v9317_v52  ;;  %v9033_v28 = vld [vmem:[%s11084_s3 + $0x78] sm:$0xff]  }
 0x1d6   :  { %8520 = vmatpush3.bf16.msra.mxu0 %v9011_v24  ;;  %8523 = vmatprep.mubr.msk.bf16.mxu0 %vm9318_vm0, %v9317_v52  ;;  %v4211_v24 = vld [vmem:[#allocation2 + $0x78] sm:$0x80] }
 0x1d7   :  { %8276 = vmatmul.mubr.msk.bf16.vlgmr.msra.gmra.mrb[56].mxu1 %vm622_vm1, %v1550_v31  ;;  %8521 = vmatprep.subr.bf16.mxu0 %v9317_v52  ;;  %v4219_v29 = vrot.slane %v4211_v24, 7  ;;  %v1941_v31 = vld [vmem:[#allocation2 + $0x50] sm:$0x3]  ;;  %v9047_v24 = vld [vmem:[%s11084_s3 + $0xa0] sm:$0xff]  }
 0x1d8   :  { %8280 = vmatpush3.bf16.msra.mxu1 %v9012_v30  ;;  %8283 = vmatprep.mubr.msk.bf16.mxu1 %vm9318_vm0, %v9317_v52  ;;  %v4220_v30 = vrot.slane %v4212_v25, 7 }
 0x1d9   :  { %8281 = vmatprep.subr.bf16.mxu1 %v9317_v52 }
 0x1da   :  { %8522 = vmatpush3.bf16.msra.mxu0 %v9013_v32  ;;  %v9034_v32 = vld [vmem:[%s11084_s3 + $0x48] sm:$0xff]   ;;  %v4221_v34 = vsel %vm1287_vm4, %v4219_v29, %v4220_v30 }
 0x1db   :  { %8535 = vmatprep.subr.bf16.mxu0 %v9317_v52  ;;  %v9048_v29 = vld [vmem:[%s11084_s3 + $0xa8] sm:$0xff]  }
 0x1dc   :  { %8282 = vmatpush3.bf16.msra.mxu1 %v9014_v35  ;;  %v9035_v35 = vld [vmem:[%s11084_s3 + $0x90] sm:$0xff]  }
 0x1dd   :  { %8524 = vmatmul.mubr.msk.bf16.vlgmr.msra.gmra.mrb[112].mxu0 %vm622_vm1, %v3562_v36  ;;  %8287 = vmatprep.subr.bf16.mxu1 %v9317_v52  ;;  %v1949_v36 = vrot.slane %v1941_v31, 6  ;;  %v2324_v31 = vld [vmem:[#allocation2 + $0x8] sm:$0xe0] }
 0x1de   :  { %8536 = vmatpush3.bf16.msra.mxu0 %v9015_v58  ;;  %8539 = vmatprep.mubr.msk.bf16.mxu0 %vm9318_vm0, %v9317_v52  ;;  %v1948_v58 = vrot.slane %v1940_v33, 6 }
 0x1df   :  { %8284 = vmatmul.mubr.msk.bf16.vlgmr.msra.gmra.mrb[60].mxu1 %vm622_vm1, %v1613_v41  ;;  %8537 = vmatprep.subr.bf16.mxu0 %v9317_v52  ;;  %v4339_v41 = vld [vmem:[#allocation2 + $0x38] sm:$0xf0] }
 0x1e0   :  { %8288 = vmatpush3.bf16.msra.mxu1 %v9016_v40  ;;  %8291 = vmatprep.mubr.msk.bf16.mxu1 %vm9318_vm0, %v9317_v52  ;;  %v1950_v38 = vsel %vm1156_vm3, %v1948_v58, %v1949_v36  ;;  %v9038_v40 = vld [vmem:[%s11084_s3 + $0x58] sm:$0xff]   ;;  %v4345_v44 = vrot.slane %v4339_v41, 4 }
 0x1e1   :  { %8289 = vmatprep.subr.bf16.mxu1 %v9317_v52 }
 0x1e2   :  { %8538 = vmatpush3.bf16.msra.mxu0 %v9017_v42  ;;  %v9039_v42 = vld [vmem:[%s11084_s3 + $0xb0] sm:$0xff]  }
 0x1e3   :  { %8551 = vmatprep.subr.bf16.mxu0 %v9317_v52 }
 0x1e4   :  { %8290 = vmatpush3.bf16.msra.mxu1 %v9018_v45  ;;  %v9040_v45 = vld [vmem:[%s11084_s3 + $0x60] sm:$0xff]  }
 0x1e5   :  { %8540 = vmatmul.mubr.msk.bf16.vlgmr.msra.gmra.mrb[116].mxu0 %vm622_vm1, %v3692_v46  ;;  %8295 = vmatprep.subr.bf16.mxu1 %v9317_v52  ;;  %v2013_v46 = vrot.slane %v2007_v43, 2  ;;  %v9050_v43 = vld [vmem:[%s11084_s3 + $0xc8] sm:$0xff]  }
 0x1e6   :  { %8552 = vmatpush3.bf16.msra.mxu0 %v9019_v47  ;;  %8555 = vmatprep.mubr.msk.bf16.mxu0 %vm9318_vm0, %v9317_v52  ;;  %v4466_v47 = vld [vmem:[#allocation2 + $0x40] sm:$0x1] }
 0x1e7   :  { %8292 = vmatmul.mubr.msk.bf16.vlgmr.msra.gmra.mrb[64].mxu1 %vm622_vm1, %v1694_v50  ;;  %8553 = vmatprep.subr.bf16.mxu0 %v9317_v52  ;;  %v2071_v50 = vld [vmem:[#allocation2 + $0x50] sm:$0x7]  ;;  %v4474_v53 = vrot.slane %v4466_v47, 5  ;;  %v2454_v47 = vld [vmem:[#allocation2 + $0x50] sm:$0xf0] }
 0x1e8   :  { %8296 = vmatpush3.bf16.msra.mxu1 %v9020_v49  ;;  %8299 = vmatprep.mubr.msk.bf16.mxu1 %vm9318_vm0, %v9317_v52  ;;  %v4465_v49 = vld [vmem:[#allocation2 + $0x38] sm:$0xe0]  ;;  %v2079_v56 = vrot.slane %v2071_v50, 7 }
 0x1e9   :  { %8297 = vmatprep.subr.bf16.mxu1 %v9317_v52  ;;  %v4473_v55 = vrot.slane %v4465_v49, 5 }
 0x1ea   :  { %8554 = vmatpush3.bf16.msra.mxu0 %v9021_v51  ;;  %v9042_v51 = vld [vmem:[%s11084_s3 + $0x68] sm:$0xff]  }
 0x1eb   :  { %8567 = vmatprep.subr.bf16.mxu0 %v9317_v52  ;;  %v4475_v59 = vsel %vm834_vm2, %v4473_v55, %v4474_v53  ;;  %v9051_v53 = vld [vmem:[%s11084_s3 + $0xe0] sm:$0xff]   ;;  %v2460_v55 = vrot.slane %v2454_v47, 4 }
 0x1ec   :  { %8298 = vmatpush3.bf16.msra.mxu1 %v9022_v54  ;;  %v2070_v54 = vld [vmem:[#allocation2 + $0x48] sm:$0x80]  ;;  %v9068_v47 = vld [vmem:[%s11084_s3 + $0xc0] sm:$0xff]  }
 0x1ed   :  { %8556 = vmatmul.mubr.msk.bf16.vlgmr.msra.gmra.mrb[120].mxu0 %vm622_vm1, %v3832_v60  ;;  %8303 = vmatprep.subr.bf16.mxu1 %v9317_v52  ;;  %v2078_v60 = vrot.slane %v2070_v54, 7 }
 0x1ee   :  { %8568 = vmatpush3.bf16.msra.mxu0 %v9023_v57  ;;  %8571 = vmatprep.mubr.msk.bf16.mxu0 %vm9318_vm0, %v9317_v52  ;;  %v9063_v57 = vld [vmem:[%s11084_s3 + $0xd0] sm:$0xff]  }
 0x1ef   :  { %8300 = vmatmul.mubr.msk.bf16.vlgmr.msra.gmra.mrb[68].mxu1 %vm622_vm1, %v1754_v0  ;;  %8569 = vmatprep.subr.bf16.mxu0 %v9317_v52  ;;  %v4593_v0 = vld [vmem:[#allocation2 + $0x80] sm:$0xf0] }
 0x1f0   :  { %8304 = vmatpush3.bf16.msra.mxu1 %v9024_v62  ;;  %8307 = vmatprep.mubr.msk.bf16.mxu1 %vm9318_vm0, %v9317_v52  ;;  %v2080_v62 = vsel %vm1287_vm4, %v2078_v60, %v2079_v56  ;;  %v4599_v3 = vrot.slane %v4593_v0, 4  ;;  %v2579_v56 = vld [vmem:[#allocation2 + $0x58] sm:$0x1]  ;;  %v2578_v60 = vld [vmem:[#allocation2 + $0x50] sm:$0xe0] }
 0x1f1   :  { %8305 = vmatprep.subr.bf16.mxu1 %v9317_v52  ;;  %v9053_v0 = vld [vmem:[%s11084_s3 + $0x10] sm:$0xff]  }
 0x1f2   :  { %8570 = vmatpush3.bf16.msra.mxu0 %v9025_v2  ;;  %v9044_v2 = vld [vmem:[%s11084_s3 + $0x78] sm:$0xff]  }
 0x1f3   :  { %8583 = vmatprep.subr.bf16.mxu0 %v9317_v52 }
 0x1f4   :  { %8306 = vmatpush3.bf16.msra.mxu1 %v9026_v5  ;;  %v2137_v5 = vld [vmem:[#allocation2 + $0x70] sm:$0x78] }
 0x1f5   :  { %8572 = vmatmul.mubr.msk.bf16.vlgmr.msra.gmra.mrb[124].mxu0 %vm622_vm1, %v3961_v13  ;;  %8311 = vmatprep.subr.bf16.mxu1 %v9317_v52  ;;  %v2143_v13 = vrot.slane %v2137_v5, 3  ;;  %v9054_v5 = vld [vmem:[%s11084_s3 + $0x18] sm:$0xff]  }
 0x1f6   :  { %8584 = vmatpush3.bf16.msra.mxu0 %v9027_v9  ;;  %8587 = vmatprep.mubr.msk.bf16.mxu0 %vm9318_vm0, %v9317_v52  ;;  %v4720_v9 = vld [vmem:[#allocation2 + $0x88] sm:$0x1] }
 0x1f7   :  { %8308 = vmatmul.mubr.msk.bf16.vlgmr.msra.gmra.mrb[72].mxu1 %vm622_vm1, %v1820_v16  ;;  %8585 = vmatprep.subr.bf16.mxu0 %v9317_v52  ;;  %v4728_v16 = vrot.slane %v4720_v9, 5 }
 0x1f8   :  { %8312 = vmatpush3.bf16.msra.mxu1 %v9028_v15  ;;  %8315 = vmatprep.mubr.msk.bf16.mxu1 %vm9318_vm0, %v9317_v52  ;;  %v4727_v15 = vrot.slane %v4719_v8, 5  ;;  %v9093_v8 = vld [vmem:[%s11086_s5 + $0x18] sm:$0xff]  }
 0x1f9   :  { %8313 = vmatprep.subr.bf16.mxu1 %v9317_v52 }
 0x1fa   :  { %8586 = vmatpush3.bf16.msra.mxu0 %v9029_v17  ;;  %v9046_v17 = vld [vmem:[%s11084_s3 + $0x88] sm:$0xff]  }
 0x1fb   :  { %8599 = vmatprep.subr.bf16.mxu0 %v9317_v52 }
 0x1fc   :  { %8314 = vmatpush3.bf16.msra.mxu1 %v9030_v20  ;;  %v4729_v20 = vsel %vm834_vm2, %v4727_v15, %v4728_v16  ;;  %v2845_v15 = vld [vmem:[#allocation2 + $0x8] sm:$0xe0] }
 0x1fd   :  { %8588 = vmatmul.mubr.msk.bf16.vlgmr.msra.gmra.mrb[128].mxu0 %vm622_vm1, %v4091_v21  ;;  %8319 = vmatprep.subr.bf16.mxu1 %v9317_v52 }
 0x1fe   :  { %8600 = vmatpush3.bf16.msra.mxu0 %v9031_v22  ;;  %8603 = vmatprep.mubr.msk.bf16.mxu0 %vm9318_vm0, %v9317_v52 }
 0x1ff   :  { %8316 = vmatmul.mubr.msk.bf16.vlgmr.msra.gmra.mrb[76].mxu1 %vm622_vm1, %v1883_v27  ;;  %8601 = vmatprep.subr.bf16.mxu0 %v9317_v52  ;;  %v2325_v27 = vld [vmem:[#allocation2 + $0x10] sm:$0x1] }
 0x200   :  { %8320 = vmatpush3.bf16.msra.mxu1 %v9032_v26  ;;  %8323 = vmatprep.mubr.msk.bf16.mxu1 %vm9318_vm0, %v9317_v52  ;;  %v2206_v26 = vrot.slane %v2200_v19, 4 }
 0x201   :  { %8321 = vmatprep.subr.bf16.mxu1 %v9317_v52 }
 0x202   :  { %8602 = vmatpush3.bf16.msra.mxu0 %v9033_v28 }
 0x203   :  { %8615 = vmatprep.subr.bf16.mxu0 %v9317_v52 }
 0x204   :  { %8322 = vmatpush3.bf16.msra.mxu1 %v9034_v32 }
 0x205   :  { %8604 = vmatmul.mubr.msk.bf16.vlgmr.msra.gmra.mrb[132].mxu0 %vm622_vm1, %v4221_v34  ;;  %8327 = vmatprep.subr.bf16.mxu1 %v9317_v52  ;;  %v2333_v34 = vrot.slane %v2325_v27, 5 }
 0x206   :  { %8616 = vmatpush3.bf16.msra.mxu0 %v9035_v35  ;;  %8619 = vmatprep.mubr.msk.bf16.mxu0 %vm9318_vm0, %v9317_v52 }
 0x207   :  { %8324 = vmatmul.mubr.msk.bf16.vlgmr.msra.gmra.mrb[80].mxu1 %vm622_vm1, %v1950_v38  ;;  %8617 = vmatprep.subr.bf16.mxu0 %v9317_v52  ;;  %v2332_v38 = vrot.slane %v2324_v31, 5 }
 0x208   :  { %8328 = vmatpush3.bf16.msra.mxu1 %v9036_v37  ;;  %8331 = vmatprep.mubr.msk.bf16.mxu1 %vm9318_vm0, %v9317_v52 }
 0x209   :  { %8329 = vmatprep.subr.bf16.mxu1 %v9317_v52  ;;  %v2334_v41 = vsel %vm834_vm2, %v2332_v38, %v2333_v34  ;;  %v3229_v34 = vld [vmem:[#allocation2 + $0x10] sm:$0x3c] }
 0x20a   :  { %8618 = vmatpush3.bf16.msra.mxu0 %v9037_v39  ;;  %v9049_v39 = vld [vmem:[%s11084_s3 + $0xc0] sm:$0xff]  }
 0x20b   :  { %8631 = vmatprep.subr.bf16.mxu0 %v9317_v52 }
 0x20c   :  { %8330 = vmatpush3.bf16.msra.mxu1 %v9038_v40 }
 0x20d   :  { %8620 = vmatmul.mubr.msk.bf16.vlgmr.msra.gmra.mrb[136].mxu0 %vm622_vm1, %v4345_v44  ;;  %8335 = vmatprep.subr.bf16.mxu1 %v9317_v52 }
 0x20e   :  { %8632 = vmatpush3.bf16.msra.mxu0 %v9039_v42  ;;  %8635 = vmatprep.mubr.msk.bf16.mxu0 %vm9318_vm0, %v9317_v52 }
 0x20f   :  { %8332 = vmatmul.mubr.msk.bf16.vlgmr.msra.gmra.mrb[84].mxu1 %vm622_vm1, %v2013_v46  ;;  %8633 = vmatprep.subr.bf16.mxu0 %v9317_v52 }
 0x210   :  { %8336 = vmatpush3.bf16.msra.mxu1 %v9040_v45  ;;  %8339 = vmatprep.mubr.msk.bf16.mxu1 %vm9318_vm0, %v9317_v52 }
 0x211   :  { %8337 = vmatprep.subr.bf16.mxu1 %v9317_v52 }
 0x212   :  { %8634 = vmatpush3.bf16.msra.mxu0 %v9041_v48 }
 0x213   :  { %8647 = vmatprep.subr.bf16.mxu0 %v9317_v52 }
 0x214   :  { %8338 = vmatpush3.bf16.msra.mxu1 %v9042_v51 }
 0x215   :  { %8636 = vmatmul.mubr.msk.bf16.vlgmr.msra.gmra.mrb[140].mxu0 %vm622_vm1, %v4475_v59  ;;  %8343 = vmatprep.subr.bf16.mxu1 %v9317_v52  ;;  %v9052_v59 = vld [vmem:[%s11084_s3 + $0xe8] sm:$0xff]  }
 0x216   :  { %8648 = vmatpush3.bf16.msra.mxu0 %v9063_v57  ;;  %8651 = vmatprep.mubr.msk.bf16.mxu0 %vm9318_vm0, %v9317_v52  ;;  %v9087_v57 = vld [vmem:[%s11086_s5] sm:$0xff]  }
 0x217   :  { %8340 = vmatmul.mubr.msk.bf16.vlgmr.msra.gmra.mrb[88].mxu1 %vm622_vm1, %v2080_v62  ;;  %8649 = vmatprep.subr.bf16.mxu0 %v9317_v52  ;;  %v9089_v62 = vld [vmem:[%s11086_s5 + $0x8] sm:$0xff]  }
 0x218   :  { %8344 = vmatpush3.bf16.msra.mxu1 %v9043_v61  ;;  %8347 = vmatprep.mubr.msk.bf16.mxu1 %vm9318_vm0, %v9317_v52  ;;  %v2587_v61 = vrot.slane %v2579_v56, 5 }
 0x219   :  { %8345 = vmatprep.subr.bf16.mxu1 %v9317_v52 }
 0x21a   :  { %v702_v4 = vpop.f32.mrb[0].mxu1  ;;  %8650 = vmatpush3.bf16.msra.mxu0 %v9065_v63  ;;  %v2586_v63 = vrot.slane %v2578_v60, 5 }
 0x21b   :  { %v8165_v7 = vpop.f32.mrb[1].mxu1  ;;  %8663 = vmatprep.subr.bf16.mxu0 %v9317_v52 }
 0x21c   :  { %8346 = vmatpush3.bf16.msra.mxu1 %v9044_v2  ;;  %v705_v10 = vpop.f32.mrb[2].mxu1  ;;  %v9091_v2 = vld [vmem:[%s11086_s5 + $0x10] sm:$0xff]  }
 0x21d   :  { %v8166_v12 = vpop.f32.mrb[3].mxu1  ;;  %8351 = vmatprep.subr.bf16.mxu1 %v9317_v52  ;;  %8652 = vmatmul.mubr.msk.bf16.vlgmr.msra.gmra.mrb[144].mxu0 %vm622_vm1, %v4599_v3  ;;  %v2588_v3 = vsel %vm834_vm2, %v2586_v63, %v2587_v61 }
 0x21e   :  { %8664 = vmatpush3.bf16.msra.mxu0 %v9067_v6  ;;  %8667 = vmatprep.mubr.msk.bf16.mxu0 %vm9318_vm0, %v9317_v52  ;;  %v2728_v12 = vld [vmem:[#allocation2 + $0x30] sm:$0xf] }
 0x21f   :  { %8348 = vmatmul.mubr.msk.bf16.vlgmr.msra.gmra.mrb[92].mxu1 %vm622_vm1, %v2143_v13  ;;  %8665 = vmatprep.subr.bf16.mxu0 %v9317_v52  ;;  %v2846_v13 = vld [vmem:[#allocation2 + $0x10] sm:$0x1] }
 0x220   :  { %8352 = vmatpush3.bf16.msra.mxu1 %v9045_v11  ;;  %8355 = vmatprep.mubr.msk.bf16.mxu1 %vm9318_vm0, %v9317_v52  ;;  %v9055_v11 = vld [vmem:[%s11084_s3 + $0x20] sm:$0xff]   ;;  %v2854_v16 = vrot.slane %v2846_v13, 5 }
 0x221   :  { %8353 = vmatprep.subr.bf16.mxu1 %v9317_v52 }
 0x222   :  { %v757_v18 = vpop.f32.mrb[4].mxu1  ;;  %8666 = vmatpush3.bf16.msra.mxu0 %v9069_v14  ;;  %v9056_v14 = vld [vmem:[%s11084_s3 + $0x28] sm:$0xff]  }
 0x223   :  { %v758_v21 = vadd.f32 %v757_v18, %v702_v4  ;;  %v8173_v22 = vpop.f32.mrb[5].mxu1  ;;  %8683 = vmatprep.subr.bf16.mxu0 %v9317_v52  ;;  %v9057_v18 = vld [vmem:[%s11084_s3 + $0x40] sm:$0xff]  }
 0x224   :  { %8354 = vmatpush3.bf16.msra.mxu1 %v9046_v17  ;;  %v760_v23 = vpop.f32.mrb[6].mxu1  ;;  %v2853_v17 = vrot.slane %v2845_v15, 5  ;;  %v9059_v22 = vld [vmem:[%s11084_s3 + $0x60] sm:$0xff]   ;;  %v3766_v15 = vld [vmem:[#allocation2 + $0x38] sm:$0x3] }
 0x225   :  { %v8174_v25 = vpop.f32.mrb[7].mxu1  ;;  %8367 = vmatprep.subr.bf16.mxu1 %v9317_v52  ;;  %8668 = vmatmul.mubr.msk.bf16.vlgmr.msra.gmra.mrb[148].mxu0 %vm622_vm1, %v4729_v20  ;;  %v9058_v20 = vld [vmem:[%s11084_s3 + $0x48] sm:$0xff]  }
 0x226   :  { %8691 = vmatprep.mubr.msk.bf16.mxu0 %vm9318_vm0, %v9317_v52  ;;  %8684 = vmatpush3.bf16.msra.mxu0 %v9087_v57  ;;  %v2855_v19 = vsel %vm834_vm2, %v2853_v17, %v2854_v16  ;;  %v9060_v25 = vld [vmem:[%s11084_s3 + $0x68] sm:$0xff]   ;;  %v9074_v17 = vld [vmem:[%s11084_s3 + $0x18] sm:$0xff]  }
 0x227   :  { %8356 = vmatmul.mubr.msk.bf16.vlgmr.msra.gmra.mrb[96].mxu1 %vm622_vm1, %v2206_v26  ;;  %8685 = vmatprep.subr.bf16.mxu0 %v9317_v52  ;;  %v3099_v26 = vld [vmem:[#allocation2 + $0x50] sm:$0xe0] }
 0x228   :  { %8368 = vmatpush3.bf16.msra.mxu1 %v9047_v24  ;;  %v10132_v28 = vpop.f32.mrb[72].mxu0  ;;  %8371 = vmatprep.mubr.msk.bf16.mxu1 %vm9318_vm0, %v9317_v52  ;;  %v3100_v24 = vld [vmem:[#allocation2 + $0x58] sm:$0x1] }
 0x229   :  { %v8365_v30 = vpop.f32.mrb[73].mxu0  ;;  %8369 = vmatprep.subr.bf16.mxu1 %v9317_v52  ;;  %v3108_v27 = vrot.slane %v3100_v24, 5 }
 0x22a   :  { %v819_v32 = vpop.f32.mrb[8].mxu1  ;;  %v2320_v33 = vpop.f32.mrb[74].mxu0  ;;  %8686 = vmatpush3.bf16.msra.mxu0 %v9089_v62  ;;  %v9061_v30 = vld [vmem:[%s11084_s3 + $0x80] sm:$0xff]  }
 0x22b   :  { %v825_v35 = vadd.f32 %v819_v32, %v758_v21  ;;  %v8181_v36 = vpop.f32.mrb[9].mxu1  ;;  %v8366_v58 = vpop.f32.mrb[75].mxu0  ;;  %8687 = vmatprep.subr.bf16.mxu0 %v9317_v52  ;;  %v2975_v21 = vld [vmem:[#allocation2 + $0x50] sm:$0xf0]  ;;  %v9062_v32 = vld [vmem:[%s11084_s3 + $0x88] sm:$0xff]   ;;  %v9071_v62 = vld [vmem:[%s11084_s3 + $0xe0] sm:$0xff]  }
 0x22c   :  { %8370 = vmatpush3.bf16.msra.mxu1 %v9048_v29  ;;  %v822_v37 = vpop.f32.mrb[10].mxu1  ;;  %v2981_v23 = vrot.slane %v2975_v21, 4  ;;  %v3107_v29 = vrot.slane %v3099_v26, 5 }
 0x22d   :  { %v8182_v40 = vpop.f32.mrb[11].mxu1  ;;  %8383 = vmatprep.subr.bf16.mxu1 %v9317_v52  ;;  %v9064_v37 = vld [vmem:[%s11084_s3 + $0xa0] sm:$0xff]  }
 0x22e   :  { %8688 = vmatpush3.bf16.msra.mxu0 %v9091_v2  ;;  %v3109_v31 = vsel %vm834_vm2, %v3107_v29, %v3108_v27  ;;  %v9066_v40 = vld [vmem:[%s11084_s3 + $0xa8] sm:$0xff]   ;;  %v9075_v29 = vld [vmem:[%s11084_s3 + $0x20] sm:$0xff]  }
 0x22f   :  { %8372 = vmatmul.mubr.msk.bf16.vlgmr.msra.gmra.mrb[100].mxu1 %vm622_vm1, %v2334_v41  ;;  %8689 = vmatprep.subr.bf16.mxu0 %v9317_v52  ;;  %v9072_v2 = vld [vmem:[%s11084_s3 + $0xe8] sm:$0xff]  }
 0x230   :  { %8384 = vmatpush3.bf16.msra.mxu1 %v9049_v39  ;;  %v10146_v42 = vpop.f32.mrb[76].mxu0  ;;  %8387 = vmatprep.mubr.msk.bf16.mxu1 %vm9318_vm0, %v9317_v52  ;;  %v3235_v39 = vrot.slane %v3229_v34, 2 }
 0x231   :  { %v8381_v44 = vpop.f32.mrb[77].mxu0  ;;  %8385 = vmatprep.subr.bf16.mxu1 %v9317_v52 }
 0x232   :  { %v887_v45 = vpop.f32.mrb[12].mxu1  ;;  %v2450_v46 = vpop.f32.mrb[78].mxu0  ;;  %8690 = vmatpush3.bf16.msra.mxu0 %v9093_v8 }
 0x233   :  { %v893_v48 = vadd.f32 %v887_v45, %v825_v35  ;;  %v8189_v49 = vpop.f32.mrb[13].mxu1  ;;  %v8382_v50 = vpop.f32.mrb[79].mxu0  ;;  %8707 = vmatprep.subr.bf16.mxu0 %v9317_v52 }
 0x234   :  { %8386 = vmatpush3.bf16.msra.mxu1 %v9050_v43  ;;  %v890_v51 = vpop.f32.mrb[14].mxu1  ;;  %v3359_v43 = vld [vmem:[#allocation2 + $0x10] sm:$0x78]  ;;  %v9070_v50 = vld [vmem:[%s11084_s3 + $0xc8] sm:$0xff]  }
 0x235   :  { %v8190_v54 = vpop.f32.mrb[15].mxu1  ;;  %8399 = vmatprep.subr.bf16.mxu1 %v9317_v52  ;;  %v3365_v49 = vrot.slane %v3359_v43, 3 }
 0x237   :  { %8388 = vmatmul.mubr.msk.bf16.vlgmr.msra.gmra.mrb[104].mxu1 %vm622_vm1, %v2460_v55  ;;  %v3489_v55 = vld [vmem:[#allocation2 + $0x58] sm:$0x3c] }
 0x238   :  { %8400 = vmatpush3.bf16.msra.mxu1 %v9051_v53  ;;  %8403 = vmatprep.mubr.msk.bf16.mxu1 %vm9318_vm0, %v9317_v52 }
 0x239   :  { %8401 = vmatprep.subr.bf16.mxu1 %v9317_v52 }
 0x23c   :  { %8402 = vmatpush3.bf16.msra.mxu1 %v9052_v59 }
 0x23d   :  { %8415 = vmatprep.subr.bf16.mxu1 %v9317_v52 }
 0x23f   :  { %8404 = vmatmul.mubr.msk.bf16.vlgmr.msra.gmra.mrb[108].mxu1 %vm622_vm1, %v2588_v3 }
 0x240   :  { %8416 = vmatpush3.bf16.msra.mxu1 %v9053_v0  ;;  %v948_v4 = vpop.f32.mrb[16].mxu1  ;;  %8419 = vmatprep.mubr.msk.bf16.mxu1 %vm9318_vm0, %v9317_v52  ;;  %v3495_v0 = vrot.slane %v3489_v55, 2 }
 0x241   :  { %v954_v6 = vadd.f32 %v948_v4, %v893_v48  ;;  %v8197_v7 = vpop.f32.mrb[17].mxu1  ;;  %8417 = vmatprep.subr.bf16.mxu1 %v9317_v52 }
 0x242   :  { %v951_v9 = vpop.f32.mrb[18].mxu1  ;;  %v3619_v7 = vld [vmem:[#allocation2 + $0x58] sm:$0x78] }
 0x243   :  { %v8198_v10 = vpop.f32.mrb[19].mxu1 }
 0x244   :  { %8418 = vmatpush3.bf16.msra.mxu1 %v9054_v5 }
 0x245   :  { %8431 = vmatprep.subr.bf16.mxu1 %v9317_v52 }
 0x247   :  { %8420 = vmatmul.mubr.msk.bf16.vlgmr.msra.gmra.mrb[112].mxu1 %vm622_vm1, %v2728_v12  ;;  %v9073_v12 = vld [vmem:[%s11084_s3 + $0x10] sm:$0xff]  }
 0x248   :  { %8432 = vmatpush3.bf16.msra.mxu1 %v9055_v11  ;;  %8435 = vmatprep.mubr.msk.bf16.mxu1 %vm9318_vm0, %v9317_v52 }
 0x249   :  { %8433 = vmatprep.subr.bf16.mxu1 %v9317_v52 }
 0x24c   :  { %8434 = vmatpush3.bf16.msra.mxu1 %v9056_v14  ;;  %v3625_v14 = vrot.slane %v3619_v7, 3 }
 0x24d   :  { %8447 = vmatprep.subr.bf16.mxu1 %v9317_v52 }
 0x24f   :  { %8436 = vmatmul.mubr.msk.bf16.vlgmr.msra.gmra.mrb[116].mxu1 %vm622_vm1, %v2855_v19  ;;  %v3765_v19 = vld [vmem:[#allocation2 + $0x30] sm:$0xc0] }
 0x250   :  { %8448 = vmatpush3.bf16.msra.mxu1 %v9057_v18  ;;  %8451 = vmatprep.mubr.msk.bf16.mxu1 %vm9318_vm0, %v9317_v52  ;;  %v3773_v27 = vrot.slane %v3765_v19, 6 }
 0x251   :  { %8449 = vmatprep.subr.bf16.mxu1 %v9317_v52 }
 0x254   :  { %8450 = vmatpush3.bf16.msra.mxu1 %v9058_v20 }
 0x255   :  { %8463 = vmatprep.subr.bf16.mxu1 %v9317_v52 }
 0x257   :  { %8452 = vmatmul.mubr.msk.bf16.vlgmr.msra.gmra.mrb[120].mxu1 %vm622_vm1, %v2981_v23 }
 0x258   :  { %8464 = vmatpush3.bf16.msra.mxu1 %v9059_v22  ;;  %8467 = vmatprep.mubr.msk.bf16.mxu1 %vm9318_vm0, %v9317_v52  ;;  %v3774_v22 = vrot.slane %v3766_v15, 6 }
 0x259   :  { %8465 = vmatprep.subr.bf16.mxu1 %v9317_v52 }
 0x25c   :  { %8466 = vmatpush3.bf16.msra.mxu1 %v9060_v25 }
 0x25d   :  { %8479 = vmatprep.subr.bf16.mxu1 %v9317_v52 }
 0x25f   :  { %8468 = vmatmul.mubr.msk.bf16.vlgmr.msra.gmra.mrb[124].mxu1 %vm622_vm1, %v3109_v31  ;;  %v3775_v31 = vsel %vm1156_vm3, %v3773_v27, %v3774_v22  ;;  %v9083_v22 = vld [vmem:[%s11084_s3 + $0xa0] sm:$0xff]  }
 0x260   :  { %8480 = vmatpush3.bf16.msra.mxu1 %v9061_v30  ;;  %8483 = vmatprep.mubr.msk.bf16.mxu1 %vm9318_vm0, %v9317_v52 }
 0x261   :  { %8481 = vmatprep.subr.bf16.mxu1 %v9317_v52 }
 0x262   :  { %v1011_v33 = vpop.f32.mrb[20].mxu1 }
 0x263   :  { %v1017_v35 = vadd.f32 %v1011_v33, %v954_v6  ;;  %v8205_v36 = vpop.f32.mrb[21].mxu1  ;;  %v9076_v33 = vld [vmem:[%s11084_s3 + $0x28] sm:$0xff]  }
 0x264   :  { %8482 = vmatpush3.bf16.msra.mxu1 %v9062_v32  ;;  %v1014_v58 = vpop.f32.mrb[22].mxu1 }
 0x265   :  { %v8206_v38 = vpop.f32.mrb[23].mxu1  ;;  %8495 = vmatprep.subr.bf16.mxu1 %v9317_v52  ;;  %v3888_v58 = vld [vmem:[#allocation2 + $0x10] sm:$0x78] }
 0x267   :  { %8484 = vmatmul.mubr.msk.bf16.vlgmr.msra.gmra.mrb[128].mxu1 %vm622_vm1, %v3235_v39 }
 0x268   :  { %8496 = vmatpush3.bf16.msra.mxu1 %v9064_v37  ;;  %8499 = vmatprep.mubr.msk.bf16.mxu1 %vm9318_vm0, %v9317_v52 }
 0x269   :  { %8497 = vmatprep.subr.bf16.mxu1 %v9317_v52 }
 0x26a   :  { %v1074_v41 = vpop.f32.mrb[24].mxu1 }
 0x26b   :  { %v1080_v44 = vadd.f32 %v1074_v41, %v1017_v35  ;;  %v8213_v45 = vpop.f32.mrb[25].mxu1  ;;  %v9077_v41 = vld [vmem:[%s11084_s3 + $0x40] sm:$0xff]  }
 0x26c   :  { %8498 = vmatpush3.bf16.msra.mxu1 %v9066_v40  ;;  %v1077_v46 = vpop.f32.mrb[26].mxu1  ;;  %v9078_v45 = vld [vmem:[%s11084_s3 + $0x48] sm:$0xff]  }
 0x26d   :  { %v8214_v48 = vpop.f32.mrb[27].mxu1  ;;  %8511 = vmatprep.subr.bf16.mxu1 %v9317_v52 }
 0x26f   :  { %8500 = vmatmul.mubr.msk.bf16.vlgmr.msra.gmra.mrb[132].mxu1 %vm622_vm1, %v3365_v49  ;;  %v4018_v49 = vld [vmem:[#allocation2 + $0x58] sm:$0x3c] }
 0x270   :  { %8512 = vmatpush3.bf16.msra.mxu1 %v9068_v47  ;;  %8515 = vmatprep.mubr.msk.bf16.mxu1 %vm9318_vm0, %v9317_v52  ;;  %v10260_v51 = vpop.f32.mrb[80].mxu0 }
 0x271   :  { %8513 = vmatprep.subr.bf16.mxu1 %v9317_v52  ;;  %v8397_v53 = vpop.f32.mrb[81].mxu0 }
 0x272   :  { %v1141_v54 = vpop.f32.mrb[28].mxu1  ;;  %v2574_v56 = vpop.f32.mrb[82].mxu0 }
 0x273   :  { %v1147_v57 = vadd.f32 %v1141_v54, %v1080_v44  ;;  %v8221_v59 = vpop.f32.mrb[29].mxu1  ;;  %v8398_v60 = vpop.f32.mrb[83].mxu0  ;;  %v3894_v44 = vrot.slane %v3888_v58, 3  ;;  %v9085_v58 = vld [vmem:[%s11084_s3 + $0xc0] sm:$0xff]  }
 0x274   :  { %8514 = vmatpush3.bf16.msra.mxu1 %v9070_v50  ;;  %v1144_v61 = vpop.f32.mrb[30].mxu1  ;;  %v4024_v60 = vrot.slane %v4018_v49, 2 }
 0x275   :  { %v8222_v63 = vpop.f32.mrb[31].mxu1  ;;  %8527 = vmatprep.subr.bf16.mxu1 %v9317_v52  ;;  %v9080_v61 = vld [vmem:[%s11084_s3 + $0x68] sm:$0xff]  }
 0x277   :  { %8516 = vmatmul.mubr.msk.bf16.vlgmr.msra.gmra.mrb[136].mxu1 %vm622_vm1, %v3495_v0 }
 0x278   :  { %8528 = vmatpush3.bf16.msra.mxu1 %v9071_v62  ;;  %v10271_v3 = vpop.f32.mrb[84].mxu0  ;;  %8531 = vmatprep.mubr.msk.bf16.mxu1 %vm9318_vm0, %v9317_v52 }
 0x279   :  { %8529 = vmatprep.subr.bf16.mxu1 %v9317_v52  ;;  %v8413_v4 = vpop.f32.mrb[85].mxu0 }
 0x27a   :  { %v1209_v5 = vpop.f32.mrb[32].mxu1  ;;  %v2704_v6 = vpop.f32.mrb[86].mxu0  ;;  %v4148_v4 = vld [vmem:[#allocation2 + $0x58] sm:$0x78] }
 0x27b   :  { %v1215_v8 = vadd.f32 %v1209_v5, %v1147_v57  ;;  %v8229_v9 = vpop.f32.mrb[33].mxu1  ;;  %v8414_v10 = vpop.f32.mrb[87].mxu0  ;;  %v9079_v57 = vld [vmem:[%s11084_s3 + $0x60] sm:$0xff]  }
 0x27c   :  { %8530 = vmatpush3.bf16.msra.mxu1 %v9072_v2  ;;  %v1212_v11 = vpop.f32.mrb[34].mxu1  ;;  %v9081_v9 = vld [vmem:[%s11084_s3 + $0x80] sm:$0xff]  }
 0x27d   :  { %v8230_v13 = vpop.f32.mrb[35].mxu1  ;;  %8543 = vmatprep.subr.bf16.mxu1 %v9317_v52  ;;  %v4154_v11 = vrot.slane %v4148_v4, 3  ;;  %v4656_v4 = vld [vmem:[#allocation2 + $0x60] sm:$0x1e] }
 0x27e   :  { %v9082_v13 = vld [vmem:[%s11084_s3 + $0x88] sm:$0xff]  }
 0x27f   :  { %8532 = vmatmul.mubr.msk.bf16.vlgmr.msra.gmra.mrb[140].mxu1 %vm622_vm1, %v3625_v14 }
 0x280   :  { %8544 = vmatpush3.bf16.msra.mxu1 %v9073_v12  ;;  %v10281_v16 = vpop.f32.mrb[88].mxu0  ;;  %8547 = vmatprep.mubr.msk.bf16.mxu1 %vm9318_vm0, %v9317_v52 }
 0x281   :  { %v8429_v18 = vpop.f32.mrb[89].mxu0  ;;  %8545 = vmatprep.subr.bf16.mxu1 %v9317_v52 }
 0x282   :  { %v1272_v20 = vpop.f32.mrb[36].mxu1  ;;  %v2842_v21 = vpop.f32.mrb[90].mxu0 }
 0x283   :  { %v1278_v23 = vadd.f32 %v1272_v20, %v1215_v8  ;;  %v8237_v24 = vpop.f32.mrb[37].mxu1  ;;  %v8430_v25 = vpop.f32.mrb[91].mxu0 }
 0x284   :  { %8546 = vmatpush3.bf16.msra.mxu1 %v9074_v17  ;;  %v1275_v26 = vpop.f32.mrb[38].mxu1  ;;  %v4278_v24 = vld [vmem:[#allocation2 + $0x18] sm:$0xf] }
 0x285   :  { %v8238_v30 = vpop.f32.mrb[39].mxu1  ;;  %8559 = vmatprep.subr.bf16.mxu1 %v9317_v52  ;;  %v9084_v26 = vld [vmem:[%s11084_s3 + $0xa8] sm:$0xff]  }
 0x287   :  { %8548 = vmatmul.mubr.msk.bf16.vlgmr.msra.gmra.mrb[144].mxu1 %vm622_vm1, %v3775_v31  ;;  %v4402_v31 = vld [vmem:[#allocation2 + $0x18] sm:$0x1e] }
 0x288   :  { %8560 = vmatpush3.bf16.msra.mxu1 %v9075_v29  ;;  %v10295_v32 = vpop.f32.mrb[92].mxu0  ;;  %8563 = vmatprep.mubr.msk.bf16.mxu1 %vm9318_vm0, %v9317_v52 }
 0x289   :  { %v8445_v34 = vpop.f32.mrb[93].mxu0  ;;  %8561 = vmatprep.subr.bf16.mxu1 %v9317_v52 }
 0x28a   :  { %v1340_v35 = vpop.f32.mrb[40].mxu1  ;;  %v2971_v36 = vpop.f32.mrb[94].mxu0 }
 0x28b   :  { %v1346_v37 = vadd.f32 %v1340_v35, %v1278_v23  ;;  %v8245_v38 = vpop.f32.mrb[41].mxu1  ;;  %v8446_v39 = vpop.f32.mrb[95].mxu0 }
 0x28c   :  { %8562 = vmatpush3.bf16.msra.mxu1 %v9076_v33  ;;  %v1343_v40 = vpop.f32.mrb[42].mxu1  ;;  %v4408_v38 = vrot.slane %v4402_v31, 1  ;;  %v9086_v39 = vld [vmem:[%s11084_s3 + $0xc8] sm:$0xff]   ;;  %v9105_v31 = vld [vmem:[%s11086_s5 + $0x70] sm:$0xff]  }
 0x28d   :  { %v8246_v43 = vpop.f32.mrb[43].mxu1  ;;  %8575 = vmatprep.subr.bf16.mxu1 %v9317_v52 }
 0x28f   :  { %8564 = vmatmul.mubr.msk.bf16.vlgmr.msra.gmra.mrb[148].mxu1 %vm622_vm1, %v3894_v44  ;;  %v10371_v44 = vld [vmem:[%s11085_s4] ss:$0 sm:$0xff] }
 0x290   :  { %8576 = vmatpush3.bf16.msra.mxu1 %v9077_v41  ;;  %8579 = vmatprep.mubr.msk.bf16.mxu1 %vm9318_vm0, %v9317_v52  ;;  %v10313_v46 = vpop.f32.mrb[96].mxu0 }
 0x291   :  { %8577 = vmatprep.subr.bf16.mxu1 %v9317_v52  ;;  %v8461_v47 = vpop.f32.mrb[97].mxu0 }
 0x292   :  { %v1403_v48 = vpop.f32.mrb[44].mxu1  ;;  %v3095_v50 = vpop.f32.mrb[98].mxu0 }
 0x293   :  { %v1409_v53 = vadd.f32 %v1403_v48, %v1346_v37  ;;  %v8253_v54 = vpop.f32.mrb[45].mxu1  ;;  %v8462_v55 = vpop.f32.mrb[99].mxu0 }
 0x294   :  { %8578 = vmatpush3.bf16.msra.mxu1 %v9078_v45  ;;  %v1406_v56 = vpop.f32.mrb[46].mxu1 }
 0x295   :  { %v8254_v59 = vpop.f32.mrb[47].mxu1  ;;  %8591 = vmatprep.subr.bf16.mxu1 %v9317_v52  ;;  %v4532_v56 = vld [vmem:[#allocation2 + $0x60] sm:$0xf] }
 0x296   :  { %v9090_v59 = vld [vmem:[%s11084_s3 + $0xe8] sm:$0xff]  }
 0x297   :  { %8580 = vmatmul.mubr.msk.bf16.vlgmr.msra.gmra.mrb[152].mxu1 %vm622_vm1, %v4024_v60 }
 0x298   :  { %8592 = vmatpush3.bf16.msra.mxu1 %v9079_v57  ;;  %v10324_v62 = vpop.f32.mrb[100].mxu0  ;;  %8595 = vmatprep.mubr.msk.bf16.mxu1 %vm9318_vm0, %v9317_v52 }
 0x299   :  { %8593 = vmatprep.subr.bf16.mxu1 %v9317_v52  ;;  %v8477_v63 = vpop.f32.mrb[101].mxu0 }
 0x29a   :  { %v1470_v0 = vpop.f32.mrb[48].mxu1  ;;  %v3225_v2 = vpop.f32.mrb[102].mxu0 }
 0x29b   :  { %v1476_v5 = vadd.f32 %v1470_v0, %v1409_v53  ;;  %v8261_v6 = vpop.f32.mrb[49].mxu1  ;;  %v8478_v7 = vpop.f32.mrb[103].mxu0  ;;  %v9088_v53 = vld [vmem:[%s11084_s3 + $0xe0] sm:$0xff]  }
 0x29c   :  { %8594 = vmatpush3.bf16.msra.mxu1 %v9080_v61  ;;  %v1473_v8 = vpop.f32.mrb[50].mxu1 }
 0x29d   :  { %v8262_v10 = vpop.f32.mrb[51].mxu1  ;;  %8607 = vmatprep.subr.bf16.mxu1 %v9317_v52  ;;  %v9092_v8 = vld [vmem:[%s11086_s5 + $0x20] sm:$0xff]  }
 0x29e   :  { %v4662_v10 = vrot.slane %v4656_v4, 1 }
 0x29f   :  { %8596 = vmatmul.mubr.msk.bf16.vlgmr.msra.gmra.mrb[156].mxu1 %vm622_vm1, %v4154_v11 }
 0x2a0   :  { %8608 = vmatpush3.bf16.msra.mxu1 %v9081_v9  ;;  %v10334_v12 = vpop.f32.mrb[104].mxu0  ;;  %8611 = vmatprep.mubr.msk.bf16.mxu1 %vm9318_vm0, %v9317_v52 }
 0x2a1   :  { %v8493_v14 = vpop.f32.mrb[105].mxu0  ;;  %8609 = vmatprep.subr.bf16.mxu1 %v9317_v52 }
 0x2a2   :  { %v1533_v15 = vpop.f32.mrb[52].mxu1  ;;  %v3355_v17 = vpop.f32.mrb[106].mxu0  ;;  %v9101_v14 = vld [vmem:[%s11086_s5 + $0x60] sm:$0xff]  }
 0x2a3   :  { %v1539_v18 = vadd.f32 %v1533_v15, %v1476_v5  ;;  %v8269_v19 = vpop.f32.mrb[53].mxu1  ;;  %v8494_v20 = vpop.f32.mrb[107].mxu0 }
 0x2a4   :  { %8610 = vmatpush3.bf16.msra.mxu1 %v9082_v13  ;;  %v1536_v21 = vpop.f32.mrb[54].mxu1  ;;  %v9094_v13 = vld [vmem:[%s11086_s5 + $0x28] sm:$0xff]  }
 0x2a5   :  { %v8270_v23 = vpop.f32.mrb[55].mxu1  ;;  %8623 = vmatprep.subr.bf16.mxu1 %v9317_v52 }
 0x2a7   :  { %8612 = vmatmul.mubr.msk.bf16.vlgmr.msra.gmra.mrb[160].mxu1 %vm622_vm1, %v4278_v24  ;;  %v9095_v24 = vld [vmem:[%s11086_s5 + $0x30] sm:$0xff]  }
 0x2a8   :  { %8624 = vmatpush3.bf16.msra.mxu1 %v9083_v22  ;;  %v10347_v25 = vpop.f32.mrb[108].mxu0  ;;  %8627 = vmatprep.mubr.msk.bf16.mxu1 %vm9318_vm0, %v9317_v52 }
 0x2a9   :  { %v8509_v27 = vpop.f32.mrb[109].mxu0  ;;  %8625 = vmatprep.subr.bf16.mxu1 %v9317_v52 }
 0x2aa   :  { %v1600_v29 = vpop.f32.mrb[56].mxu1  ;;  %v3485_v30 = vpop.f32.mrb[110].mxu0 }
 0x2ab   :  { %v1606_v33 = vadd.f32 %v1600_v29, %v1539_v18  ;;  %v8277_v34 = vpop.f32.mrb[57].mxu1  ;;  %v8510_v35 = vpop.f32.mrb[111].mxu0  ;;  %v9096_v30 = vld [vmem:[%s11086_s5 + $0x38] sm:$0xff]  }
 0x2ac   :  { %8626 = vmatpush3.bf16.msra.mxu1 %v9084_v26  ;;  %v1603_v36 = vpop.f32.mrb[58].mxu1  ;;  %v9103_v26 = vld [vmem:[%s11086_s5 + $0x68] sm:$0xff]  }
 0x2ad   :  { %v8278_v37 = vpop.f32.mrb[59].mxu1  ;;  %8639 = vmatprep.subr.bf16.mxu1 %v9317_v52 }
 0x2af   :  { %8628 = vmatmul.mubr.msk.bf16.vlgmr.msra.gmra.mrb[164].mxu1 %vm622_vm1, %v4408_v38 }
 0x2b0   :  { %8640 = vmatpush3.bf16.msra.mxu1 %v9085_v58  ;;  %8643 = vmatprep.mubr.msk.bf16.mxu1 %vm9318_vm0, %v9317_v52  ;;  %v10365_v40 = vpop.f32.mrb[112].mxu0 }
 0x2b1   :  { %8641 = vmatprep.subr.bf16.mxu1 %v9317_v52  ;;  %v8525_v41 = vpop.f32.mrb[113].mxu0 }
 0x2b2   :  { %v1663_v43 = vpop.f32.mrb[60].mxu1  ;;  %v3615_v45 = vpop.f32.mrb[114].mxu0  ;;  %v9097_v41 = vld [vmem:[%s11086_s5 + $0x40] sm:$0xff]  }
 0x2b3   :  { %v1669_v47 = vadd.f32 %v1663_v43, %v1606_v33  ;;  %v8285_v48 = vpop.f32.mrb[61].mxu1  ;;  %v8526_v49 = vpop.f32.mrb[115].mxu0 }
 0x2b4   :  { %8642 = vmatpush3.bf16.msra.mxu1 %v9086_v39  ;;  %v1666_v50 = vpop.f32.mrb[62].mxu1  ;;  %v9098_v48 = vld [vmem:[%s11086_s5 + $0x48] sm:$0xff]  }
 0x2b5   :  { %v1677_v54 = vadd.f32 %v10371_v44, %v1669_v47  ;;  %v8286_v55 = vpop.f32.mrb[63].mxu1  ;;  %8655 = vmatprep.subr.bf16.mxu1 %v9317_v52  ;;  %v9107_v47 = vld [vmem:[%s11086_s5 + $0x78] sm:$0xff]  }
 0x2b7   :  { %v1678_v57 = vmax.f32 %v1677_v54, 0.0  ;;  %8644 = vmatmul.mubr.msk.bf16.vlgmr.msra.gmra.mrb[168].mxu1 %vm622_vm1, %v4532_v56 }
 0x2b8   :  { %8656 = vmatpush3.bf16.msra.mxu1 %v9088_v53  ;;  %v10382_v60 = vpop.f32.mrb[116].mxu0  ;;  %8659 = vmatprep.mubr.msk.bf16.mxu1 %vm9318_vm0, %v9317_v52 }
 0x2b9   :  { %v1679_v61 = vpack.c.bf16 %v1678_v57, %v1678_v57  ;;  %8657 = vmatprep.subr.bf16.mxu1 %v9317_v52  ;;  %v8541_v63 = vpop.f32.mrb[117].mxu0 }
 0x2ba   :  { %v1744_v0 = vpop.f32.mrb[64].mxu1  ;;  %v3745_v2 = vpop.f32.mrb[118].mxu0 }
 0x2bb   :  { %1681 = vst.msk [vmem:[#allocation3] sm:$0xf] %vm1680_vm5, %v1679_v61  ;;  %v8293_v5 = vpop.f32.mrb[65].mxu1  ;;  %v8542_v6 = vpop.f32.mrb[119].mxu0  ;;  %v9099_v61 = vld [vmem:[%s11086_s5 + $0x50] sm:$0xff]  }
 0x2bc   :  { %8658 = vmatpush3.bf16.msra.mxu1 %v9090_v59  ;;  %v1747_v7 = vpop.f32.mrb[66].mxu1 }
 0x2bd   :  { %v8294_v9 = vpop.f32.mrb[67].mxu1  ;;  %8671 = vmatprep.subr.bf16.mxu1 %v9317_v52 }
 0x2bf   :  { %8660 = vmatmul.mubr.msk.bf16.vlgmr.msra.gmra.mrb[172].mxu1 %vm622_vm1, %v4662_v10 }
 0x2c0   :  { %8672 = vmatpush3.bf16.msra.mxu1 %v9092_v8  ;;  %v10393_v11 = vpop.f32.mrb[120].mxu0  ;;  %8679 = vmatprep.mubr.msk.bf16.mxu1 %vm9318_vm0, %v9317_v52 }
 0x2c1   :  { %v8557_v15 = vpop.f32.mrb[121].mxu0  ;;  %8673 = vmatprep.subr.bf16.mxu1 %v9317_v52 }
 0x2c2   :  { %v1804_v17 = vpop.f32.mrb[68].mxu1  ;;  %v3885_v18 = vpop.f32.mrb[122].mxu0  ;;  %v4800_v19 = vld [vmem:[#allocation3] sm:$0x3]  ;;  %v4955_v7 = vld [vmem:[#allocation3] sm:$0xc] }
 0x2c3   :  { %v1805_v20 = vadd.f32 %v1804_v17, %v1744_v0  ;;  %v8301_v21 = vpop.f32.mrb[69].mxu1  ;;  %v8558_v22 = vpop.f32.mrb[123].mxu0  ;;  %8692 = vmatmul.mubr.msk.bf16.vlgmr.msra.gmra.mrb[152].mxu0 %vm4844_vm6, %v4800_v19  ;;  %v4809_v36 = vld [vmem:[#allocation3] sm:$0x6]  ;;  %v9100_v0 = vld [vmem:[%s11086_s5 + $0x58] sm:$0xff]   ;;  %v4965_v17 = vrot.slane %v4955_v7, 2 }
 0x2c4   :  { %8674 = vmatpush3.bf16.msra.mxu1 %v9094_v13  ;;  %v1807_v23 = vpop.f32.mrb[70].mxu1  ;;  %8708 = vmatpush3.bf16.msra.mxu0 %v9101_v14  ;;  %v4819_v45 = vrot.slane %v4809_v36, 1  ;;  %v9102_v14 = vld [vmem:[%s11086_s5 + $0x80] sm:$0xff]   ;;  %v9104_v19 = vld [vmem:[%s11086_s5 + $0x88] sm:$0xff]  }
 0x2c5   :  { %v8302_v27 = vpop.f32.mrb[71].mxu1  ;;  %8675 = vmatprep.subr.bf16.mxu1 %v9317_v52  ;;  %8709 = vmatprep.subr.bf16.mxu0 %v9317_v52 }
 0x2c6   :  { %8715 = vmatprep.mubr.msk.bf16.mxu0 %vm9318_vm0, %v9317_v52 }
 0x2c8   :  { %8676 = vmatpush3.bf16.msra.mxu1 %v9095_v24  ;;  %v10415_v29 = vpop.f32.mrb[124].mxu0  ;;  %8710 = vmatpush3.bf16.msra.mxu0 %v9103_v26 }
 0x2c9   :  { %v8573_v33 = vpop.f32.mrb[125].mxu0  ;;  %8677 = vmatprep.subr.bf16.mxu1 %v9317_v52  ;;  %8711 = vmatprep.subr.bf16.mxu0 %v9317_v52 }
 0x2ca   :  { %v1870_v34 = vpop.f32.mrb[72].mxu1  ;;  %v4014_v35 = vpop.f32.mrb[126].mxu0 }
 0x2cb   :  { %v1876_v58 = vadd.f32 %v1870_v34, %v1805_v20  ;;  %v8309_v37 = vpop.f32.mrb[73].mxu1  ;;  %v8574_v38 = vpop.f32.mrb[127].mxu0  ;;  %v9108_v34 = vld [vmem:[%s11086_s5 + $0x98] sm:$0xff]  }
 0x2cc   :  { %8678 = vmatpush3.bf16.msra.mxu1 %v9096_v30  ;;  %v1873_v39 = vpop.f32.mrb[74].mxu1  ;;  %8712 = vmatpush3.bf16.msra.mxu0 %v9105_v31  ;;  %v9106_v30 = vld [vmem:[%s11086_s5 + $0x90] sm:$0xff]  }
 0x2cd   :  { %v8310_v43 = vpop.f32.mrb[75].mxu1  ;;  %8695 = vmatprep.subr.bf16.mxu1 %v9317_v52  ;;  %8713 = vmatprep.subr.bf16.mxu0 %v9317_v52 }
 0x2cf   :  { %8680 = vmatmul.mubr.msk.bf16.vlgmr.msra.gmra.mrb[176].mxu1 %vm4844_vm6, %v4819_v45 }
 0x2d0   :  { %8696 = vmatpush3.bf16.msra.mxu1 %v9097_v41  ;;  %v10437_v49 = vpop.f32.mrb[128].mxu0  ;;  %8703 = vmatprep.mubr.msk.bf16.mxu1 %vm9318_vm0, %v9317_v52 }
 0x2d1   :  { %8697 = vmatprep.subr.bf16.mxu1 %v9317_v52  ;;  %v8589_v50 = vpop.f32.mrb[129].mxu0  ;;  %8714 = vmatpush3.bf16.msra.mxu0 %v9107_v47 }
 0x2d2   :  { %v1933_v53 = vpop.f32.mrb[76].mxu1  ;;  %v4144_v54 = vpop.f32.mrb[130].mxu0  ;;  %8731 = vmatprep.subr.bf16.mxu0 %v9317_v52 }
 0x2d3   :  { %v1939_v55 = vadd.f32 %v1933_v53, %v1876_v58  ;;  %v8317_v56 = vpop.f32.mrb[77].mxu1  ;;  %v8590_v57 = vpop.f32.mrb[131].mxu0 }
 0x2d4   :  { %8698 = vmatpush3.bf16.msra.mxu1 %v9098_v48  ;;  %v1936_v59 = vpop.f32.mrb[78].mxu1 }
 0x2d5   :  { %v8318_v63 = vpop.f32.mrb[79].mxu1  ;;  %8699 = vmatprep.subr.bf16.mxu1 %v9317_v52 }
 0x2d8   :  { %8700 = vmatpush3.bf16.msra.mxu1 %v9099_v61  ;;  %v10450_v2 = vpop.f32.mrb[132].mxu0 }
 0x2d9   :  { %8701 = vmatprep.subr.bf16.mxu1 %v9317_v52  ;;  %v8605_v4 = vpop.f32.mrb[133].mxu0 }
 0x2da   :  { %v2000_v5 = vpop.f32.mrb[80].mxu1  ;;  %v4274_v6 = vpop.f32.mrb[134].mxu0 }
 0x2db   :  { %v2006_v8 = vadd.f32 %v2000_v5, %v1939_v55  ;;  %v8325_v9 = vpop.f32.mrb[81].mxu1  ;;  %v8606_v10 = vpop.f32.mrb[135].mxu0 }
 0x2dc   :  { %8702 = vmatpush3.bf16.msra.mxu1 %v9100_v0  ;;  %v2003_v13 = vpop.f32.mrb[82].mxu1 }
 0x2dd   :  { %v8326_v15 = vpop.f32.mrb[83].mxu1  ;;  %8719 = vmatprep.subr.bf16.mxu1 %v9317_v52 }
 0x2df   :  { %8704 = vmatmul.mubr.msk.bf16.vlgmr.msra.gmra.mrb[180].mxu1 %vm4844_vm6, %v4965_v17 }
 0x2e0   :  { %v10458_v18 = vpop.f32.mrb[136].mxu0  ;;  %8720 = vmatpush3.bf16.msra.mxu1 %v9102_v14  ;;  %8727 = vmatprep.mubr.msk.bf16.mxu1 %vm9318_vm0, %v9317_v52 }
 0x2e1   :  { %v8621_v20 = vpop.f32.mrb[137].mxu0  ;;  %8721 = vmatprep.subr.bf16.mxu1 %v9317_v52 }
 0x2e2   :  { %v2063_v21 = vpop.f32.mrb[84].mxu1  ;;  %v4398_v22 = vpop.f32.mrb[138].mxu0 }
 0x2e3   :  { %v2069_v23 = vadd.f32 %v2063_v21, %v2006_v8  ;;  %v8333_v24 = vpop.f32.mrb[85].mxu1  ;;  %v8622_v26 = vpop.f32.mrb[139].mxu0 }
 0x2e4   :  { %v2066_v27 = vpop.f32.mrb[86].mxu1  ;;  %8722 = vmatpush3.bf16.msra.mxu1 %v9104_v19 }
 0x2e5   :  { %v8334_v31 = vpop.f32.mrb[87].mxu1  ;;  %8723 = vmatprep.subr.bf16.mxu1 %v9317_v52 }
 0x2e8   :  { %v10470_v33 = vpop.f32.mrb[140].mxu0  ;;  %8724 = vmatpush3.bf16.msra.mxu1 %v9106_v30 }
 0x2e9   :  { %v8637_v35 = vpop.f32.mrb[141].mxu0  ;;  %8725 = vmatprep.subr.bf16.mxu1 %v9317_v52 }
 0x2ea   :  { %v2130_v36 = vpop.f32.mrb[88].mxu1  ;;  %v4528_v58 = vpop.f32.mrb[142].mxu0 }
 0x2eb   :  { %v2136_v37 = vadd.f32 %v2130_v36, %v2069_v23  ;;  %v8341_v38 = vpop.f32.mrb[89].mxu1  ;;  %v8638_v39 = vpop.f32.mrb[143].mxu0 }
 0x2ec   :  { %v2133_v41 = vpop.f32.mrb[90].mxu1  ;;  %8726 = vmatpush3.bf16.msra.mxu1 %v9108_v34 }
 0x2ed   :  { %v8342_v43 = vpop.f32.mrb[91].mxu1  ;;  %8743 = vmatprep.subr.bf16.mxu1 %v9317_v52 }
 0x2f0   :  { %v10477_v45 = vpop.f32.mrb[144].mxu0 }
 0x2f1   :  { %v8653_v47 = vpop.f32.mrb[145].mxu0 }
 0x2f2   :  { %v2193_v48 = vpop.f32.mrb[92].mxu1  ;;  %v4652_v50 = vpop.f32.mrb[146].mxu0 }
 0x2f3   :  { %v2199_v53 = vadd.f32 %v2193_v48, %v2136_v37  ;;  %v8349_v54 = vpop.f32.mrb[93].mxu1  ;;  %v8654_v55 = vpop.f32.mrb[147].mxu0 }
 0x2f4   :  { %v2196_v56 = vpop.f32.mrb[94].mxu1 }
 0x2f5   :  { %v8350_v57 = vpop.f32.mrb[95].mxu1 }
 0x2f8   :  { %v10479_v59 = vpop.f32.mrb[148].mxu0 }
 0x2f9   :  { %v8669_v61 = vpop.f32.mrb[149].mxu0 }
 0x2fa   :  { %v2256_v63 = vpop.f32.mrb[96].mxu1  ;;  %v4782_v0 = vpop.f32.mrb[150].mxu0 }
 0x2fb   :  { %v2262_v4 = vadd.f32 %v2256_v63, %v2199_v53  ;;  %v8357_v5 = vpop.f32.mrb[97].mxu1  ;;  %v8670_v6 = vpop.f32.mrb[151].mxu0  ;;  %v9113_v63 = vld [vmem:[%s11086_s5 + $0xc0] sm:$0xff]  }
 0x2fc   :  { %v2259_v7 = vpop.f32.mrb[98].mxu1  ;;  %v9115_v6 = vld [vmem:[%s11086_s5 + $0xc8] sm:$0xff]  }
 0x2fd   :  { %v8358_v8 = vpop.f32.mrb[99].mxu1  ;;  %v2323_v9 = vadd.f32 %v10132_v28, %v2262_v4 }
 0x302   :  { %v2384_v10 = vpop.f32.mrb[100].mxu1 }
 0x303   :  { %v2390_v13 = vadd.f32 %v2384_v10, %v2323_v9  ;;  %v8373_v14 = vpop.f32.mrb[101].mxu1  ;;  %v9111_v10 = vld [vmem:[%s11086_s5 + $0xb0] sm:$0xff]  }
 0x304   :  { %v2387_v15 = vpop.f32.mrb[102].mxu1 }
 0x305   :  { %v8374_v17 = vpop.f32.mrb[103].mxu1  ;;  %v2453_v19 = vadd.f32 %v10146_v42, %v2390_v13  ;;  %v9117_v13 = vld [vmem:[%s11086_s5 + $0xd0] sm:$0xff]  }
 0x30a   :  { %v2510_v20 = vpop.f32.mrb[104].mxu1 }
 0x30b   :  { %v2516_v21 = vadd.f32 %v2510_v20, %v2453_v19  ;;  %v8389_v22 = vpop.f32.mrb[105].mxu1  ;;  %v9119_v19 = vld [vmem:[%s11086_s5 + $0xd8] sm:$0xff]  }
 0x30c   :  { %v2513_v23 = vpop.f32.mrb[106].mxu1 }
 0x30d   :  { %v8390_v24 = vpop.f32.mrb[107].mxu1  ;;  %v2577_v26 = vadd.f32 %v10260_v51, %v2516_v21 }
 0x30e   :  { %v9114_v24 = vld [vmem:[%s11086_s5 + $0xe0] sm:$0xff]  }
 0x312   :  { %v2638_v27 = vpop.f32.mrb[108].mxu1 }
 0x313   :  { %v2644_v30 = vadd.f32 %v2638_v27, %v2577_v26  ;;  %v8405_v31 = vpop.f32.mrb[109].mxu1 }
 0x314   :  { %v2641_v34 = vpop.f32.mrb[110].mxu1 }
 0x315   :  { %v2707_v28 = vadd.f32 %v10271_v3, %v2644_v30  ;;  %v8406_v35 = vpop.f32.mrb[111].mxu1  ;;  %v9116_v30 = vld [vmem:[%s11086_s5 + $0xe8] sm:$0xff]  }
 0x317   :  { %v2715_v36 = vadd.f32 %v10371_v44, %v2707_v28 }
 0x319   :  { %v2716_v58 = vmax.f32 %v2715_v36, 0.0  ;;  %v9118_v36 = vld [vmem:[%s11086_s5 + $0xf0] sm:$0xff]  }
 0x31a   :  { %v2782_v37 = vpop.f32.mrb[112].mxu1 }
 0x31b   :  { %v2717_v38 = vpack.c.bf16 %v2716_v58, %v2716_v58  ;;  %v2840_v42 = vadd.f32 %v10281_v16, %v2782_v37  ;;  %v8421_v39 = vpop.f32.mrb[113].mxu1  ;;  %v9109_v16 = vld [vmem:[%s11086_s5 + $0xa0] sm:$0xff]   ;;  %v9120_v37 = vld [vmem:[%s11086_s5 + $0xf8] sm:$0xff]  }
 0x31c   :  { %v2785_v41 = vpop.f32.mrb[114].mxu1 }
 0x31d   :  { %v2719_v43 = vrot.slane %v2717_v38, 4  ;;  %v8422_v47 = vpop.f32.mrb[115].mxu1 }
 0x31f   :  { %2722 = vst.msk [vmem:[#allocation3] sm:$0xf0] %vm2721_vm7, %v2719_v43 }
 0x322   :  { %v2905_v51 = vpop.f32.mrb[116].mxu1 }
 0x323   :  { %v2911_v48 = vadd.f32 %v2905_v51, %v2840_v42  ;;  %v8437_v50 = vpop.f32.mrb[117].mxu1 }
 0x324   :  { %v2908_v53 = vpop.f32.mrb[118].mxu1 }
 0x325   :  { %v8438_v3 = vpop.f32.mrb[119].mxu1  ;;  %v2974_v54 = vadd.f32 %v10295_v32, %v2911_v48  ;;  %v9110_v32 = vld [vmem:[%s11086_s5 + $0xa8] sm:$0xff]  }
 0x326   :  { %v5034_v55 = vld [vmem:[#allocation3] sm:$0x30]  ;;  %v5192_v21 = vld [vmem:[#allocation3] sm:$0xc0] }
 0x327   :  { %v5113_v56 = vld [vmem:[#allocation3] sm:$0x60]  ;;  %v5044_v57 = vrot.slane %v5034_v55, 4  ;;  %v5202_v26 = vrot.slane %v5192_v21, 6 }
 0x328   :  { %v5123_v61 = vrot.slane %v5113_v56, 5 }
 0x329   :  { %8716 = vmatmul.mubr.msk.bf16.vlgmr.msra.gmra.mrb[156].mxu0 %vm4844_vm6, %v5044_v57 }
 0x32a   :  { %8728 = vmatmul.mubr.msk.bf16.vlgmr.msra.gmra.mrb[184].mxu1 %vm4844_vm6, %v5123_v61  ;;  %8732 = vmatpush3.bf16.msra.mxu0 %v9109_v16  ;;  %v3031_v0 = vpop.f32.mrb[120].mxu1 }
 0x32b   :  { %8739 = vmatprep.mubr.msk.bf16.mxu0 %vm9318_vm0, %v9317_v52  ;;  %v3037_v4 = vadd.f32 %v3031_v0, %v2974_v54  ;;  %v8453_v5 = vpop.f32.mrb[121].mxu1  ;;  %8733 = vmatprep.subr.bf16.mxu0 %v9317_v52 }
 0x32c   :  { %8744 = vmatpush3.bf16.msra.mxu1 %v9113_v63  ;;  %v3034_v7 = vpop.f32.mrb[122].mxu1  ;;  %8751 = vmatprep.mubr.msk.bf16.mxu1 %vm9318_vm0, %v9317_v52 }
 0x32d   :  { %8745 = vmatprep.subr.bf16.mxu1 %v9317_v52  ;;  %v8454_v8 = vpop.f32.mrb[123].mxu1  ;;  %v3098_v9 = vadd.f32 %v10313_v46, %v3037_v4  ;;  %v9112_v46 = vld [vmem:[%s11086_s5 + $0xb8] sm:$0xff]   ;;  %v9121_v7 = vld [vmem:[%s11086_s5 + $0x100] sm:$0xff]  }
 0x32e   :  { %8734 = vmatpush3.bf16.msra.mxu0 %v9110_v32 }
 0x32f   :  { %8735 = vmatprep.subr.bf16.mxu0 %v9317_v52 }
 0x330   :  { %8746 = vmatpush3.bf16.msra.mxu1 %v9115_v6 }
 0x331   :  { %8747 = vmatprep.subr.bf16.mxu1 %v9317_v52 }
 0x332   :  { %8736 = vmatpush3.bf16.msra.mxu0 %v9111_v10  ;;  %v3159_v14 = vpop.f32.mrb[124].mxu1 }
 0x333   :  { %v3165_v15 = vadd.f32 %v3159_v14, %v3098_v9  ;;  %v8469_v17 = vpop.f32.mrb[125].mxu1  ;;  %8737 = vmatprep.subr.bf16.mxu0 %v9317_v52 }
 0x334   :  { %8748 = vmatpush3.bf16.msra.mxu1 %v9117_v13  ;;  %v3162_v20 = vpop.f32.mrb[126].mxu1  ;;  %v9122_v13 = vld [vmem:[%s11086_s5 + $0x20] sm:$0xff]   ;;  %v9124_v17 = vld [vmem:[%s11086_s5 + $0x28] sm:$0xff]  }
 0x335   :  { %8749 = vmatprep.subr.bf16.mxu1 %v9317_v52  ;;  %v8470_v22 = vpop.f32.mrb[127].mxu1  ;;  %v3228_v23 = vadd.f32 %v10324_v62, %v3165_v15  ;;  %v9123_v15 = vld [vmem:[%s11086_s5 + $0x108] sm:$0xff]  }
 0x336   :  { %8738 = vmatpush3.bf16.msra.mxu0 %v9112_v46 }
 0x337   :  { %8755 = vmatprep.subr.bf16.mxu0 %v9317_v52 }
 0x338   :  { %8750 = vmatpush3.bf16.msra.mxu1 %v9119_v19  ;;  %v9125_v19 = vld [vmem:[%s11086_s5 + $0x110] sm:$0xff]  }
 0x339   :  { %8767 = vmatprep.subr.bf16.mxu1 %v9317_v52  ;;  %8740 = vmatmul.mubr.msk.bf16.vlgmr.msra.gmra.mrb[160].mxu0 %vm4844_vm6, %v5202_v26 }
 0x33a   :  { %v3285_v27 = vpop.f32.mrb[128].mxu1  ;;  %8756 = vmatpush3.bf16.msra.mxu0 %v9114_v24  ;;  %8763 = vmatprep.mubr.msk.bf16.mxu0 %vm9318_vm0, %v9317_v52 }
 0x33b   :  { %v3291_v62 = vadd.f32 %v3285_v27, %v3228_v23  ;;  %v8485_v31 = vpop.f32.mrb[129].mxu1  ;;  %8757 = vmatprep.subr.bf16.mxu0 %v9317_v52  ;;  %v9126_v23 = vld [vmem:[%s11086_s5 + $0x30] sm:$0xff]   ;;  %v9127_v27 = vld [vmem:[%s11086_s5 + $0x118] sm:$0xff]  }
 0x33c   :  { %v3288_v34 = vpop.f32.mrb[130].mxu1 }
 0x33d   :  { %v8486_v28 = vpop.f32.mrb[131].mxu1  ;;  %v3358_v35 = vadd.f32 %v10334_v12, %v3291_v62  ;;  %v5527_v34 = vld [vmem:[#allocation3] sm:$0x60] }
 0x33e   :  { %8758 = vmatpush3.bf16.msra.mxu0 %v9116_v30  ;;  %v9128_v30 = vld [vmem:[%s11086_s5 + $0x38] sm:$0xff]  }
 0x33f   :  { %8759 = vmatprep.subr.bf16.mxu0 %v9317_v52 }
 0x342   :  { %v3415_v58 = vpop.f32.mrb[132].mxu1  ;;  %8760 = vmatpush3.bf16.msra.mxu0 %v9118_v36 }
 0x343   :  { %v3421_v38 = vadd.f32 %v3415_v58, %v3358_v35  ;;  %v8501_v42 = vpop.f32.mrb[133].mxu1  ;;  %8761 = vmatprep.subr.bf16.mxu0 %v9317_v52 }
 0x344   :  { %v3418_v39 = vpop.f32.mrb[134].mxu1  ;;  %v5537_v42 = vrot.slane %v5527_v34, 5  ;;  %v9149_v34 = vld [vmem:[%s11086_s5 + $0xc8] sm:$0xff]  }
 0x345   :  { %v8502_v41 = vpop.f32.mrb[135].mxu1  ;;  %v3488_v12 = vadd.f32 %v10347_v25, %v3421_v38 }
 0x346   :  { %8762 = vmatpush3.bf16.msra.mxu0 %v9120_v37  ;;  %v9130_v37 = vld [vmem:[%s11086_s5 + $0x40] sm:$0xff]   ;;  %v9131_v41 = vld [vmem:[%s11086_s5 + $0x8] sm:$0xff]  }
 0x347   :  { %8779 = vmatprep.subr.bf16.mxu0 %v9317_v52 }
 0x34a   :  { %v3545_v43 = vpop.f32.mrb[136].mxu1 }
 0x34b   :  { %v3551_v47 = vadd.f32 %v3545_v43, %v3488_v12  ;;  %v8517_v51 = vpop.f32.mrb[137].mxu1  ;;  %v9132_v12 = vld [vmem:[%s11086_s5 + $0x48] sm:$0xff]   ;;  %v9133_v43 = vld [vmem:[%s11086_s5 + $0x10] sm:$0xff]  }
 0x34c   :  { %v3548_v48 = vpop.f32.mrb[138].mxu1 }
 0x34d   :  { %v8518_v50 = vpop.f32.mrb[139].mxu1  ;;  %v3618_v53 = vadd.f32 %v10365_v40, %v3551_v47 }
 0x34e   :  { %v9134_v50 = vld [vmem:[%s11086_s5 + $0x50] sm:$0xff]  }
 0x352   :  { %v3675_v3 = vpop.f32.mrb[140].mxu1 }
 0x353   :  { %v3681_v54 = vadd.f32 %v3675_v3, %v3618_v53  ;;  %v8533_v55 = vpop.f32.mrb[141].mxu1 }
 0x354   :  { %v3678_v56 = vpop.f32.mrb[142].mxu1  ;;  %v9136_v55 = vld [vmem:[%s11086_s5 + $0x58] sm:$0xff]  }
 0x355   :  { %v3748_v16 = vadd.f32 %v10382_v60, %v3681_v54  ;;  %v8534_v57 = vpop.f32.mrb[143].mxu1  ;;  %v9135_v54 = vld [vmem:[%s11086_s5 + $0x18] sm:$0xff]   ;;  %v5518_v56 = vld [vmem:[#allocation3] sm:$0x30] }
 0x356   :  { %v5674_v57 = vld [vmem:[#allocation3] sm:$0xc0] }
 0x357   :  { %v3756_v61 = vadd.f32 %v10371_v44, %v3748_v16 }
 0x359   :  { %v3757_v25 = vmax.f32 %v3756_v61, 0.0 }
 0x35a   :  { %v3825_v63 = vpop.f32.mrb[144].mxu1 }
 0x35b   :  { %v3758_v0 = vpack.c.bf16 %v3757_v25, %v3757_v25  ;;  %v3883_v32 = vadd.f32 %v10393_v11, %v3825_v63  ;;  %v8549_v4 = vpop.f32.mrb[145].mxu1  ;;  %v5606_v63 = vrot.slane %v5518_v56, 4  ;;  %v9156_v56 = vld [vmem:[%s11086_s5 + $0xf0] sm:$0xff]  }
 0x35c   :  { %v3828_v5 = vpop.f32.mrb[146].mxu1 }
 0x35d   :  { %3759 = vst.msk [vmem:[#allocation3 + $0x8] sm:$0xf] %vm1680_vm5, %v3758_v0  ;;  %v8550_v6 = vpop.f32.mrb[147].mxu1  ;;  %v5684_v5 = vrot.slane %v5674_v57, 6  ;;  %v9159_v57 = vld [vmem:[%s11086_s5 + $0x110] sm:$0xff]  }
 0x362   :  { %v3944_v40 = vpop.f32.mrb[148].mxu1 }
 0x363   :  { %v3950_v8 = vadd.f32 %v3944_v40, %v3883_v32  ;;  %v8565_v60 = vpop.f32.mrb[149].mxu1  ;;  %v9138_v32 = vld [vmem:[%s11086_s5 + $0x80] sm:$0xff]   ;;  %v9139_v40 = vld [vmem:[%s11086_s5 + $0x68] sm:$0xff]  }
 0x364   :  { %v3947_v9 = vpop.f32.mrb[150].mxu1  ;;  %v5271_v10 = vld [vmem:[#allocation3 + $0x8] sm:$0x3]  ;;  %v5427_v62 = vld [vmem:[#allocation3 + $0x8] sm:$0xc] }
 0x365   :  { %v5348_v44 = vld [vmem:[#allocation3 + $0x8] sm:$0x6]  ;;  %v8566_v11 = vpop.f32.mrb[151].mxu1  ;;  %8752 = vmatmul.mubr.msk.bf16.vlgmr.msra.gmra.mrb[188].mxu1 %vm4844_vm6, %v5271_v10  ;;  %v4017_v46 = vadd.f32 %v10415_v29, %v3950_v8  ;;  %v5437_v36 = vrot.slane %v5427_v62, 2  ;;  %v9141_v8 = vld [vmem:[%s11086_s5 + $0x70] sm:$0xff]   ;;  %v9146_v62 = vld [vmem:[%s11086_s5 + $0xa8] sm:$0xff]  }
 0x366   :  { %v5358_v14 = vrot.slane %v5348_v44, 1  ;;  %8768 = vmatpush3.bf16.msra.mxu1 %v9121_v7  ;;  %8775 = vmatprep.mubr.msk.bf16.mxu1 %vm9318_vm0, %v9317_v52  ;;  %v9140_v7 = vld [vmem:[%s11086_s5 + $0x88] sm:$0xff]   ;;  %v9142_v44 = vld [vmem:[%s11086_s5 + $0x90] sm:$0xff]  }
 0x367   :  { %8769 = vmatprep.subr.bf16.mxu1 %v9317_v52 }
 0x368   :  { %8764 = vmatmul.mubr.msk.bf16.vlgmr.msra.gmra.mrb[164].mxu0 %vm4844_vm6, %v5358_v14  ;;  %v9143_v14 = vld [vmem:[%s11086_s5 + $0x78] sm:$0xff]  }
 0x369   :  { %8780 = vmatpush3.bf16.msra.mxu0 %v9122_v13  ;;  %8787 = vmatprep.mubr.msk.bf16.mxu0 %vm9318_vm0, %v9317_v52 }
 0x36a   :  { %8781 = vmatprep.subr.bf16.mxu0 %v9317_v52  ;;  %8770 = vmatpush3.bf16.msra.mxu1 %v9123_v15  ;;  %v4074_v29 = vpop.f32.mrb[152].mxu1 }
 0x36b   :  { %v4080_v20 = vadd.f32 %v4074_v29, %v4017_v46  ;;  %v8581_v21 = vpop.f32.mrb[153].mxu1  ;;  %8771 = vmatprep.subr.bf16.mxu1 %v9317_v52  ;;  %v9144_v46 = vld [vmem:[%s11086_s5 + $0x98] sm:$0xff]  }
 0x36c   :  { %v4077_v22 = vpop.f32.mrb[154].mxu1 }
 0x36d   :  { %8782 = vmatpush3.bf16.msra.mxu0 %v9124_v17  ;;  %v8582_v24 = vpop.f32.mrb[155].mxu1  ;;  %v4147_v26 = vadd.f32 %v10437_v49, %v4080_v20  ;;  %v9129_v49 = vld [vmem:[%s11086_s5] sm:$0xff]   ;;  %v5830_v17 = vld [vmem:[#allocation3 + $0x8] sm:$0x6] }
 0x36e   :  { %8783 = vmatprep.subr.bf16.mxu0 %v9317_v52  ;;  %8772 = vmatpush3.bf16.msra.mxu1 %v9125_v19  ;;  %v7630_v20 = vld [vmem:[%s11085_s4] ss:$0 sm:$0xff]  ;;  %v5753_v22 = vld [vmem:[#allocation3 + $0x8] sm:$0x3] }
 0x36f   :  { %8773 = vmatprep.subr.bf16.mxu1 %v9317_v52 }
 0x371   :  { %8784 = vmatpush3.bf16.msra.mxu0 %v9126_v23  ;;  %v9147_v23 = vld [vmem:[%s11086_s5 + $0xc0] sm:$0xff]  }
 0x372   :  { %8785 = vmatprep.subr.bf16.mxu0 %v9317_v52  ;;  %8774 = vmatpush3.bf16.msra.mxu1 %v9127_v27  ;;  %v4204_v31 = vpop.f32.mrb[156].mxu1  ;;  %v5840_v27 = vrot.slane %v5830_v17, 1  ;;  %v9181_v17 = vld [vmem:[%s11088_s7 + $0xe4] ss:$16 sps:$4 sm:$0xff]  }
 0x373   :  { %v4210_v28 = vadd.f32 %v4204_v31, %v4147_v26  ;;  %v8597_v35 = vpop.f32.mrb[157].mxu1  ;;  %8791 = vmatprep.subr.bf16.mxu1 %v9317_v52 }
 0x374   :  { %v4207_v58 = vpop.f32.mrb[158].mxu1 }
 0x375   :  { %8786 = vmatpush3.bf16.msra.mxu0 %v9128_v30  ;;  %8776 = vmatmul.mubr.msk.bf16.vlgmr.msra.gmra.mrb[192].mxu1 %vm4844_vm6, %v5437_v36  ;;  %v8598_v38 = vpop.f32.mrb[159].mxu1  ;;  %v4277_v39 = vadd.f32 %v10450_v2, %v4210_v28  ;;  %v9148_v36 = vld [vmem:[%s11086_s5 + $0xb0] sm:$0xff]  }
 0x376   :  { %8803 = vmatprep.subr.bf16.mxu0 %v9317_v52  ;;  %8792 = vmatpush3.bf16.msra.mxu1 %v9129_v49 }
 0x377   :  { %8799 = vmatprep.mubr.msk.bf16.mxu1 %vm9318_vm0, %v9317_v52  ;;  %8793 = vmatprep.subr.bf16.mxu1 %v9317_v52 }
 0x378   :  { %8788 = vmatmul.mubr.msk.bf16.vlgmr.msra.gmra.mrb[168].mxu0 %vm4844_vm6, %v5537_v42  ;;  %v9150_v42 = vld [vmem:[%s11086_s5 + $0xb8] sm:$0xff]  }
 0x379   :  { %8804 = vmatpush3.bf16.msra.mxu0 %v9130_v37  ;;  %8811 = vmatprep.mubr.msk.bf16.mxu0 %vm9318_vm0, %v9317_v52  ;;  %v9151_v37 = vld [vmem:[%s11086_s5 + $0xd0] sm:$0xff]  }
 0x37a   :  { %8805 = vmatprep.subr.bf16.mxu0 %v9317_v52  ;;  %8794 = vmatpush3.bf16.msra.mxu1 %v9131_v41  ;;  %v4332_v2 = vpop.f32.mrb[160].mxu1  ;;  %v9152_v41 = vld [vmem:[%s11086_s5 + $0xd8] sm:$0xff]  }
 0x37b   :  { %v4338_v47 = vadd.f32 %v4332_v2, %v4277_v39  ;;  %v8613_v51 = vpop.f32.mrb[161].mxu1  ;;  %8795 = vmatprep.subr.bf16.mxu1 %v9317_v52  ;;  %v5909_v39 = vld [vmem:[#allocation3 + $0x8] sm:$0xc]  ;;  %v9153_v2 = vld [vmem:[%s11086_s5 + $0xe0] sm:$0xff]  }
 0x37c   :  { %v4335_v48 = vpop.f32.mrb[162].mxu1  ;;  %v5919_v51 = vrot.slane %v5909_v39, 2 }
 0x37d   :  { %8806 = vmatpush3.bf16.msra.mxu0 %v9132_v12  ;;  %v8614_v53 = vpop.f32.mrb[163].mxu1  ;;  %v4401_v3 = vadd.f32 %v10458_v18, %v4338_v47  ;;  %v9137_v18 = vld [vmem:[%s11086_s5 + $0x60] sm:$0xff]  }
 0x37e   :  { %8807 = vmatprep.subr.bf16.mxu0 %v9317_v52  ;;  %8796 = vmatpush3.bf16.msra.mxu1 %v9133_v43 }
 0x37f   :  { %8797 = vmatprep.subr.bf16.mxu1 %v9317_v52 }
 0x381   :  { %8808 = vmatpush3.bf16.msra.mxu0 %v9134_v50 }
 0x382   :  { %8809 = vmatprep.subr.bf16.mxu0 %v9317_v52  ;;  %8798 = vmatpush3.bf16.msra.mxu1 %v9135_v54  ;;  %v4458_v16 = vpop.f32.mrb[164].mxu1  ;;  %v9155_v54 = vld [vmem:[%s11086_s5 + $0x100] sm:$0xff]  }
 0x383   :  { %v4464_v61 = vadd.f32 %v4458_v16, %v4401_v3  ;;  %v8629_v25 = vpop.f32.mrb[165].mxu1  ;;  %8815 = vmatprep.subr.bf16.mxu1 %v9317_v52  ;;  %v9154_v3 = vld [vmem:[%s11086_s5 + $0xe8] sm:$0xff]  }
 0x384   :  { %v4461_v0 = vpop.f32.mrb[166].mxu1  ;;  %v9157_v16 = vld [vmem:[%s11086_s5 + $0x108] sm:$0xff]  }
 0x385   :  { %8810 = vmatpush3.bf16.msra.mxu0 %v9136_v55  ;;  %8800 = vmatmul.mubr.msk.bf16.vlgmr.msra.gmra.mrb[196].mxu1 %vm4844_vm6, %v5606_v63  ;;  %v8630_v4 = vpop.f32.mrb[167].mxu1  ;;  %v4531_v6 = vadd.f32 %v10470_v33, %v4464_v61  ;;  %v9160_v63 = vld [vmem:[%s11086_s5 + $0x118] sm:$0xff]  }
 0x386   :  { %8827 = vmatprep.subr.bf16.mxu0 %v9317_v52  ;;  %8816 = vmatpush3.bf16.msra.mxu1 %v9137_v18  ;;  %v9158_v18 = vld [vmem:[%s11086_s5 + $0xf8] sm:$0xff]  }
 0x387   :  { %8823 = vmatprep.mubr.msk.bf16.mxu1 %vm9318_vm0, %v9317_v52  ;;  %8817 = vmatprep.subr.bf16.mxu1 %v9317_v52 }
 0x388   :  { %8812 = vmatmul.mubr.msk.bf16.vlgmr.msra.gmra.mrb[172].mxu0 %vm4844_vm6, %v5684_v5 }
 0x389   :  { %8828 = vmatpush3.bf16.msra.mxu0 %v9138_v32  ;;  %8835 = vmatprep.mubr.msk.bf16.mxu0 %vm9318_vm0, %v9317_v52 }
 0x38a   :  { %8829 = vmatprep.subr.bf16.mxu0 %v9317_v52  ;;  %8818 = vmatpush3.bf16.msra.mxu1 %v9139_v40  ;;  %v4586_v33 = vpop.f32.mrb[168].mxu1 }
 0x38b   :  { %v4592_v60 = vadd.f32 %v4586_v33, %v4531_v6  ;;  %v8645_v9 = vpop.f32.mrb[169].mxu1  ;;  %8819 = vmatprep.subr.bf16.mxu1 %v9317_v52  ;;  %v9163_v33 = vld [vmem:[%s11088_s7 + $0x84] ss:$16 sps:$4 sm:$0xff]  }
 0x38c   :  { %v4589_v10 = vpop.f32.mrb[170].mxu1  ;;  %v9167_v9 = vld [vmem:[%s11088_s7 + $0xa0] ss:$16 sps:$4 sm:$0xff]  }
 0x38d   :  { %8830 = vmatpush3.bf16.msra.mxu0 %v9140_v7  ;;  %v8646_v13 = vpop.f32.mrb[171].mxu1  ;;  %v4655_v11 = vadd.f32 %v10477_v45, %v4592_v60  ;;  %v9145_v45 = vld [vmem:[%s11086_s5 + $0xa0] sm:$0xff]   ;;  %v9164_v60 = vld [vmem:[%s11088_s7 + $0x88] ss:$16 sps:$4 sm:$0xff]  }
 0x38e   :  { %8831 = vmatprep.subr.bf16.mxu0 %v9317_v52  ;;  %8820 = vmatpush3.bf16.msra.mxu1 %v9141_v8  ;;  %v9161_v8 = vld [vmem:[%s11088_s7 + $0x80] ss:$16 sps:$4 sm:$0xff]   ;;  %v9169_v10 = vld [vmem:[%s11088_s7 + $0xa4] ss:$16 sps:$4 sm:$0xff]   ;;  %v9172_v13 = vld [vmem:[%s11088_s7 + $0xac] ss:$16 sps:$4 sm:$0xff]  }
 0x38f   :  { %8821 = vmatprep.subr.bf16.mxu1 %v9317_v52 }
 0x391   :  { %8832 = vmatpush3.bf16.msra.mxu0 %v9142_v44  ;;  %v9170_v44 = vld [vmem:[%s11088_s7 + $0xa8] ss:$16 sps:$4 sm:$0xff]  }
 0x392   :  { %8833 = vmatprep.subr.bf16.mxu0 %v9317_v52  ;;  %8822 = vmatpush3.bf16.msra.mxu1 %v9143_v14  ;;  %v4712_v15 = vpop.f32.mrb[172].mxu1  ;;  %v9178_v14 = vld [vmem:[%s11088_s7 + $0xcc] ss:$16 sps:$4 sm:$0xff]  }
 0x393   :  { %v4718_v29 = vadd.f32 %v4712_v15, %v4655_v11  ;;  %v8661_v19 = vpop.f32.mrb[173].mxu1  ;;  %8839 = vmatprep.subr.bf16.mxu1 %v9317_v52  ;;  %v9175_v11 = vld [vmem:[%s11088_s7 + $0xc4] ss:$16 sps:$4 sm:$0xff]   ;;  %v9176_v15 = vld [vmem:[%s11088_s7 + $0xc8] ss:$16 sps:$4 sm:$0xff]  }
 0x394   :  { %v4715_v21 = vpop.f32.mrb[174].mxu1  ;;  %v9184_v19 = vld [vmem:[%s11088_s7 + $0xec] ss:$16 sps:$4 sm:$0xff]  }
 0x395   :  { %8834 = vmatpush3.bf16.msra.mxu0 %v9144_v46  ;;  %v4785_v24 = vadd.f32 %v10479_v59, %v4718_v29  ;;  %8824 = vmatmul.mubr.msk.bf16.vlgmr.msra.gmra.mrb[200].mxu1 %vm4844_vm6, %v5753_v22  ;;  %v8662_v26 = vpop.f32.mrb[175].mxu1  ;;  %v9173_v46 = vld [vmem:[%s11088_s7 + $0xc0] ss:$16 sps:$4 sm:$0xff]   ;;  %v9182_v29 = vld [vmem:[%s11088_s7 + $0xe8] ss:$16 sps:$4 sm:$0xff]  }
 0x396   :  { %8851 = vmatprep.subr.bf16.mxu0 %v9317_v52  ;;  %8840 = vmatpush3.bf16.msra.mxu1 %v9145_v45  ;;  %v4949_v30 = vpop.f32.mrb[152].mxu0  ;;  %v9179_v45 = vld [vmem:[%s11088_s7 + $0xe0] ss:$16 sps:$4 sm:$0xff]   ;;  %v9190_v21 = vld [vmem:[%s11088_s7 + $0xc] ss:$16 sps:$4 sm:$0xff]  }
 0x397   :  { %8847 = vmatprep.mubr.msk.bf16.mxu1 %vm9318_vm0, %v9317_v52  ;;  %v4793_v31 = vadd.f32 %v7630_v20, %v4785_v24  ;;  %v8693_v49 = vpop.f32.mrb[153].mxu0  ;;  %8841 = vmatprep.subr.bf16.mxu1 %v9317_v52  ;;  %v9187_v20 = vld [vmem:[%s11088_s7 + $0x4] ss:$16 sps:$4 sm:$0xff]  }
 0x398   :  { %8836 = vmatmul.mubr.msk.bf16.vlgmr.msra.gmra.mrb[176].mxu0 %vm4844_vm6, %v5840_v27  ;;  %v4952_v59 = vpop.f32.mrb[154].mxu0 }
 0x399   :  { %8852 = vmatpush3.bf16.msra.mxu0 %v9147_v23  ;;  %8859 = vmatprep.mubr.msk.bf16.mxu0 %vm9318_vm0, %v9317_v52  ;;  %v4794_v28 = vmax.f32 %v4793_v31, 0.0  ;;  %v8694_v35 = vpop.f32.mrb[155].mxu0 }
 0x39a   :  { %8853 = vmatprep.subr.bf16.mxu0 %v9317_v52  ;;  %8842 = vmatpush3.bf16.msra.mxu1 %v9146_v62 }
 0x39b   :  { %v4795_v58 = vpack.c.bf16 %v4794_v28, %v4794_v28  ;;  %8843 = vmatprep.subr.bf16.mxu1 %v9317_v52 }
 0x39d   :  { %8854 = vmatpush3.bf16.msra.mxu0 %v9149_v34  ;;  %v4797_v38 = vrot.slane %v4795_v58, 4 }
 0x39e   :  { %8855 = vmatprep.subr.bf16.mxu0 %v9317_v52  ;;  %8844 = vmatpush3.bf16.msra.mxu1 %v9148_v36 }
 0x39f   :  { %4799 = vst.msk [vmem:[#allocation3 + $0x8] sm:$0xf0] %vm2721_vm7, %v4797_v38  ;;  %8845 = vmatprep.subr.bf16.mxu1 %v9317_v52 }
 0x3a1   :  { %8856 = vmatpush3.bf16.msra.mxu0 %v9151_v37 }
 0x3a2   :  { %8857 = vmatprep.subr.bf16.mxu0 %v9317_v52  ;;  %v4882_v12 = vpop.f32.mrb[176].mxu1  ;;  %8846 = vmatpush3.bf16.msra.mxu1 %v9150_v42 }
 0x3a3   :  { %v4950_v43 = vadd.f32 %v4949_v30, %v4882_v12  ;;  %v8681_v47 = vpop.f32.mrb[177].mxu1  ;;  %8863 = vmatprep.subr.bf16.mxu1 %v9317_v52 }
 0x3a4   :  { %v4885_v48 = vpop.f32.mrb[178].mxu1 }
 0x3a5   :  { %8858 = vmatpush3.bf16.msra.mxu0 %v9152_v41  ;;  %v8682_v50 = vpop.f32.mrb[179].mxu1  ;;  %8848 = vmatmul.mubr.msk.bf16.vlgmr.msra.gmra.mrb[204].mxu1 %vm4844_vm6, %v5919_v51 }
 0x3a6   :  { %8875 = vmatprep.subr.bf16.mxu0 %v9317_v52  ;;  %8864 = vmatpush3.bf16.msra.mxu1 %v9153_v2  ;;  %v5988_v53 = vld [vmem:[#allocation3 + $0x8] sm:$0x30]  ;;  %v6146_v6 = vld [vmem:[#allocation3 + $0x8] sm:$0xc0]  ;;  %v7676_v50 = vld [vmem:[%s11087_s6] ss:$0 sm:$0xff] }
 0x3a7   :  { %8871 = vmatprep.mubr.msk.bf16.mxu1 %vm9318_vm0, %v9317_v52  ;;  %8865 = vmatprep.subr.bf16.mxu1 %v9317_v52  ;;  %v5998_v55 = vrot.slane %v5988_v53, 4  ;;  %v6067_v61 = vld [vmem:[#allocation3 + $0x8] sm:$0x60]  ;;  %v6156_v7 = vrot.slane %v6146_v6, 6  ;;  %v9188_v6 = vld [vmem:[%s11088_s7 + $0x8] ss:$16 sps:$4 sm:$0xff]  }
 0x3a8   :  { %v6077_v4 = vrot.slane %v6067_v61, 5 }
 0x3a9   :  { %8860 = vmatmul.mubr.msk.bf16.vlgmr.msra.gmra.mrb[180].mxu0 %vm4844_vm6, %v5998_v55 }
 0x3aa   :  { %8866 = vmatpush3.bf16.msra.mxu1 %v9154_v3  ;;  %8876 = vmatpush3.bf16.msra.mxu0 %v9155_v54 }
 0x3ab   :  { %8867 = vmatprep.subr.bf16.mxu1 %v9317_v52  ;;  %8877 = vmatprep.subr.bf16.mxu0 %v9317_v52 }
 0x3ac   :  { %8883 = vmatprep.mubr.msk.bf16.mxu0 %vm9318_vm0, %v9317_v52 }
 0x3ae   :  { %8868 = vmatpush3.bf16.msra.mxu1 %v9156_v56  ;;  %8878 = vmatpush3.bf16.msra.mxu0 %v9157_v16 }
 0x3af   :  { %8869 = vmatprep.subr.bf16.mxu1 %v9317_v52  ;;  %8879 = vmatprep.subr.bf16.mxu0 %v9317_v52 }
 0x3b2   :  { %v5027_v25 = vpop.f32.mrb[180].mxu1  ;;  %8870 = vmatpush3.bf16.msra.mxu1 %v9158_v18  ;;  %8880 = vmatpush3.bf16.msra.mxu0 %v9159_v57 }
 0x3b3   :  { %v5033_v0 = vadd.f32 %v5027_v25, %v4950_v43  ;;  %v8705_v32 = vpop.f32.mrb[181].mxu1  ;;  %8881 = vmatprep.subr.bf16.mxu0 %v9317_v52  ;;  %v9166_v52 = vld [vmem:[%s11088_s7 + $0x8c] ss:$16 sps:$4 sm:$0xff]   ;;  %6363 = vmatprep.subr.bf16.mxu1 %v9163_v33 }
 0x3b4   :  { %v5030_v5 = vpop.f32.mrb[182].mxu1 }
 0x3b5   :  { %v8706_v40 = vpop.f32.mrb[183].mxu1  ;;  %8872 = vmatmul.mubr.msk.bf16.vlgmr.msra.gmra.mrb[208].mxu1 %vm4844_vm6, %v6077_v4 }
 0x3b6   :  { %8882 = vmatpush3.bf16.msra.mxu0 %v9160_v63  ;;  %6395 = vmatprep.mubr.bf16.mxu1 %v9316_v1  ;;  %v9194_v40 = vld [vmem:[%s11088_s7 + $0x24] ss:$16 sps:$4 sm:$0xff]  }
 0x3b7   :  { %6404 = vmatprep.subr.bf16.mxu0 %v9166_v52  ;;  %6364 = vmatpush1.bf16.msra.mxu1 %v9161_v8  ;;  %v9197_v8 = vld [vmem:[%s11088_s7 + $0x2c] ss:$16 sps:$4 sm:$0xff]  }
 0x3b8   :  { %6365 = vmatprep.subr.bf16.mxu1 %v9169_v10 }
 0x3b9   :  { %8884 = vmatmul.mubr.msk.bf16.vlgmr.msra.gmra.mrb[184].mxu0 %vm4844_vm6, %v6156_v7 }
 0x3ba   :  { %6436 = vmatprep.mubr.bf16.mxu0 %v9316_v1  ;;  %6405 = vmatpush1.bf16.msra.mxu0 %v9164_v60 }
 0x3bb   :  { %6406 = vmatprep.subr.bf16.mxu0 %v9172_v13  ;;  %6366 = vmatpush1.bf16.msra.mxu1 %v9167_v9  ;;  %v9192_v13 = vld [vmem:[%s11088_s7 + $0x20] ss:$16 sps:$4 sm:$0xff]  }
 0x3bc   :  { %6367 = vmatprep.subr.bf16.mxu1 %v9175_v11  ;;  %v9195_v11 = vld [vmem:[%s11088_s7 + $0x28] ss:$16 sps:$4 sm:$0xff]  }
 0x3be   :  { %6407 = vmatpush1.bf16.msra.mxu0 %v9170_v44 }
 0x3bf   :  { %6408 = vmatprep.subr.bf16.mxu0 %v9178_v14  ;;  %6368 = vmatpush1.bf16.msra.mxu1 %v9173_v46  ;;  %v9200_v14 = vld [vmem:[%s11088_s7 + $0x44] ss:$16 sps:$4 sm:$0xff]   ;;  %v9203_v46 = vld [vmem:[%s11088_s7 + $0x4c] ss:$16 sps:$4 sm:$0xff]  }
 0x3c0   :  { %6369 = vmatprep.subr.bf16.mxu1 %v9181_v17  ;;  %v9206_v17 = vld [vmem:[%s11088_s7 + $0x64] ss:$16 sps:$4 sm:$0xff]  }
 0x3c2   :  { %6409 = vmatpush1.bf16.msra.mxu0 %v9176_v15  ;;  %v9198_v15 = vld [vmem:[%s11088_s7 + $0x40] ss:$16 sps:$4 sm:$0xff]  }
 0x3c3   :  { %6410 = vmatprep.subr.bf16.mxu0 %v9184_v19  ;;  %6370 = vmatpush1.bf16.msra.mxu1 %v9179_v45  ;;  %v9201_v45 = vld [vmem:[%s11088_s7 + $0x48] ss:$16 sps:$4 sm:$0xff]   ;;  %v9204_v19 = vld [vmem:[%s11088_s7 + $0x60] ss:$16 sps:$4 sm:$0xff]  }
 0x3c4   :  { %6528 = vmatprep.subr.bf16.mxu1 %v9187_v20  ;;  %v9207_v20 = vld [vmem:[%s11088_s7 + $0x68] ss:$16 sps:$4 sm:$0xff]  }
 0x3c6   :  { %6411 = vmatpush1.bf16.msra.mxu0 %v9182_v29  ;;  %v9209_v29 = vld [vmem:[%s11088_s7 + $0x6c] ss:$16 sps:$4 sm:$0xff]  }
 0x3c7   :  { %6569 = vmatprep.subr.bf16.mxu0 %v9190_v21  ;;  %v9212_v21 = vld [vmem:[%s11088_s7 + $0x104] ss:$16 sps:$4 sm:$0xff]  }
 0x3fc   :  { %v5106_v22 = vpop.f32.mrb[156].mxu0 }
 0x3fd   :  { %v5185_v23 = vpop.f32.mrb[184].mxu1  ;;  %v5112_v24 = vadd.f32 %v5106_v22, %v5033_v0  ;;  %v8717_v26 = vpop.f32.mrb[157].mxu0  ;;  %v9185_v0 = vld [vmem:[%s11088_s7] ss:$16 sps:$4 sm:$0xff]   ;;  %v9215_v22 = vld [vmem:[%s11088_s7 + $0x10c] ss:$16 sps:$4 sm:$0xff]  }
 0x3fe   :  { %v8729_v27 = vpop.f32.mrb[185].mxu1  ;;  %v5109_v30 = vpop.f32.mrb[158].mxu0  ;;  %v9210_v26 = vld [vmem:[%s11088_s7 + $0x100] ss:$16 sps:$4 sm:$0xff]  }
 0x3ff   :  { %v5188_v62 = vpop.f32.mrb[186].mxu1  ;;  %v5191_v31 = vadd.f32 %v5185_v23, %v5112_v24  ;;  %v8718_v49 = vpop.f32.mrb[159].mxu0  ;;  %v9213_v27 = vld [vmem:[%s11088_s7 + $0x108] ss:$16 sps:$4 sm:$0xff]  }
 0x400   :  { %v8730_v59 = vpop.f32.mrb[187].mxu1  ;;  %v9221_v49 = vld [vmem:[%s11088_s7 + $0x12c] ss:$16 sps:$4 sm:$0xff]  }
 0x40c   :  { %v5264_v34 = vpop.f32.mrb[160].mxu0 }
 0x40d   :  { %v5270_v28 = vadd.f32 %v5264_v34, %v5191_v31  ;;  %v8741_v35 = vpop.f32.mrb[161].mxu0  ;;  %v9218_v31 = vld [vmem:[%s11088_s7 + $0x124] ss:$16 sps:$4 sm:$0xff]  }
 0x40e   :  { %v5267_v36 = vpop.f32.mrb[162].mxu0 }
 0x40f   :  { %v8742_v58 = vpop.f32.mrb[163].mxu0 }
 0x410   :  { %v9216_v58 = vld [vmem:[%s11088_s7 + $0x120] ss:$16 sps:$4 sm:$0xff]  }
 0x438   :  { %v5341_v37 = vpop.f32.mrb[188].mxu1 }
 0x439   :  { %v5347_v38 = vadd.f32 %v5341_v37, %v5270_v28  ;;  %v8753_v42 = vpop.f32.mrb[189].mxu1  ;;  %v9219_v37 = vld [vmem:[%s11088_s7 + $0x128] ss:$16 sps:$4 sm:$0xff]  }
 0x43a   :  { %v5344_v39 = vpop.f32.mrb[190].mxu1  ;;  %v9227_v42 = vld [vmem:[%s11088_s7 + $0x14c] ss:$16 sps:$4 sm:$0xff]  }
 0x43b   :  { %v5420_v41 = vpop.f32.mrb[164].mxu0  ;;  %v8754_v2 = vpop.f32.mrb[191].mxu1  ;;  %v9222_v39 = vld [vmem:[%s11088_s7 + $0x140] ss:$16 sps:$4 sm:$0xff]  }
 0x43c   :  { %v5426_v12 = vadd.f32 %v5420_v41, %v5347_v38  ;;  %v8765_v43 = vpop.f32.mrb[165].mxu0  ;;  %v9224_v38 = vld [vmem:[%s11088_s7 + $0x144] ss:$16 sps:$4 sm:$0xff]   ;;  %v9225_v41 = vld [vmem:[%s11088_s7 + $0x148] ss:$16 sps:$4 sm:$0xff]  }
 0x43d   :  { %v5423_v47 = vpop.f32.mrb[166].mxu0  ;;  %v9233_v2 = vld [vmem:[%s11088_s7 + $0x16c] ss:$16 sps:$4 sm:$0xff]   ;;  %v9228_v43 = vld [vmem:[%s11088_s7 + $0x160] ss:$16 sps:$4 sm:$0xff]  }
 0x43e   :  { %v8766_v51 = vpop.f32.mrb[167].mxu0  ;;  %v9231_v47 = vld [vmem:[%s11088_s7 + $0x168] ss:$16 sps:$4 sm:$0xff]  }
 0x43f   :  { %v9236_v51 = vld [vmem:[%s11088_s7 + $0x184] ss:$16 sps:$4 sm:$0xff]  }
 0x448   :  { %v5499_v48 = vpop.f32.mrb[192].mxu1 }
 0x449   :  { %v5505_v53 = vadd.f32 %v5499_v48, %v5426_v12  ;;  %v8777_v3 = vpop.f32.mrb[193].mxu1  ;;  %v9230_v12 = vld [vmem:[%s11088_s7 + $0x164] ss:$16 sps:$4 sm:$0xff]   ;;  %v9239_v48 = vld [vmem:[%s11088_s7 + $0x18c] ss:$16 sps:$4 sm:$0xff]  }
 0x44a   :  { %v5502_v54 = vpop.f32.mrb[194].mxu1 }
 0x44b   :  { %v5599_v55 = vpop.f32.mrb[168].mxu0  ;;  %v5513_v56 = vadd.f32 %v7676_v50, %v5505_v53  ;;  %v8778_v16 = vpop.f32.mrb[195].mxu1 }
 0x44c   :  { %v8789_v18 = vpop.f32.mrb[169].mxu0 }
 0x44d   :  { %v5602_v57 = vpop.f32.mrb[170].mxu0  ;;  %v5514_v61 = vmax.f32 %v5513_v56, 0.0 }
 0x44e   :  { %v8790_v25 = vpop.f32.mrb[171].mxu0 }
 0x44f   :  { %v5515_v63 = vpack.c.bf16 %v5514_v61, %v5514_v61 }
 0x451   :  { %5517 = vst.msk [vmem:[#allocation4] sm:$0x3] %vm5516_vm8, %v5515_v63 }
 0x458   :  { %v5668_v32 = vpop.f32.mrb[196].mxu1  ;;  %v9191_v4 = vld [vmem:[#allocation4] ss:$0 sps:$4 sm:$0x22]  }
 0x459   :  { %v8801_v5 = vpop.f32.mrb[197].mxu1  ;;  %v6279_v52 = vrot.slane %v9191_v4, 1  ;;  %v6242_v28 = vld [vmem:[#allocation4] sm:$0x1] }
 0x45a   :  { %v5671_v7 = vpop.f32.mrb[198].mxu1 }
 0x45b   :  { %v5746_v33 = vpop.f32.mrb[172].mxu0  ;;  %v8802_v60 = vpop.f32.mrb[199].mxu1  ;;  %7741 = vmatmul.mubr.msk.bf16.vlgmr.msra.gmra.mrb[212].mxu1 %vm4844_vm6, %v6279_v52  ;;  %7742 = vmatmul.mubr.msk.bf16.vlgmr.msra.gmra.mrb[188].mxu0 %vm4844_vm6, %v6279_v52  ;;  %v9237_v7 = vld [vmem:[%s11088_s7 + $0x188] ss:$16 sps:$4 sm:$0xff]   ;;  %v9243_v52 = vld [vmem:[%s11088_s7 + $0x1a4] ss:$16 sps:$4 sm:$0xff]  }
 0x45c   :  { %v8813_v9 = vpop.f32.mrb[173].mxu0  ;;  %6529 = vmatpush1.bf16.msra.mxu1 %v9185_v0  ;;  %6570 = vmatpush1.bf16.msra.mxu0 %v9188_v6  ;;  %v9240_v6 = vld [vmem:[#allocation4] ss:$0 sps:$4 sm:$0x44]  }
 0x45d   :  { %v5749_v10 = vpop.f32.mrb[174].mxu0  ;;  %6530 = vmatprep.subr.bf16.mxu1 %v9194_v40  ;;  %6571 = vmatprep.subr.bf16.mxu0 %v9197_v8  ;;  %v9234_v40 = vld [vmem:[%s11088_s7 + $0x180] ss:$16 sps:$4 sm:$0xff]   ;;  %v6630_v33 = vrot.slane %v9240_v6, 2  ;;  %v9246_v8 = vld [vmem:[%s11088_s7 + $0x1ac] ss:$16 sps:$4 sm:$0xff]  }
 0x45e   :  { %v8814_v44 = vpop.f32.mrb[175].mxu0  ;;  %6560 = vmatprep.mubr.bf16.mxu1 %v9316_v1  ;;  %6601 = vmatprep.mubr.bf16.mxu0 %v9316_v1  ;;  %v9241_v60 = vld [vmem:[%s11088_s7 + $0x1a0] ss:$16 sps:$4 sm:$0xff]   ;;  %v9244_v9 = vld [vmem:[%s11088_s7 + $0x1a8] ss:$16 sps:$4 sm:$0xff]  }
 0x45f   :  { %v9249_v10 = vld [vmem:[%s11088_s7 + $0x1c4] ss:$16 sps:$4 sm:$0xff]   ;;  %v9252_v44 = vld [vmem:[%s11088_s7 + $0x1cc] ss:$16 sps:$4 sm:$0xff]  }
 0x460   :  { %6531 = vmatpush1.bf16.msra.mxu1 %v9192_v13  ;;  %6572 = vmatpush1.bf16.msra.mxu0 %v9195_v11  ;;  %v9247_v13 = vld [vmem:[%s11088_s7 + $0x1c0] ss:$16 sps:$4 sm:$0xff]   ;;  %v9250_v11 = vld [vmem:[%s11088_s7 + $0x1c8] ss:$16 sps:$4 sm:$0xff]  }
 0x461   :  { %6532 = vmatprep.subr.bf16.mxu1 %v9200_v14  ;;  %6573 = vmatprep.subr.bf16.mxu0 %v9203_v46  ;;  %v9255_v14 = vld [vmem:[%s11088_s7 + $0x1e4] ss:$16 sps:$4 sm:$0xff]   ;;  %v9253_v46 = vld [vmem:[%s11088_s7 + $0x1e0] ss:$16 sps:$4 sm:$0xff]  }
 0x464   :  { %6533 = vmatpush1.bf16.msra.mxu1 %v9198_v15  ;;  %6574 = vmatpush1.bf16.msra.mxu0 %v9201_v45  ;;  %v9256_v15 = vld [vmem:[%s11088_s7 + $0x1e8] ss:$16 sps:$4 sm:$0xff]   ;;  %v9259_v45 = vld [vmem:[#allocation4] ss:$0 sps:$4 sm:$0x88]  }
 0x465   :  { %6534 = vmatprep.subr.bf16.mxu1 %v9206_v17  ;;  %6575 = vmatprep.subr.bf16.mxu0 %v9209_v29  ;;  %v6820_v17 = vrot.slane %v9259_v45, 3  ;;  %v9260_v29 = vld [vmem:[%s11090_s9 + $0x40] sm:$0xff]  }
 0x468   :  { %v5823_v23 = vpop.f32.mrb[200].mxu1  ;;  %6535 = vmatpush1.bf16.msra.mxu1 %v9204_v19  ;;  %6576 = vmatpush1.bf16.msra.mxu0 %v9207_v20  ;;  %v9261_v19 = vld [vmem:[%s11090_s9 + $0xc0] sm:$0xff]  }
 0x469   :  { %v8825_v24 = vpop.f32.mrb[201].mxu1  ;;  %6714 = vmatprep.subr.bf16.mxu1 %v9212_v21  ;;  %6755 = vmatprep.subr.bf16.mxu0 %v9215_v22  ;;  %v9262_v20 = vld [vmem:[%s11090_s9] sm:$0xff]   ;;  %v9264_v22 = vld [vmem:[%s11090_s9 + $0x48] sm:$0xff]  }
 0x46a   :  { %v5826_v30 = vpop.f32.mrb[202].mxu1  ;;  %v9263_v21 = vld [vmem:[%s11090_s9 + $0x80] sm:$0xff]   ;;  %v9265_v23 = vld [vmem:[%s11090_s9 + $0xc8] sm:$0xff]  }
 0x46b   :  { %v5902_v62 = vpop.f32.mrb[176].mxu0  ;;  %v8826_v59 = vpop.f32.mrb[203].mxu1  ;;  %7759 = vmatmul.mubr.msk.bf16.vlgmr.msra.gmra.mrb[216].mxu1 %vm4844_vm6, %v6242_v28  ;;  %7760 = vmatmul.mubr.msk.bf16.vlgmr.msra.gmra.mrb[192].mxu0 %vm4844_vm6, %v6242_v28  ;;  %v9266_v24 = vld [vmem:[%s11090_s9 + $0x8] sm:$0xff]   ;;  %v9269_v30 = vld [vmem:[%s11090_s9 + $0xd0] sm:$0xff]   ;;  %v9275_v28 = vld [vmem:[%s11090_s9 + $0x98] sm:$0xff]  }
 0x46c   :  { %v8837_v34 = vpop.f32.mrb[177].mxu0  ;;  %6715 = vmatpush1.bf16.msra.mxu1 %v9210_v26  ;;  %6756 = vmatpush1.bf16.msra.mxu0 %v9213_v27  ;;  %v9267_v26 = vld [vmem:[%s11090_s9 + $0x88] sm:$0xff]   ;;  %v9268_v27 = vld [vmem:[%s11090_s9 + $0x50] sm:$0xff]   ;;  %v9273_v59 = vld [vmem:[%s11090_s9 + $0xd8] sm:$0xff]  }
 0x46d   :  { %v5905_v35 = vpop.f32.mrb[178].mxu0  ;;  %6716 = vmatprep.subr.bf16.mxu1 %v9218_v31  ;;  %6757 = vmatprep.subr.bf16.mxu0 %v9221_v49  ;;  %v9270_v62 = vld [vmem:[%s11090_s9 + $0x10] sm:$0xff]   ;;  %v9272_v49 = vld [vmem:[%s11090_s9 + $0x58] sm:$0xff]  }
 0x46e   :  { %v8838_v36 = vpop.f32.mrb[179].mxu0  ;;  %6746 = vmatprep.mubr.bf16.mxu1 %v9316_v1  ;;  %6787 = vmatprep.mubr.bf16.mxu0 %v9316_v1  ;;  %v9271_v31 = vld [vmem:[%s11090_s9 + $0x90] sm:$0xff]   ;;  %v9274_v34 = vld [vmem:[%s11090_s9 + $0x18] sm:$0xff]   ;;  %v9276_v35 = vld [vmem:[%s11090_s9 + $0x60] sm:$0xff]  }
 0x46f   :  { %v9277_v36 = vld [vmem:[%s11090_s9 + $0xe0] sm:$0xff]  }
 0x470   :  { %6717 = vmatpush1.bf16.msra.mxu1 %v9216_v58  ;;  %6758 = vmatpush1.bf16.msra.mxu0 %v9219_v37  ;;  %v9278_v58 = vld [vmem:[%s11090_s9 + $0x20] sm:$0xff]  }
 0x471   :  { %6718 = vmatprep.subr.bf16.mxu1 %v9224_v38  ;;  %6759 = vmatprep.subr.bf16.mxu0 %v9227_v42  ;;  %v9279_v37 = vld [vmem:[%s11090_s9 + $0xa0] sm:$0xff]   ;;  %v9280_v38 = vld [vmem:[%s11090_s9 + $0x68] sm:$0xff]  }
 0x472   :  { %v9281_v42 = vld [vmem:[%s11090_s9 + $0xe8] sm:$0xff]  }
 0x474   :  { %6719 = vmatpush1.bf16.msra.mxu1 %v9222_v39  ;;  %6760 = vmatpush1.bf16.msra.mxu0 %v9225_v41  ;;  %v9282_v39 = vld [vmem:[%s11090_s9 + $0x28] sm:$0xff]  }
 0x475   :  { %6720 = vmatprep.subr.bf16.mxu1 %v9230_v12  ;;  %6761 = vmatprep.subr.bf16.mxu0 %v9233_v2  ;;  %v9283_v41 = vld [vmem:[%s11090_s9 + $0xa8] sm:$0xff]   ;;  %v9284_v12 = vld [vmem:[%s11090_s9 + $0x70] sm:$0xff]  }
 0x476   :  { %v9285_v2 = vld [vmem:[%s11090_s9 + $0xf0] sm:$0xff]  }
 0x478   :  { %v5981_v50 = vpop.f32.mrb[204].mxu1  ;;  %6721 = vmatpush1.bf16.msra.mxu1 %v9228_v43  ;;  %6762 = vmatpush1.bf16.msra.mxu0 %v9231_v47  ;;  %v9286_v43 = vld [vmem:[%s11090_s9 + $0x30] sm:$0xff]  }
 0x479   :  { %v8849_v53 = vpop.f32.mrb[205].mxu1  ;;  %6904 = vmatprep.subr.bf16.mxu1 %v9236_v51  ;;  %6945 = vmatprep.subr.bf16.mxu0 %v9239_v48  ;;  %v9287_v47 = vld [vmem:[%s11090_s9 + $0xb0] sm:$0xff]   ;;  %v9288_v51 = vld [vmem:[%s11090_s9 + $0x78] sm:$0xff]  }
 0x47a   :  { %v5984_v3 = vpop.f32.mrb[206].mxu1  ;;  %v9289_v48 = vld [vmem:[%s11090_s9 + $0xf8] sm:$0xff]  }
 0x47b   :  { %v8850_v54 = vpop.f32.mrb[207].mxu1  ;;  %7778 = vmatmul.mubr.msk.bf16.vlgmr.msra.gmra.mrb[220].mxu1 %vm4844_vm6, %v6630_v33  ;;  %7779 = vmatmul.mubr.msk.bf16.vlgmr.msra.gmra.mrb[196].mxu0 %vm4844_vm6, %v6630_v33  ;;  %v9290_v50 = vld [vmem:[%s11090_s9 + $0x38] sm:$0xff]  }
 0x47c   :  { %v6060_v55 = vpop.f32.mrb[180].mxu0  ;;  %6905 = vmatpush1.bf16.msra.mxu1 %v9234_v40  ;;  %6946 = vmatpush1.bf16.msra.mxu0 %v9237_v7  ;;  %v9291_v53 = vld [vmem:[%s11090_s9 + $0xb8] sm:$0xff]  }
 0x47d   :  { %v8861_v56 = vpop.f32.mrb[181].mxu0  ;;  %6906 = vmatprep.subr.bf16.mxu1 %v9243_v52  ;;  %6947 = vmatprep.subr.bf16.mxu0 %v9246_v8 }
 0x47e   :  { %v6063_v16 = vpop.f32.mrb[182].mxu0  ;;  %6936 = vmatprep.mubr.bf16.mxu1 %v9316_v1  ;;  %6977 = vmatprep.mubr.bf16.mxu0 %v9316_v1  ;;  %v9258_v1 = vld [vmem:[%s11088_s7 + $0x1ec] ss:$16 sps:$4 sm:$0xff]  }
 0x47f   :  { %v8862_v18 = vpop.f32.mrb[183].mxu0 }
 0x480   :  { %6907 = vmatpush1.bf16.msra.mxu1 %v9241_v60  ;;  %6948 = vmatpush1.bf16.msra.mxu0 %v9244_v9 }
 0x481   :  { %6908 = vmatprep.subr.bf16.mxu1 %v9249_v10  ;;  %6949 = vmatprep.subr.bf16.mxu0 %v9252_v44 }
 0x484   :  { %6909 = vmatpush1.bf16.msra.mxu1 %v9247_v13  ;;  %6950 = vmatpush1.bf16.msra.mxu0 %v9250_v11 }
 0x485   :  { %6910 = vmatprep.subr.bf16.mxu1 %v9255_v14  ;;  %6951 = vmatprep.subr.bf16.mxu0 %v9258_v1 }
 0x488   :  { %v6139_v57 = vpop.f32.mrb[208].mxu1  ;;  %6911 = vmatpush1.bf16.msra.mxu1 %v9253_v46  ;;  %6952 = vmatpush1.bf16.msra.mxu0 %v9256_v15 }
 0x489   :  { %v8873_v61 = vpop.f32.mrb[209].mxu1  ;;  %8115 = vmatprep.subr.bf16.mxu1 %v9260_v29  ;;  %8137 = vmatprep.subr.bf16.mxu0 %v9261_v19  ;;  %v6992_v29 = vlaneseq }
 0x48a   :  { %v6142_v25 = vpop.f32.mrb[210].mxu1 }
 0x48b   :  { %v8874_v63 = vpop.f32.mrb[211].mxu1  ;;  %7797 = vmatmul.mubr.msk.bf16.vlgmr.msra.gmra.mrb[224].mxu1 %vm4844_vm6, %v6820_v17  ;;  %7798 = vmatmul.mubr.msk.bf16.vlgmr.msra.gmra.mrb[200].mxu0 %vm4844_vm6, %v6820_v17  ;;  %v6993_v19 = vshrl.u32 %v6992_v29, 7 }
 0x48c   :  { %v6218_v0 = vpop.f32.mrb[184].mxu0  ;;  %8116 = vmatpush3.bf16.msra.mxu1 %v9262_v20  ;;  %8138 = vmatpush3.bf16.msra.mxu0 %v9263_v21 }
 0x48d   :  { %v8885_v32 = vpop.f32.mrb[185].mxu0  ;;  %8117 = vmatprep.subr.bf16.mxu1 %v9264_v22  ;;  %8139 = vmatprep.subr.bf16.mxu0 %v9265_v23  ;;  %v6994_v20 = vsub.s32 0, %v6993_v19  ;;  %v7002_v21 = vsub.s32 2, %v6993_v19  ;;  %v6990_v22 = vld [vmem:[%s11089_s8] sm:$0xf]  ;;  %v6998_v23 = vsub.s32 1, %v6993_v19 }
 0x48e   :  { %v6221_v4 = vpop.f32.mrb[186].mxu0 }
 0x48f   :  { %v8886_v5 = vpop.f32.mrb[187].mxu0 }
 0x490   :  { %8118 = vmatpush3.bf16.msra.mxu1 %v9266_v24  ;;  %8140 = vmatpush3.bf16.msra.mxu0 %v9267_v26  ;;  %v7006_v24 = vsub.s32 3, %v6993_v19  ;;  %v6995_v26 = vrot.slane %v6990_v22, %v6994_v20 }
 0x491   :  { %8119 = vmatprep.subr.bf16.mxu1 %v9268_v27  ;;  %8141 = vmatprep.subr.bf16.mxu0 %v9269_v30  ;;  %v7003_v27 = vrot.slane %v6990_v22, %v7002_v21 }
 0x494   :  { %8120 = vmatpush3.bf16.msra.mxu1 %v9270_v62  ;;  %8142 = vmatpush3.bf16.msra.mxu0 %v9271_v31  ;;  %v6999_v31 = vrot.slane %v6990_v22, %v6998_v23 }
 0x495   :  { %8121 = vmatprep.subr.bf16.mxu1 %v9272_v49  ;;  %8143 = vmatprep.subr.bf16.mxu0 %v9273_v59  ;;  %v7007_v49 = vrot.slane %v6990_v22, %v7006_v24 }
 0x498   :  { %8122 = vmatpush3.bf16.msra.mxu1 %v9274_v34  ;;  %8144 = vmatpush3.bf16.msra.mxu0 %v9275_v28 }
 0x499   :  { %8123 = vmatprep.subr.bf16.mxu1 %v9276_v35  ;;  %8145 = vmatprep.subr.bf16.mxu0 %v9277_v36 }
 0x49c   :  { %8124 = vmatpush3.bf16.msra.mxu1 %v9278_v58  ;;  %8146 = vmatpush3.bf16.msra.mxu0 %v9279_v37 }
 0x49d   :  { %8125 = vmatprep.subr.bf16.mxu1 %v9280_v38  ;;  %8147 = vmatprep.subr.bf16.mxu0 %v9281_v42 }
 0x4a0   :  { %8126 = vmatpush3.bf16.msra.mxu1 %v9282_v39  ;;  %8148 = vmatpush3.bf16.msra.mxu0 %v9283_v41 }
 0x4a1   :  { %8127 = vmatprep.subr.bf16.mxu1 %v9284_v12  ;;  %8149 = vmatprep.subr.bf16.mxu0 %v9285_v2 }
 0x4a4   :  { %8128 = vmatpush3.bf16.msra.mxu1 %v9286_v43  ;;  %8150 = vmatpush3.bf16.msra.mxu0 %v9287_v47 }
 0x4a5   :  { %8129 = vmatprep.subr.bf16.mxu1 %v9288_v51  ;;  %8151 = vmatprep.subr.bf16.mxu0 %v9289_v48 }
 0x4a8   :  { %8130 = vmatpush3.bf16.msra.mxu1 %v9290_v50  ;;  %8152 = vmatpush3.bf16.msra.mxu0 %v9291_v53 }
 0x52e   :  { %v6397_v3 = vpop.f32.mrb[212].mxu1  ;;  %v6438_v54 = vpop.f32.mrb[188].mxu0 }
 0x52f   :  { %v6399_v55 = vpop.f32.mrb[213].mxu1  ;;  %v6440_v56 = vpop.f32.mrb[189].mxu0 }
 0x530   :  { %v6401_v16 = vpop.f32.mrb[214].mxu1  ;;  %v6442_v18 = vpop.f32.mrb[190].mxu0 }
 0x531   :  { %v6402_v57 = vpop.f32.mrb[215].mxu1  ;;  %v6443_v61 = vpop.f32.mrb[191].mxu0  ;;  %v7799_v18 = vld [vmem:[%s11091_s10] ss:$0 sm:$0xff] }
 0x53e   :  { %v6562_v25 = vpop.f32.mrb[216].mxu1  ;;  %v6603_v63 = vpop.f32.mrb[192].mxu0 }
 0x53f   :  { %v6563_v0 = vadd.f32 %v6562_v25, %v6397_v3  ;;  %v6604_v32 = vadd.f32 %v6603_v63, %v6438_v54  ;;  %v6564_v4 = vpop.f32.mrb[217].mxu1  ;;  %v6605_v5 = vpop.f32.mrb[193].mxu0 }
 0x540   :  { %v6565_v6 = vadd.f32 %v6564_v4, %v6399_v55  ;;  %v6606_v40 = vadd.f32 %v6605_v5, %v6440_v56  ;;  %v6566_v7 = vpop.f32.mrb[218].mxu1  ;;  %v6607_v33 = vpop.f32.mrb[194].mxu0 }
 0x541   :  { %v6567_v52 = vpop.f32.mrb[219].mxu1  ;;  %v6608_v8 = vpop.f32.mrb[195].mxu0 }
 0x54e   :  { %v6748_v60 = vpop.f32.mrb[220].mxu1  ;;  %v6789_v9 = vpop.f32.mrb[196].mxu0 }
 0x54f   :  { %v6796_v10 = vadd.f32 %v6748_v60, %v6563_v0  ;;  %v6798_v44 = vadd.f32 %v6789_v9, %v6604_v32  ;;  %v6750_v13 = vpop.f32.mrb[221].mxu1  ;;  %v6791_v11 = vpop.f32.mrb[197].mxu0 }
 0x550   :  { %v6797_v14 = vadd.f32 %v6750_v13, %v6565_v6  ;;  %v6799_v1 = vadd.f32 %v6791_v11, %v6606_v40  ;;  %v6752_v46 = vpop.f32.mrb[222].mxu1  ;;  %v6793_v15 = vpop.f32.mrb[198].mxu0 }
 0x551   :  { %v6753_v45 = vpop.f32.mrb[223].mxu1  ;;  %v6794_v17 = vpop.f32.mrb[199].mxu0 }
 0x55e   :  { %v6938_v30 = vpop.f32.mrb[224].mxu1  ;;  %v6979_v62 = vpop.f32.mrb[200].mxu0 }
 0x55f   :  { %v6986_v59 = vadd.f32 %v6938_v30, %v6796_v10  ;;  %v6988_v34 = vadd.f32 %v6979_v62, %v6798_v44  ;;  %v6940_v28 = vpop.f32.mrb[225].mxu1  ;;  %v6981_v35 = vpop.f32.mrb[201].mxu0 }
 0x560   :  { %v6987_v36 = vadd.f32 %v6940_v28, %v6797_v14  ;;  %v6989_v58 = vadd.f32 %v6981_v35, %v6799_v1  ;;  %v6942_v37 = vpop.f32.mrb[226].mxu1  ;;  %v6983_v38 = vpop.f32.mrb[202].mxu0 }
 0x561   :  { %v7012_v42 = vadd.f32 %v6995_v26, %v6986_v59  ;;  %v7014_v39 = vadd.f32 %v7003_v27, %v6988_v34  ;;  %v6943_v41 = vpop.f32.mrb[227].mxu1  ;;  %v6984_v12 = vpop.f32.mrb[203].mxu0 }
 0x562   :  { %v7013_v2 = vadd.f32 %v6999_v31, %v6987_v36  ;;  %v7015_v43 = vadd.f32 %v7007_v49, %v6989_v58 }
 0x563   :  { %v7016_v47 = vmax.f32 %v7012_v42, 0.0  ;;  %v7018_v51 = vmax.f32 %v7014_v39, 0.0 }
 0x564   :  { %v7017_v48 = vmax.f32 %v7013_v2, 0.0  ;;  %v7019_v50 = vmax.f32 %v7015_v43, 0.0 }
 0x565   :  { %v7020_v54 = vpack.c.bf16 %v7016_v47, %v7016_v47  ;;  %v7022_v55 = vpack.c.bf16 %v7018_v51, %v7018_v51 }
 0x566   :  { %v7021_v53 = vpack.c.bf16 %v7017_v48, %v7017_v48  ;;  %v7023_v3 = vpack.c.bf16 %v7019_v50, %v7019_v50 }
 0x568   :  { %7319 = vmatprep.mubr.bf16.mxu1 %v7021_v53  ;;  %7359 = vmatprep.mubr.bf16.mxu0 %v7023_v3 }
 0x569   :  { %7320 = vmatmul.mubr.bf16.vlgmr.msra.gmra.mrb[228].mxu1 %v7020_v54  ;;  %7360 = vmatmul.mubr.bf16.vlgmr.msra.gmra.mrb[204].mxu0 %v7022_v55 }
 0x63c   :  { %v8131_v56 = vpop.f32.mrb[228].mxu1  ;;  %v8153_v16 = vpop.f32.mrb[204].mxu0 }
 0x63d   :  { %v8132_v57 = vpop.f32.mrb[229].mxu1  ;;  %v8154_v61 = vpop.f32.mrb[205].mxu0 }
 0x63e   :  { %v8133_v25 = vadd.f32 %v8132_v57, %v8131_v56  ;;  %v8155_v63 = vadd.f32 %v8154_v61, %v8153_v16  ;;  %v8134_v0 = vpop.f32.mrb[230].mxu1  ;;  %v8156_v32 = vpop.f32.mrb[206].mxu0 }
 0x63f   :  { %v8135_v4 = vpop.f32.mrb[231].mxu1  ;;  %v8157_v5 = vpop.f32.mrb[207].mxu0 }
 0x640   :  { %v7322_v6 = vadd.f32 %v8133_v25, %v7799_v18 }
 0x642   :  { %v7362_v40 = vadd.f32 %v8155_v63, %v7322_v6 }
 0x644   :  { %7367 = vst [vmem:[#allocation5] sm:$0x3] %v7362_v40 }
 0x645   :  { %9303 = shalt.err (!%p9300_p4)
}
 0x646   :  { %s9304_s16 = scalar_lea.hbm %s11092_s11, 32 }
 0x647   :  { %p9305_p5 = scmp.ne.s32.totalorder %s11092_s11, %s9304_s16  ;;  %p9308_p6 = scmp.lt.u32.totalorder %s9304_s16, %s11092_s11 }
 0x649   :  { %p9310_p7 = pnand %p9308_p6, %p9305_p5 }
 0x64b   :  { %9313 = shalt.err (!%p9310_p7)
}
 0x64c   :  { %7377 = dma.vmem_to_hbm [thread:$0]  %s7375_s14, 32, %s11092_s11, [#allocation6]  }
 0x64d   :  { %9314 = dma.done.wait [#allocation6], 32  }
 0x64e   :  { %9315 = vsyncadd [#allocation6], 4294967264 }
 0x64f   :  { %7381 = vsyncpa [#allocation6], 1 }

</bundles_post_ra>
